<compile_context>
chip_gen: v6e
topology: v6e:2x2x1
jax: 0.10.0
libtpu: 0.0.40
codegen_flags: <defaults>
</compile_context>

<pallas_src>
import jax
import jax.numpy as jnp
from jax import lax
from jax.experimental import pallas as pl
from jax.experimental.pallas import tpu as pltpu


def _round_up(n, m):
    return ((n + m - 1) // m) * m


def _choose_m_block(M, m_block_max):
    """Lane-axis tile for the flattened rows.

    Multiple of 128 (lane width); capped at m_block_max; once there is more
    than one tile's worth of work (>256 rows) split into >=2 tiles so the
    "parallel" grid axis can shard across v7x's two TensorCores.
    """
    m_block_max = max(128, (m_block_max // 128) * 128)
    m128 = _round_up(M, 128)
    if m128 <= 256:
        return min(m128, m_block_max)
    half = _round_up(m128 // 2, 128)
    return min(m_block_max, half)


def _lstm_kernel(x_ref, wih_ref, whh_ref, b_ref, hout_ref, xw_ref):
    """LSTM recurrence over T steps for one tile of Mb independent rows.

    Lane-major layout: rows (Mb) on the lane axis everywhere.

    x_ref:   (T, V, Mb)  time-major inputs (f32 or bf16)
    wih_ref: (4H, V)     input->gates weights (PyTorch W_ih layout)
    whh_ref: (4H, H)     hidden->gates weights (PyTorch W_hh layout)
    b_ref:   (4H, 1)     combined bias (b_ih + b_hh), f32
    hout_ref:(H, Mb)     final hidden state h_T (lane-dense store)
    xw_ref:  (T, 4H, Mb) VMEM scratch holding the hoisted x@W_ih + b
    """
    T, V, Mb = x_ref.shape
    G, H = whh_ref.shape          # G = 4H
    w_dtype = whh_ref.dtype

    wih = wih_ref[...]            # (4H, V)   resident
    whh = whh_ref[...]            # (4H, H)   resident across the time loop
    bias = b_ref[...]             # (4H, 1)   f32, lane-broadcast once per t

    # ---- Pre-pass: hoist input->gate matmuls (+ bias) off the serial path. ----
    # T independent (4H, V) x (V, Mb) MXU matmuls straight into the (T, 4H, Mb)
    # orientation the recurrence wants; no transposes, no reshapes.
    def prepass(t, carry):
        xw_ref[t] = (jnp.dot(wih, x_ref[t], preferred_element_type=jnp.float32)
                     + bias)
        return carry

    lax.fori_loop(0, T, prepass, 0, unroll=True)

    # ---- Serial recurrence: state carried as (H, Mb), gate slices on sublanes. ----
    def step(t, carry):
        h, c = carry
        gates = xw_ref[t] + jnp.dot(whh, h.astype(w_dtype),
                                    preferred_element_type=jnp.float32)  # (4H, Mb)
        # PyTorch gate order [i, f, g, o]; sublane slices at multiples of 8 -> free.
        i_g = jax.nn.sigmoid(gates[0 * H:1 * H])
        f_g = jax.nn.sigmoid(gates[1 * H:2 * H])
        g_g = jnp.tanh(gates[2 * H:3 * H])
        o_g = jax.nn.sigmoid(gates[3 * H:4 * H])
        c = f_g * c + i_g * g_g
        h = o_g * jnp.tanh(c)
        return h, c

    h0 = jnp.zeros((H, Mb), jnp.float32)
    c0 = jnp.zeros((H, Mb), jnp.float32)
    h, _ = lax.fori_loop(0, T, step, (h0, c0), unroll=True)

    # Single lane-dense store after the loop.
    hout_ref[...] = h.astype(hout_ref.dtype)


def read_word_encoder_forward(x, w_ih, w_hh, b_ih, b_hh,
                              *, matmul_dtype=None, m_block_max=512):
    """x: (B, N, T, V) float32.  Returns (B, H, N) like the PyTorch module.

    matmul_dtype: jnp.bfloat16 is the recommended fast path on v5e/v6e/v7x
                  (bf16 MXU operands, f32 accumulation, f32 state/elementwise);
                  None keeps exact f32 matmul operands.
    """
    B, N, T, V = x.shape
    G = w_ih.shape[0]          # 4H
    H = G // 4
    M = B * N

    # Glue in plain JAX: flatten independent sequences and go time-major with
    # the rows on the last (lane) axis: (B,N,T,V) -> (M,T,V) -> (T,V,M).
    x_tvm = jnp.transpose(x.reshape(M, T, V), (1, 2, 0))       # (T, V, M)

    m_block = _choose_m_block(M, m_block_max)
    M_pad = _round_up(M, m_block)
    if M_pad != M:
        # Padded rows compute a throwaway LSTM over zeros; sliced off below.
        x_tvm = jnp.pad(x_tvm, ((0, 0), (0, 0), (0, M_pad - M)))

    bias = (b_ih + b_hh).reshape(G, 1).astype(jnp.float32)     # (4H, 1)
    wih = w_ih                                                  # (4H, V)
    whh = w_hh                                                  # (4H, H)

    if matmul_dtype is not None:
        x_tvm = x_tvm.astype(matmul_dtype)
        wih = wih.astype(matmul_dtype)
        whh = whh.astype(matmul_dtype)

    num_m = M_pad // m_block

    cost = pl.CostEstimate(
        flops=2 * T * M_pad * (V + H) * G,
        transcendentals=5 * T * M_pad * H,             # 3 sigmoid + 2 tanh per unit/step
        bytes_accessed=(x_tvm.size * x_tvm.dtype.itemsize
                        + wih.size * wih.dtype.itemsize
                        + whh.size * whh.dtype.itemsize
                        + bias.size * 4
                        + M_pad * H * 4))

    h_final = pl.pallas_call(
        _lstm_kernel,
        out_shape=jax.ShapeDtypeStruct((H, M_pad), jnp.float32),
        grid_spec=pltpu.PrefetchScalarGridSpec(
            num_scalar_prefetch=0,
            grid=(num_m,),
            in_specs=[
                pl.BlockSpec((T, V, m_block), lambda m: (0, 0, m)),
                pl.BlockSpec((G, V), lambda m: (0, 0)),   # weights resident across grid
                pl.BlockSpec((G, H), lambda m: (0, 0)),
                pl.BlockSpec((G, 1), lambda m: (0, 0)),
            ],
            out_specs=pl.BlockSpec((H, m_block), lambda m: (0, m)),
            scratch_shapes=[pltpu.VMEM((T, G, m_block), jnp.float32)],
        ),
        compiler_params=pltpu.CompilerParams(
            dimension_semantics=("parallel",)),        # rows independent -> 2-TC split
        cost_estimate=cost,
    )(x_tvm, wih, whh, bias)

    h_final = h_final[:, :M]                           # (H, M), drop padded rows
    # (H, M) -> (H, B, N) -> (B, H, N)  (== PyTorch cat(...).permute(0, 2, 1))
    return jnp.transpose(h_final.reshape(H, B, N), (1, 0, 2))


def _lstm_reference(x, w_ih, w_hh, b_ih, b_hh):
    """Pure-JAX reference matching torch.nn.LSTM (num_layers=1, batch_first)."""
    B, N, T, V = x.shape
    H = w_hh.shape[1]
    M = B * N
    x_tm = jnp.transpose(x.reshape(M, T, V), (1, 0, 2))  # (T, M, V)
    b = b_ih + b_hh

    def step(carry, xt):
        h, c = carry
        gates = xt @ w_ih.T + h @ w_hh.T + b
        i_g = jax.nn.sigmoid(gates[:, 0 * H:1 * H])
        f_g = jax.nn.sigmoid(gates[:, 1 * H:2 * H])
        g_g = jnp.tanh(gates[:, 2 * H:3 * H])
        o_g = jax.nn.sigmoid(gates[:, 3 * H:4 * H])
        c = f_g * c + i_g * g_g
        h = o_g * jnp.tanh(c)
        return (h, c), None

    init = (jnp.zeros((M, H), jnp.float32), jnp.zeros((M, H), jnp.float32))
    (h_final, _), _ = lax.scan(step, init, x_tm)
    return jnp.transpose(h_final.reshape(B, N, H), (0, 2, 1))


if __name__ == "__main__":
    # Small shapes consistent with the module's forward:
    # x: (batch_size=2, n_set=4, max_word_length=8, vocab_size=26), hidden_dim=32
    B, N, T, V, H = 2, 4, 8, 26, 32

    key = jax.random.PRNGKey(0)
    kx, k1, k2, k3, k4 = jax.random.split(key, 5)

    x = jax.random.normal(kx, (B, N, T, V), dtype=jnp.float32)

    # Deterministic LSTM parameter init (PyTorch default: U(-1/sqrt(H), 1/sqrt(H))).
    scale = 1.0 / jnp.sqrt(jnp.float32(H))
    w_ih = jax.random.uniform(k1, (4 * H, V), jnp.float32, -scale, scale)
    w_hh = jax.random.uniform(k2, (4 * H, H), jnp.float32, -scale, scale)
    b_ih = jax.random.uniform(k3, (4 * H,), jnp.float32, -scale, scale)
    b_hh = jax.random.uniform(k4, (4 * H,), jnp.float32, -scale, scale)

    ref = _lstm_reference(x, w_ih, w_hh, b_ih, b_hh)

    # Exact path (f32 MXU operands): tight tolerance vs. the pure-JAX reference.
    out = read_word_encoder_forward(x, w_ih, w_hh, b_ih, b_hh)
    out = jax.block_until_ready(out)
    assert out.shape == (B, H, N), out.shape
    assert jnp.allclose(out, ref, atol=1e-5, rtol=1e-5), \
        "f32 kernel mismatch vs pure-JAX LSTM reference"

    # bf16 MXU-operand fast path (recommended on v5e/v6e/v7x): f32 accumulation
    # and f32 state, so only operand rounding loosens the tolerance.
    out_bf16 = read_word_encoder_forward(x, w_ih, w_hh, b_ih, b_hh,
                                         matmul_dtype=jnp.bfloat16)
    out_bf16 = jax.block_until_ready(out_bf16)
    assert out_bf16.shape == (B, H, N), out_bf16.shape
    assert jnp.allclose(out_bf16, ref, atol=3e-2, rtol=3e-2), \
        "bf16-matmul kernel mismatch vs pure-JAX LSTM reference"

    print("KERNEL_OK")
</pallas_src>

<mosaic_0001>
module attributes {stable_mosaic.version = 11 : i64} {
  func.func @_lstm_kernel(%arg0: i32, %arg1: memref<8x26x128xf32, #tpu.memory_space<vmem>>, %arg2: memref<128x26xf32, #tpu.memory_space<vmem>>, %arg3: memref<128x32xf32, #tpu.memory_space<vmem>>, %arg4: memref<128x1xf32, #tpu.memory_space<vmem>>, %arg5: memref<32x128xf32, #tpu.memory_space<vmem>>, %arg6: memref<8x128x128xf32, #tpu.memory_space<vmem>>) attributes {dimension_semantics = [#tpu.dimension_semantics<parallel>], iteration_bounds = array<i64: 1>, scalar_prefetch = 0 : i64, scratch_operands = 1 : i64, tpu.core_type = #tpu.core_type<tc>, window_params = [{transform_indices = @transform_0, window_bounds = array<i64: 8, 26, 128>}, {pipeline_mode = #tpu.pipeline_mode<synchronous>, transform_indices = @transform_1, window_bounds = array<i64: 128, 26>}, {pipeline_mode = #tpu.pipeline_mode<synchronous>, transform_indices = @transform_2, window_bounds = array<i64: 128, 32>}, {pipeline_mode = #tpu.pipeline_mode<synchronous>, transform_indices = @transform_3, window_bounds = array<i64: 128, 1>}, {transform_indices = @transform_4, window_bounds = array<i64: 32, 128>}]} {
    %c0 = arith.constant 0 : index
    %c0_0 = arith.constant 0 : index
    %0 = vector.load %arg2[%c0, %c0_0] : memref<128x26xf32, #tpu.memory_space<vmem>>, vector<128x26xf32>
    %c0_1 = arith.constant 0 : index
    %c0_2 = arith.constant 0 : index
    %1 = vector.load %arg3[%c0_1, %c0_2] : memref<128x32xf32, #tpu.memory_space<vmem>>, vector<128x32xf32>
    %c0_3 = arith.constant 0 : index
    %c0_4 = arith.constant 0 : index
    %2 = vector.load %arg4[%c0_3, %c0_4] : memref<128x1xf32, #tpu.memory_space<vmem>>, vector<128x1xf32>
    %c0_i32 = arith.constant 0 : i32
    %3 = arith.index_cast %c0_i32 : i32 to index
    %c0_5 = arith.constant 0 : index
    %c0_6 = arith.constant 0 : index
    %4 = vector.load %arg1[%3, %c0_5, %c0_6] : memref<8x26x128xf32, #tpu.memory_space<vmem>>, vector<1x26x128xf32>
    %5 = vector.shape_cast %4 : vector<1x26x128xf32> to vector<26x128xf32>
    %cst = arith.constant dense<0.000000e+00> : vector<128x128xf32>
    %6 = tpu.matmul %0, %5, %cst {dimension_numbers = #tpu.dot_dimension_numbers<[1], [0], [0], [1], [0, 0, 1, 1], [], []>} : vector<128x26xf32>, vector<26x128xf32>, vector<128x128xf32> -> vector<128x128xf32>
    %7 = vector.broadcast %2 : vector<128x1xf32> to vector<128x128xf32>
    %8 = arith.addf %6, %7 : vector<128x128xf32>
    %9 = arith.index_cast %c0_i32 : i32 to index
    %c0_7 = arith.constant 0 : index
    %c0_8 = arith.constant 0 : index
    %10 = vector.load %arg6[%9, %c0_7, %c0_8] : memref<8x128x128xf32, #tpu.memory_space<vmem>>, vector<1x128x128xf32>
    %11 = vector.shape_cast %10 : vector<1x128x128xf32> to vector<128x128xf32>
    %12 = vector.shape_cast %8 : vector<128x128xf32> to vector<1x128x128xf32>
    tpu.vector_store %arg6[%9, %c0_7, %c0_8], %12 {strides = array<i32>} : memref<8x128x128xf32, #tpu.memory_space<vmem>>, vector<1x128x128xf32>,
    %c1_i32 = arith.constant 1 : i32
    %13 = arith.index_cast %c1_i32 : i32 to index
    %c0_9 = arith.constant 0 : index
    %c0_10 = arith.constant 0 : index
    %14 = vector.load %arg1[%13, %c0_9, %c0_10] : memref<8x26x128xf32, #tpu.memory_space<vmem>>, vector<1x26x128xf32>
    %15 = vector.shape_cast %14 : vector<1x26x128xf32> to vector<26x128xf32>
    %cst_11 = arith.constant dense<0.000000e+00> : vector<128x128xf32>
    %16 = tpu.matmul %0, %15, %cst_11 {dimension_numbers = #tpu.dot_dimension_numbers<[1], [0], [0], [1], [0, 0, 1, 1], [], []>} : vector<128x26xf32>, vector<26x128xf32>, vector<128x128xf32> -> vector<128x128xf32>
    %17 = vector.broadcast %2 : vector<128x1xf32> to vector<128x128xf32>
    %18 = arith.addf %16, %17 : vector<128x128xf32>
    %19 = arith.index_cast %c1_i32 : i32 to index
    %c0_12 = arith.constant 0 : index
    %c0_13 = arith.constant 0 : index
    %20 = vector.load %arg6[%19, %c0_12, %c0_13] : memref<8x128x128xf32, #tpu.memory_space<vmem>>, vector<1x128x128xf32>
    %21 = vector.shape_cast %20 : vector<1x128x128xf32> to vector<128x128xf32>
    %22 = vector.shape_cast %18 : vector<128x128xf32> to vector<1x128x128xf32>
    tpu.vector_store %arg6[%19, %c0_12, %c0_13], %22 {strides = array<i32>} : memref<8x128x128xf32, #tpu.memory_space<vmem>>, vector<1x128x128xf32>,
    %c2_i32 = arith.constant 2 : i32
    %23 = arith.index_cast %c2_i32 : i32 to index
    %c0_14 = arith.constant 0 : index
    %c0_15 = arith.constant 0 : index
    %24 = vector.load %arg1[%23, %c0_14, %c0_15] : memref<8x26x128xf32, #tpu.memory_space<vmem>>, vector<1x26x128xf32>
    %25 = vector.shape_cast %24 : vector<1x26x128xf32> to vector<26x128xf32>
    %cst_16 = arith.constant dense<0.000000e+00> : vector<128x128xf32>
    %26 = tpu.matmul %0, %25, %cst_16 {dimension_numbers = #tpu.dot_dimension_numbers<[1], [0], [0], [1], [0, 0, 1, 1], [], []>} : vector<128x26xf32>, vector<26x128xf32>, vector<128x128xf32> -> vector<128x128xf32>
    %27 = vector.broadcast %2 : vector<128x1xf32> to vector<128x128xf32>
    %28 = arith.addf %26, %27 : vector<128x128xf32>
    %29 = arith.index_cast %c2_i32 : i32 to index
    %c0_17 = arith.constant 0 : index
    %c0_18 = arith.constant 0 : index
    %30 = vector.load %arg6[%29, %c0_17, %c0_18] : memref<8x128x128xf32, #tpu.memory_space<vmem>>, vector<1x128x128xf32>
    %31 = vector.shape_cast %30 : vector<1x128x128xf32> to vector<128x128xf32>
    %32 = vector.shape_cast %28 : vector<128x128xf32> to vector<1x128x128xf32>
    tpu.vector_store %arg6[%29, %c0_17, %c0_18], %32 {strides = array<i32>} : memref<8x128x128xf32, #tpu.memory_space<vmem>>, vector<1x128x128xf32>,
    %c3_i32 = arith.constant 3 : i32
    %33 = arith.index_cast %c3_i32 : i32 to index
    %c0_19 = arith.constant 0 : index
    %c0_20 = arith.constant 0 : index
    %34 = vector.load %arg1[%33, %c0_19, %c0_20] : memref<8x26x128xf32, #tpu.memory_space<vmem>>, vector<1x26x128xf32>
    %35 = vector.shape_cast %34 : vector<1x26x128xf32> to vector<26x128xf32>
    %cst_21 = arith.constant dense<0.000000e+00> : vector<128x128xf32>
    %36 = tpu.matmul %0, %35, %cst_21 {dimension_numbers = #tpu.dot_dimension_numbers<[1], [0], [0], [1], [0, 0, 1, 1], [], []>} : vector<128x26xf32>, vector<26x128xf32>, vector<128x128xf32> -> vector<128x128xf32>
    %37 = vector.broadcast %2 : vector<128x1xf32> to vector<128x128xf32>
    %38 = arith.addf %36, %37 : vector<128x128xf32>
    %39 = arith.index_cast %c3_i32 : i32 to index
    %c0_22 = arith.constant 0 : index
    %c0_23 = arith.constant 0 : index
    %40 = vector.load %arg6[%39, %c0_22, %c0_23] : memref<8x128x128xf32, #tpu.memory_space<vmem>>, vector<1x128x128xf32>
    %41 = vector.shape_cast %40 : vector<1x128x128xf32> to vector<128x128xf32>
    %42 = vector.shape_cast %38 : vector<128x128xf32> to vector<1x128x128xf32>
    tpu.vector_store %arg6[%39, %c0_22, %c0_23], %42 {strides = array<i32>} : memref<8x128x128xf32, #tpu.memory_space<vmem>>, vector<1x128x128xf32>,
    %c4_i32 = arith.constant 4 : i32
    %43 = arith.index_cast %c4_i32 : i32 to index
    %c0_24 = arith.constant 0 : index
    %c0_25 = arith.constant 0 : index
    %44 = vector.load %arg1[%43, %c0_24, %c0_25] : memref<8x26x128xf32, #tpu.memory_space<vmem>>, vector<1x26x128xf32>
    %45 = vector.shape_cast %44 : vector<1x26x128xf32> to vector<26x128xf32>
    %cst_26 = arith.constant dense<0.000000e+00> : vector<128x128xf32>
    %46 = tpu.matmul %0, %45, %cst_26 {dimension_numbers = #tpu.dot_dimension_numbers<[1], [0], [0], [1], [0, 0, 1, 1], [], []>} : vector<128x26xf32>, vector<26x128xf32>, vector<128x128xf32> -> vector<128x128xf32>
    %47 = vector.broadcast %2 : vector<128x1xf32> to vector<128x128xf32>
    %48 = arith.addf %46, %47 : vector<128x128xf32>
    %49 = arith.index_cast %c4_i32 : i32 to index
    %c0_27 = arith.constant 0 : index
    %c0_28 = arith.constant 0 : index
    %50 = vector.load %arg6[%49, %c0_27, %c0_28] : memref<8x128x128xf32, #tpu.memory_space<vmem>>, vector<1x128x128xf32>
    %51 = vector.shape_cast %50 : vector<1x128x128xf32> to vector<128x128xf32>
    %52 = vector.shape_cast %48 : vector<128x128xf32> to vector<1x128x128xf32>
    tpu.vector_store %arg6[%49, %c0_27, %c0_28], %52 {strides = array<i32>} : memref<8x128x128xf32, #tpu.memory_space<vmem>>, vector<1x128x128xf32>,
    %c5_i32 = arith.constant 5 : i32
    %53 = arith.index_cast %c5_i32 : i32 to index
    %c0_29 = arith.constant 0 : index
    %c0_30 = arith.constant 0 : index
    %54 = vector.load %arg1[%53, %c0_29, %c0_30] : memref<8x26x128xf32, #tpu.memory_space<vmem>>, vector<1x26x128xf32>
    %55 = vector.shape_cast %54 : vector<1x26x128xf32> to vector<26x128xf32>
    %cst_31 = arith.constant dense<0.000000e+00> : vector<128x128xf32>
    %56 = tpu.matmul %0, %55, %cst_31 {dimension_numbers = #tpu.dot_dimension_numbers<[1], [0], [0], [1], [0, 0, 1, 1], [], []>} : vector<128x26xf32>, vector<26x128xf32>, vector<128x128xf32> -> vector<128x128xf32>
    %57 = vector.broadcast %2 : vector<128x1xf32> to vector<128x128xf32>
    %58 = arith.addf %56, %57 : vector<128x128xf32>
    %59 = arith.index_cast %c5_i32 : i32 to index
    %c0_32 = arith.constant 0 : index
    %c0_33 = arith.constant 0 : index
    %60 = vector.load %arg6[%59, %c0_32, %c0_33] : memref<8x128x128xf32, #tpu.memory_space<vmem>>, vector<1x128x128xf32>
    %61 = vector.shape_cast %60 : vector<1x128x128xf32> to vector<128x128xf32>
    %62 = vector.shape_cast %58 : vector<128x128xf32> to vector<1x128x128xf32>
    tpu.vector_store %arg6[%59, %c0_32, %c0_33], %62 {strides = array<i32>} : memref<8x128x128xf32, #tpu.memory_space<vmem>>, vector<1x128x128xf32>,
    %c6_i32 = arith.constant 6 : i32
    %63 = arith.index_cast %c6_i32 : i32 to index
    %c0_34 = arith.constant 0 : index
    %c0_35 = arith.constant 0 : index
    %64 = vector.load %arg1[%63, %c0_34, %c0_35] : memref<8x26x128xf32, #tpu.memory_space<vmem>>, vector<1x26x128xf32>
    %65 = vector.shape_cast %64 : vector<1x26x128xf32> to vector<26x128xf32>
    %cst_36 = arith.constant dense<0.000000e+00> : vector<128x128xf32>
    %66 = tpu.matmul %0, %65, %cst_36 {dimension_numbers = #tpu.dot_dimension_numbers<[1], [0], [0], [1], [0, 0, 1, 1], [], []>} : vector<128x26xf32>, vector<26x128xf32>, vector<128x128xf32> -> vector<128x128xf32>
    %67 = vector.broadcast %2 : vector<128x1xf32> to vector<128x128xf32>
    %68 = arith.addf %66, %67 : vector<128x128xf32>
    %69 = arith.index_cast %c6_i32 : i32 to index
    %c0_37 = arith.constant 0 : index
    %c0_38 = arith.constant 0 : index
    %70 = vector.load %arg6[%69, %c0_37, %c0_38] : memref<8x128x128xf32, #tpu.memory_space<vmem>>, vector<1x128x128xf32>
    %71 = vector.shape_cast %70 : vector<1x128x128xf32> to vector<128x128xf32>
    %72 = vector.shape_cast %68 : vector<128x128xf32> to vector<1x128x128xf32>
    tpu.vector_store %arg6[%69, %c0_37, %c0_38], %72 {strides = array<i32>} : memref<8x128x128xf32, #tpu.memory_space<vmem>>, vector<1x128x128xf32>,
    %c7_i32 = arith.constant 7 : i32
    %73 = arith.index_cast %c7_i32 : i32 to index
    %c0_39 = arith.constant 0 : index
    %c0_40 = arith.constant 0 : index
    %74 = vector.load %arg1[%73, %c0_39, %c0_40] : memref<8x26x128xf32, #tpu.memory_space<vmem>>, vector<1x26x128xf32>
    %75 = vector.shape_cast %74 : vector<1x26x128xf32> to vector<26x128xf32>
    %cst_41 = arith.constant dense<0.000000e+00> : vector<128x128xf32>
    %76 = tpu.matmul %0, %75, %cst_41 {dimension_numbers = #tpu.dot_dimension_numbers<[1], [0], [0], [1], [0, 0, 1, 1], [], []>} : vector<128x26xf32>, vector<26x128xf32>, vector<128x128xf32> -> vector<128x128xf32>
    %77 = vector.broadcast %2 : vector<128x1xf32> to vector<128x128xf32>
    %78 = arith.addf %76, %77 : vector<128x128xf32>
    %79 = arith.index_cast %c7_i32 : i32 to index
    %c0_42 = arith.constant 0 : index
    %c0_43 = arith.constant 0 : index
    %80 = vector.load %arg6[%79, %c0_42, %c0_43] : memref<8x128x128xf32, #tpu.memory_space<vmem>>, vector<1x128x128xf32>
    %81 = vector.shape_cast %80 : vector<1x128x128xf32> to vector<128x128xf32>
    %82 = vector.shape_cast %78 : vector<128x128xf32> to vector<1x128x128xf32>
    tpu.vector_store %arg6[%79, %c0_42, %c0_43], %82 {strides = array<i32>} : memref<8x128x128xf32, #tpu.memory_space<vmem>>, vector<1x128x128xf32>,
    %c8_i32 = arith.constant 8 : i32
    %cst_44 = arith.constant 0.000000e+00 : f32
    %83 = vector.broadcast %cst_44 : f32 to vector<32x128xf32>
    %cst_45 = arith.constant 0.000000e+00 : f32
    %84 = vector.broadcast %cst_45 : f32 to vector<32x128xf32>
    %c0_i32_46 = arith.constant 0 : i32
    %85 = arith.index_cast %c0_i32_46 : i32 to index
    %c0_47 = arith.constant 0 : index
    %c0_48 = arith.constant 0 : index
    %86 = vector.load %arg6[%85, %c0_47, %c0_48] : memref<8x128x128xf32, #tpu.memory_space<vmem>>, vector<1x128x128xf32>
    %87 = vector.shape_cast %86 : vector<1x128x128xf32> to vector<128x128xf32>
    %cst_49 = arith.constant dense<0.000000e+00> : vector<128x128xf32>
    %88 = tpu.matmul %1, %83, %cst_49 {dimension_numbers = #tpu.dot_dimension_numbers<[1], [0], [0], [1], [0, 0, 1, 1], [], []>} : vector<128x32xf32>, vector<32x128xf32>, vector<128x128xf32> -> vector<128x128xf32>
    %89 = arith.addf %87, %88 : vector<128x128xf32>
    %90 = vector.extract_strided_slice %89 {offsets = [0, 0], sizes = [32, 128], strides = [1, 1]} : vector<128x128xf32> to vector<32x128xf32>
    %91 = arith.negf %90 : vector<32x128xf32>
    %92 = math.exp %91 : vector<32x128xf32>
    %cst_50 = arith.constant 1.000000e+00 : f32
    %93 = vector.broadcast %cst_50 : f32 to vector<32x128xf32>
    %94 = arith.addf %93, %92 : vector<32x128xf32>
    %95 = arith.divf %93, %94 : vector<32x128xf32>
    %96 = vector.extract_strided_slice %89 {offsets = [32, 0], sizes = [32, 128], strides = [1, 1]} : vector<128x128xf32> to vector<32x128xf32>
    %97 = arith.negf %96 : vector<32x128xf32>
    %98 = math.exp %97 : vector<32x128xf32>
    %cst_51 = arith.constant 1.000000e+00 : f32
    %99 = vector.broadcast %cst_51 : f32 to vector<32x128xf32>
    %100 = arith.addf %99, %98 : vector<32x128xf32>
    %101 = arith.divf %99, %100 : vector<32x128xf32>
    %102 = vector.extract_strided_slice %89 {offsets = [64, 0], sizes = [32, 128], strides = [1, 1]} : vector<128x128xf32> to vector<32x128xf32>
    %103 = math.tanh %102 : vector<32x128xf32>
    %104 = vector.extract_strided_slice %89 {offsets = [96, 0], sizes = [32, 128], strides = [1, 1]} : vector<128x128xf32> to vector<32x128xf32>
    %105 = arith.negf %104 : vector<32x128xf32>
    %106 = math.exp %105 : vector<32x128xf32>
    %cst_52 = arith.constant 1.000000e+00 : f32
    %107 = vector.broadcast %cst_52 : f32 to vector<32x128xf32>
    %108 = arith.addf %107, %106 : vector<32x128xf32>
    %109 = arith.divf %107, %108 : vector<32x128xf32>
    %110 = arith.mulf %101, %84 : vector<32x128xf32>
    %111 = arith.mulf %95, %103 : vector<32x128xf32>
    %112 = arith.addf %110, %111 : vector<32x128xf32>
    %113 = math.tanh %112 : vector<32x128xf32>
    %114 = arith.mulf %109, %113 : vector<32x128xf32>
    %c1_i32_53 = arith.constant 1 : i32
    %115 = arith.index_cast %c1_i32_53 : i32 to index
    %c0_54 = arith.constant 0 : index
    %c0_55 = arith.constant 0 : index
    %116 = vector.load %arg6[%115, %c0_54, %c0_55] : memref<8x128x128xf32, #tpu.memory_space<vmem>>, vector<1x128x128xf32>
    %117 = vector.shape_cast %116 : vector<1x128x128xf32> to vector<128x128xf32>
    %cst_56 = arith.constant dense<0.000000e+00> : vector<128x128xf32>
    %118 = tpu.matmul %1, %114, %cst_56 {dimension_numbers = #tpu.dot_dimension_numbers<[1], [0], [0], [1], [0, 0, 1, 1], [], []>} : vector<128x32xf32>, vector<32x128xf32>, vector<128x128xf32> -> vector<128x128xf32>
    %119 = arith.addf %117, %118 : vector<128x128xf32>
    %120 = vector.extract_strided_slice %119 {offsets = [0, 0], sizes = [32, 128], strides = [1, 1]} : vector<128x128xf32> to vector<32x128xf32>
    %121 = arith.negf %120 : vector<32x128xf32>
    %122 = math.exp %121 : vector<32x128xf32>
    %cst_57 = arith.constant 1.000000e+00 : f32
    %123 = vector.broadcast %cst_57 : f32 to vector<32x128xf32>
    %124 = arith.addf %123, %122 : vector<32x128xf32>
    %125 = arith.divf %123, %124 : vector<32x128xf32>
    %126 = vector.extract_strided_slice %119 {offsets = [32, 0], sizes = [32, 128], strides = [1, 1]} : vector<128x128xf32> to vector<32x128xf32>
    %127 = arith.negf %126 : vector<32x128xf32>
    %128 = math.exp %127 : vector<32x128xf32>
    %cst_58 = arith.constant 1.000000e+00 : f32
    %129 = vector.broadcast %cst_58 : f32 to vector<32x128xf32>
    %130 = arith.addf %129, %128 : vector<32x128xf32>
    %131 = arith.divf %129, %130 : vector<32x128xf32>
    %132 = vector.extract_strided_slice %119 {offsets = [64, 0], sizes = [32, 128], strides = [1, 1]} : vector<128x128xf32> to vector<32x128xf32>
    %133 = math.tanh %132 : vector<32x128xf32>
    %134 = vector.extract_strided_slice %119 {offsets = [96, 0], sizes = [32, 128], strides = [1, 1]} : vector<128x128xf32> to vector<32x128xf32>
    %135 = arith.negf %134 : vector<32x128xf32>
    %136 = math.exp %135 : vector<32x128xf32>
    %cst_59 = arith.constant 1.000000e+00 : f32
    %137 = vector.broadcast %cst_59 : f32 to vector<32x128xf32>
    %138 = arith.addf %137, %136 : vector<32x128xf32>
    %139 = arith.divf %137, %138 : vector<32x128xf32>
    %140 = arith.mulf %131, %112 : vector<32x128xf32>
    %141 = arith.mulf %125, %133 : vector<32x128xf32>
    %142 = arith.addf %140, %141 : vector<32x128xf32>
    %143 = math.tanh %142 : vector<32x128xf32>
    %144 = arith.mulf %139, %143 : vector<32x128xf32>
    %c2_i32_60 = arith.constant 2 : i32
    %145 = arith.index_cast %c2_i32_60 : i32 to index
    %c0_61 = arith.constant 0 : index
    %c0_62 = arith.constant 0 : index
    %146 = vector.load %arg6[%145, %c0_61, %c0_62] : memref<8x128x128xf32, #tpu.memory_space<vmem>>, vector<1x128x128xf32>
    %147 = vector.shape_cast %146 : vector<1x128x128xf32> to vector<128x128xf32>
    %cst_63 = arith.constant dense<0.000000e+00> : vector<128x128xf32>
    %148 = tpu.matmul %1, %144, %cst_63 {dimension_numbers = #tpu.dot_dimension_numbers<[1], [0], [0], [1], [0, 0, 1, 1], [], []>} : vector<128x32xf32>, vector<32x128xf32>, vector<128x128xf32> -> vector<128x128xf32>
    %149 = arith.addf %147, %148 : vector<128x128xf32>
    %150 = vector.extract_strided_slice %149 {offsets = [0, 0], sizes = [32, 128], strides = [1, 1]} : vector<128x128xf32> to vector<32x128xf32>
    %151 = arith.negf %150 : vector<32x128xf32>
    %152 = math.exp %151 : vector<32x128xf32>
    %cst_64 = arith.constant 1.000000e+00 : f32
    %153 = vector.broadcast %cst_64 : f32 to vector<32x128xf32>
    %154 = arith.addf %153, %152 : vector<32x128xf32>
    %155 = arith.divf %153, %154 : vector<32x128xf32>
    %156 = vector.extract_strided_slice %149 {offsets = [32, 0], sizes = [32, 128], strides = [1, 1]} : vector<128x128xf32> to vector<32x128xf32>
    %157 = arith.negf %156 : vector<32x128xf32>
    %158 = math.exp %157 : vector<32x128xf32>
    %cst_65 = arith.constant 1.000000e+00 : f32
    %159 = vector.broadcast %cst_65 : f32 to vector<32x128xf32>
    %160 = arith.addf %159, %158 : vector<32x128xf32>
    %161 = arith.divf %159, %160 : vector<32x128xf32>
    %162 = vector.extract_strided_slice %149 {offsets = [64, 0], sizes = [32, 128], strides = [1, 1]} : vector<128x128xf32> to vector<32x128xf32>
    %163 = math.tanh %162 : vector<32x128xf32>
    %164 = vector.extract_strided_slice %149 {offsets = [96, 0], sizes = [32, 128], strides = [1, 1]} : vector<128x128xf32> to vector<32x128xf32>
    %165 = arith.negf %164 : vector<32x128xf32>
    %166 = math.exp %165 : vector<32x128xf32>
    %cst_66 = arith.constant 1.000000e+00 : f32
    %167 = vector.broadcast %cst_66 : f32 to vector<32x128xf32>
    %168 = arith.addf %167, %166 : vector<32x128xf32>
    %169 = arith.divf %167, %168 : vector<32x128xf32>
    %170 = arith.mulf %161, %142 : vector<32x128xf32>
    %171 = arith.mulf %155, %163 : vector<32x128xf32>
    %172 = arith.addf %170, %171 : vector<32x128xf32>
    %173 = math.tanh %172 : vector<32x128xf32>
    %174 = arith.mulf %169, %173 : vector<32x128xf32>
    %c3_i32_67 = arith.constant 3 : i32
    %175 = arith.index_cast %c3_i32_67 : i32 to index
    %c0_68 = arith.constant 0 : index
    %c0_69 = arith.constant 0 : index
    %176 = vector.load %arg6[%175, %c0_68, %c0_69] : memref<8x128x128xf32, #tpu.memory_space<vmem>>, vector<1x128x128xf32>
    %177 = vector.shape_cast %176 : vector<1x128x128xf32> to vector<128x128xf32>
    %cst_70 = arith.constant dense<0.000000e+00> : vector<128x128xf32>
    %178 = tpu.matmul %1, %174, %cst_70 {dimension_numbers = #tpu.dot_dimension_numbers<[1], [0], [0], [1], [0, 0, 1, 1], [], []>} : vector<128x32xf32>, vector<32x128xf32>, vector<128x128xf32> -> vector<128x128xf32>
    %179 = arith.addf %177, %178 : vector<128x128xf32>
    %180 = vector.extract_strided_slice %179 {offsets = [0, 0], sizes = [32, 128], strides = [1, 1]} : vector<128x128xf32> to vector<32x128xf32>
    %181 = arith.negf %180 : vector<32x128xf32>
    %182 = math.exp %181 : vector<32x128xf32>
    %cst_71 = arith.constant 1.000000e+00 : f32
    %183 = vector.broadcast %cst_71 : f32 to vector<32x128xf32>
    %184 = arith.addf %183, %182 : vector<32x128xf32>
    %185 = arith.divf %183, %184 : vector<32x128xf32>
    %186 = vector.extract_strided_slice %179 {offsets = [32, 0], sizes = [32, 128], strides = [1, 1]} : vector<128x128xf32> to vector<32x128xf32>
    %187 = arith.negf %186 : vector<32x128xf32>
    %188 = math.exp %187 : vector<32x128xf32>
    %cst_72 = arith.constant 1.000000e+00 : f32
    %189 = vector.broadcast %cst_72 : f32 to vector<32x128xf32>
    %190 = arith.addf %189, %188 : vector<32x128xf32>
    %191 = arith.divf %189, %190 : vector<32x128xf32>
    %192 = vector.extract_strided_slice %179 {offsets = [64, 0], sizes = [32, 128], strides = [1, 1]} : vector<128x128xf32> to vector<32x128xf32>
    %193 = math.tanh %192 : vector<32x128xf32>
    %194 = vector.extract_strided_slice %179 {offsets = [96, 0], sizes = [32, 128], strides = [1, 1]} : vector<128x128xf32> to vector<32x128xf32>
    %195 = arith.negf %194 : vector<32x128xf32>
    %196 = math.exp %195 : vector<32x128xf32>
    %cst_73 = arith.constant 1.000000e+00 : f32
    %197 = vector.broadcast %cst_73 : f32 to vector<32x128xf32>
    %198 = arith.addf %197, %196 : vector<32x128xf32>
    %199 = arith.divf %197, %198 : vector<32x128xf32>
    %200 = arith.mulf %191, %172 : vector<32x128xf32>
    %201 = arith.mulf %185, %193 : vector<32x128xf32>
    %202 = arith.addf %200, %201 : vector<32x128xf32>
    %203 = math.tanh %202 : vector<32x128xf32>
    %204 = arith.mulf %199, %203 : vector<32x128xf32>
    %c4_i32_74 = arith.constant 4 : i32
    %205 = arith.index_cast %c4_i32_74 : i32 to index
    %c0_75 = arith.constant 0 : index
    %c0_76 = arith.constant 0 : index
    %206 = vector.load %arg6[%205, %c0_75, %c0_76] : memref<8x128x128xf32, #tpu.memory_space<vmem>>, vector<1x128x128xf32>
    %207 = vector.shape_cast %206 : vector<1x128x128xf32> to vector<128x128xf32>
    %cst_77 = arith.constant dense<0.000000e+00> : vector<128x128xf32>
    %208 = tpu.matmul %1, %204, %cst_77 {dimension_numbers = #tpu.dot_dimension_numbers<[1], [0], [0], [1], [0, 0, 1, 1], [], []>} : vector<128x32xf32>, vector<32x128xf32>, vector<128x128xf32> -> vector<128x128xf32>
    %209 = arith.addf %207, %208 : vector<128x128xf32>
    %210 = vector.extract_strided_slice %209 {offsets = [0, 0], sizes = [32, 128], strides = [1, 1]} : vector<128x128xf32> to vector<32x128xf32>
    %211 = arith.negf %210 : vector<32x128xf32>
    %212 = math.exp %211 : vector<32x128xf32>
    %cst_78 = arith.constant 1.000000e+00 : f32
    %213 = vector.broadcast %cst_78 : f32 to vector<32x128xf32>
    %214 = arith.addf %213, %212 : vector<32x128xf32>
    %215 = arith.divf %213, %214 : vector<32x128xf32>
    %216 = vector.extract_strided_slice %209 {offsets = [32, 0], sizes = [32, 128], strides = [1, 1]} : vector<128x128xf32> to vector<32x128xf32>
    %217 = arith.negf %216 : vector<32x128xf32>
    %218 = math.exp %217 : vector<32x128xf32>
    %cst_79 = arith.constant 1.000000e+00 : f32
    %219 = vector.broadcast %cst_79 : f32 to vector<32x128xf32>
    %220 = arith.addf %219, %218 : vector<32x128xf32>
    %221 = arith.divf %219, %220 : vector<32x128xf32>
    %222 = vector.extract_strided_slice %209 {offsets = [64, 0], sizes = [32, 128], strides = [1, 1]} : vector<128x128xf32> to vector<32x128xf32>
    %223 = math.tanh %222 : vector<32x128xf32>
    %224 = vector.extract_strided_slice %209 {offsets = [96, 0], sizes = [32, 128], strides = [1, 1]} : vector<128x128xf32> to vector<32x128xf32>
    %225 = arith.negf %224 : vector<32x128xf32>
    %226 = math.exp %225 : vector<32x128xf32>
    %cst_80 = arith.constant 1.000000e+00 : f32
    %227 = vector.broadcast %cst_80 : f32 to vector<32x128xf32>
    %228 = arith.addf %227, %226 : vector<32x128xf32>
    %229 = arith.divf %227, %228 : vector<32x128xf32>
    %230 = arith.mulf %221, %202 : vector<32x128xf32>
    %231 = arith.mulf %215, %223 : vector<32x128xf32>
    %232 = arith.addf %230, %231 : vector<32x128xf32>
    %233 = math.tanh %232 : vector<32x128xf32>
    %234 = arith.mulf %229, %233 : vector<32x128xf32>
    %c5_i32_81 = arith.constant 5 : i32
    %235 = arith.index_cast %c5_i32_81 : i32 to index
    %c0_82 = arith.constant 0 : index
    %c0_83 = arith.constant 0 : index
    %236 = vector.load %arg6[%235, %c0_82, %c0_83] : memref<8x128x128xf32, #tpu.memory_space<vmem>>, vector<1x128x128xf32>
    %237 = vector.shape_cast %236 : vector<1x128x128xf32> to vector<128x128xf32>
    %cst_84 = arith.constant dense<0.000000e+00> : vector<128x128xf32>
    %238 = tpu.matmul %1, %234, %cst_84 {dimension_numbers = #tpu.dot_dimension_numbers<[1], [0], [0], [1], [0, 0, 1, 1], [], []>} : vector<128x32xf32>, vector<32x128xf32>, vector<128x128xf32> -> vector<128x128xf32>
    %239 = arith.addf %237, %238 : vector<128x128xf32>
    %240 = vector.extract_strided_slice %239 {offsets = [0, 0], sizes = [32, 128], strides = [1, 1]} : vector<128x128xf32> to vector<32x128xf32>
    %241 = arith.negf %240 : vector<32x128xf32>
    %242 = math.exp %241 : vector<32x128xf32>
    %cst_85 = arith.constant 1.000000e+00 : f32
    %243 = vector.broadcast %cst_85 : f32 to vector<32x128xf32>
    %244 = arith.addf %243, %242 : vector<32x128xf32>
    %245 = arith.divf %243, %244 : vector<32x128xf32>
    %246 = vector.extract_strided_slice %239 {offsets = [32, 0], sizes = [32, 128], strides = [1, 1]} : vector<128x128xf32> to vector<32x128xf32>
    %247 = arith.negf %246 : vector<32x128xf32>
    %248 = math.exp %247 : vector<32x128xf32>
    %cst_86 = arith.constant 1.000000e+00 : f32
    %249 = vector.broadcast %cst_86 : f32 to vector<32x128xf32>
    %250 = arith.addf %249, %248 : vector<32x128xf32>
    %251 = arith.divf %249, %250 : vector<32x128xf32>
    %252 = vector.extract_strided_slice %239 {offsets = [64, 0], sizes = [32, 128], strides = [1, 1]} : vector<128x128xf32> to vector<32x128xf32>
    %253 = math.tanh %252 : vector<32x128xf32>
    %254 = vector.extract_strided_slice %239 {offsets = [96, 0], sizes = [32, 128], strides = [1, 1]} : vector<128x128xf32> to vector<32x128xf32>
    %255 = arith.negf %254 : vector<32x128xf32>
    %256 = math.exp %255 : vector<32x128xf32>
    %cst_87 = arith.constant 1.000000e+00 : f32
    %257 = vector.broadcast %cst_87 : f32 to vector<32x128xf32>
    %258 = arith.addf %257, %256 : vector<32x128xf32>
    %259 = arith.divf %257, %258 : vector<32x128xf32>
    %260 = arith.mulf %251, %232 : vector<32x128xf32>
    %261 = arith.mulf %245, %253 : vector<32x128xf32>
    %262 = arith.addf %260, %261 : vector<32x128xf32>
    %263 = math.tanh %262 : vector<32x128xf32>
    %264 = arith.mulf %259, %263 : vector<32x128xf32>
    %c6_i32_88 = arith.constant 6 : i32
    %265 = arith.index_cast %c6_i32_88 : i32 to index
    %c0_89 = arith.constant 0 : index
    %c0_90 = arith.constant 0 : index
    %266 = vector.load %arg6[%265, %c0_89, %c0_90] : memref<8x128x128xf32, #tpu.memory_space<vmem>>, vector<1x128x128xf32>
    %267 = vector.shape_cast %266 : vector<1x128x128xf32> to vector<128x128xf32>
    %cst_91 = arith.constant dense<0.000000e+00> : vector<128x128xf32>
    %268 = tpu.matmul %1, %264, %cst_91 {dimension_numbers = #tpu.dot_dimension_numbers<[1], [0], [0], [1], [0, 0, 1, 1], [], []>} : vector<128x32xf32>, vector<32x128xf32>, vector<128x128xf32> -> vector<128x128xf32>
    %269 = arith.addf %267, %268 : vector<128x128xf32>
    %270 = vector.extract_strided_slice %269 {offsets = [0, 0], sizes = [32, 128], strides = [1, 1]} : vector<128x128xf32> to vector<32x128xf32>
    %271 = arith.negf %270 : vector<32x128xf32>
    %272 = math.exp %271 : vector<32x128xf32>
    %cst_92 = arith.constant 1.000000e+00 : f32
    %273 = vector.broadcast %cst_92 : f32 to vector<32x128xf32>
    %274 = arith.addf %273, %272 : vector<32x128xf32>
    %275 = arith.divf %273, %274 : vector<32x128xf32>
    %276 = vector.extract_strided_slice %269 {offsets = [32, 0], sizes = [32, 128], strides = [1, 1]} : vector<128x128xf32> to vector<32x128xf32>
    %277 = arith.negf %276 : vector<32x128xf32>
    %278 = math.exp %277 : vector<32x128xf32>
    %cst_93 = arith.constant 1.000000e+00 : f32
    %279 = vector.broadcast %cst_93 : f32 to vector<32x128xf32>
    %280 = arith.addf %279, %278 : vector<32x128xf32>
    %281 = arith.divf %279, %280 : vector<32x128xf32>
    %282 = vector.extract_strided_slice %269 {offsets = [64, 0], sizes = [32, 128], strides = [1, 1]} : vector<128x128xf32> to vector<32x128xf32>
    %283 = math.tanh %282 : vector<32x128xf32>
    %284 = vector.extract_strided_slice %269 {offsets = [96, 0], sizes = [32, 128], strides = [1, 1]} : vector<128x128xf32> to vector<32x128xf32>
    %285 = arith.negf %284 : vector<32x128xf32>
    %286 = math.exp %285 : vector<32x128xf32>
    %cst_94 = arith.constant 1.000000e+00 : f32
    %287 = vector.broadcast %cst_94 : f32 to vector<32x128xf32>
    %288 = arith.addf %287, %286 : vector<32x128xf32>
    %289 = arith.divf %287, %288 : vector<32x128xf32>
    %290 = arith.mulf %281, %262 : vector<32x128xf32>
    %291 = arith.mulf %275, %283 : vector<32x128xf32>
    %292 = arith.addf %290, %291 : vector<32x128xf32>
    %293 = math.tanh %292 : vector<32x128xf32>
    %294 = arith.mulf %289, %293 : vector<32x128xf32>
    %c7_i32_95 = arith.constant 7 : i32
    %295 = arith.index_cast %c7_i32_95 : i32 to index
    %c0_96 = arith.constant 0 : index
    %c0_97 = arith.constant 0 : index
    %296 = vector.load %arg6[%295, %c0_96, %c0_97] : memref<8x128x128xf32, #tpu.memory_space<vmem>>, vector<1x128x128xf32>
    %297 = vector.shape_cast %296 : vector<1x128x128xf32> to vector<128x128xf32>
    %cst_98 = arith.constant dense<0.000000e+00> : vector<128x128xf32>
    %298 = tpu.matmul %1, %294, %cst_98 {dimension_numbers = #tpu.dot_dimension_numbers<[1], [0], [0], [1], [0, 0, 1, 1], [], []>} : vector<128x32xf32>, vector<32x128xf32>, vector<128x128xf32> -> vector<128x128xf32>
    %299 = arith.addf %297, %298 : vector<128x128xf32>
    %300 = vector.extract_strided_slice %299 {offsets = [0, 0], sizes = [32, 128], strides = [1, 1]} : vector<128x128xf32> to vector<32x128xf32>
    %301 = arith.negf %300 : vector<32x128xf32>
    %302 = math.exp %301 : vector<32x128xf32>
    %cst_99 = arith.constant 1.000000e+00 : f32
    %303 = vector.broadcast %cst_99 : f32 to vector<32x128xf32>
    %304 = arith.addf %303, %302 : vector<32x128xf32>
    %305 = arith.divf %303, %304 : vector<32x128xf32>
    %306 = vector.extract_strided_slice %299 {offsets = [32, 0], sizes = [32, 128], strides = [1, 1]} : vector<128x128xf32> to vector<32x128xf32>
    %307 = arith.negf %306 : vector<32x128xf32>
    %308 = math.exp %307 : vector<32x128xf32>
    %cst_100 = arith.constant 1.000000e+00 : f32
    %309 = vector.broadcast %cst_100 : f32 to vector<32x128xf32>
    %310 = arith.addf %309, %308 : vector<32x128xf32>
    %311 = arith.divf %309, %310 : vector<32x128xf32>
    %312 = vector.extract_strided_slice %299 {offsets = [64, 0], sizes = [32, 128], strides = [1, 1]} : vector<128x128xf32> to vector<32x128xf32>
    %313 = math.tanh %312 : vector<32x128xf32>
    %314 = vector.extract_strided_slice %299 {offsets = [96, 0], sizes = [32, 128], strides = [1, 1]} : vector<128x128xf32> to vector<32x128xf32>
    %315 = arith.negf %314 : vector<32x128xf32>
    %316 = math.exp %315 : vector<32x128xf32>
    %cst_101 = arith.constant 1.000000e+00 : f32
    %317 = vector.broadcast %cst_101 : f32 to vector<32x128xf32>
    %318 = arith.addf %317, %316 : vector<32x128xf32>
    %319 = arith.divf %317, %318 : vector<32x128xf32>
    %320 = arith.mulf %311, %292 : vector<32x128xf32>
    %321 = arith.mulf %305, %313 : vector<32x128xf32>
    %322 = arith.addf %320, %321 : vector<32x128xf32>
    %323 = math.tanh %322 : vector<32x128xf32>
    %324 = arith.mulf %319, %323 : vector<32x128xf32>
    %c8_i32_102 = arith.constant 8 : i32
    %c0_103 = arith.constant 0 : index
    %c0_104 = arith.constant 0 : index
    %325 = vector.load %arg5[%c0_103, %c0_104] : memref<32x128xf32, #tpu.memory_space<vmem>>, vector<32x128xf32>
    tpu.vector_store %arg5[%c0_103, %c0_104], %324 {strides = array<i32>} : memref<32x128xf32, #tpu.memory_space<vmem>>, vector<32x128xf32>,
    return
  }
  func.func @transform_0(%arg0: i32) -> (i32, i32, i32) {
    %c0_i32 = arith.constant 0 : i32
    %c0_i32_0 = arith.constant 0 : i32
    %c0_i32_1 = arith.constant 0 : i32
    return %c0_i32, %c0_i32_0, %arg0 : i32, i32, i32
  }
  func.func @transform_1(%arg0: i32) -> (i32, i32) {
    %c0_i32 = arith.constant 0 : i32
    %c0_i32_0 = arith.constant 0 : i32
    %c0_i32_1 = arith.constant 0 : i32
    return %c0_i32, %c0_i32_0 : i32, i32
  }
  func.func @transform_2(%arg0: i32) -> (i32, i32) {
    %c0_i32 = arith.constant 0 : i32
    %c0_i32_0 = arith.constant 0 : i32
    %c0_i32_1 = arith.constant 0 : i32
    return %c0_i32, %c0_i32_0 : i32, i32
  }
  func.func @transform_3(%arg0: i32) -> (i32, i32) {
    %c0_i32 = arith.constant 0 : i32
    %c0_i32_0 = arith.constant 0 : i32
    %c0_i32_1 = arith.constant 0 : i32
    return %c0_i32, %c0_i32_0 : i32, i32
  }
  func.func @transform_4(%arg0: i32) -> (i32, i32) {
    %c0_i32 = arith.constant 0 : i32
    %c0_i32_0 = arith.constant 0 : i32
    return %c0_i32, %arg0 : i32, i32
  }
}

</mosaic_0001>

<bundles_post_ra>
// kernel: tpu_custom_call.1
= control target key start
LH: loop header
LB: loop body
LE: loop exit
PB: predicated region body
PF: predicated region fallthrough
CT: control target
= control target key end

     0   :  { %vm199_vm0 = vcmask 1041408   ;;  %vm150_vm1 = vcmask 211968   ;;  %s7269_s0 = inlined_call_operand.vmem [shape: f32[8,26,128], index: 0, kind: input, shape index: {}]   ;;  %s7270_s1 = inlined_call_operand.vmem [shape: f32[128,26], index: 1, kind: input, shape index: {}]   ;;  %s7271_s2 = inlined_call_operand.vmem [shape: f32[128,32], index: 2, kind: input, shape index: {}]   ;;  %s7272_s3 = inlined_call_operand.vmem [shape: f32[128,1], index: 3, kind: input, shape index: {}]   ;;  %s7273_s4 = inlined_call_operand.hbm [shape: f32[32,128], index: 4, kind: output, shape index: {}]  }
   0x1   :  { %v69_v0 = vld [vmem:[%s7269_s0 + $0x18] sm:$0x3]  ;;  %v68_v1 = vld [vmem:[%s7269_s0 + $0x10] sm:$0xff]  ;;  %v5634_v3 = vld [vmem:[%s7270_s1] sm:$0xff] }
   0x2   :  { %4512 = vmatprep.subr.msk.mxu0 %vm199_vm0, %v69_v0  ;;  %v3827_v2 = vld [vmem:[%s7269_s0 + $0x38] sm:$0x3]  ;;  %v67_v4 = vld [vmem:[%s7269_s0 + $0x8] sm:$0xff]  ;;  %v3826_v5 = vld [vmem:[%s7269_s0 + $0x30] sm:$0xff]  ;;  %4520 = vmatprep.mubr.msk.f32.mxu0 %vm150_vm1, %v5634_v3 }
   0x3   :  { %4513 = vmatpush3.msk.msra.mxu0 %vm199_vm0, %v69_v0  ;;  %4544 = vmatprep.subr.msk.mxu1 %vm199_vm0, %v3827_v2  ;;  %v66_v6 = vld [vmem:[%s7269_s0] sm:$0xff]  ;;  %v3825_v7 = vld [vmem:[%s7269_s0 + $0x28] sm:$0xff]  ;;  %v5664_v10 = vld [vmem:[%s7270_s1 + $0x10] sm:$0xff] }
   0x4   :  { %4514 = vmatprep.subr.mxu0 %v68_v1  ;;  %4545 = vmatpush3.msk.msra.mxu1 %vm199_vm0, %v3827_v2  ;;  %v5656_v8 = vld [vmem:[%s7270_s1 + $0x8] sm:$0xff]  ;;  %v3824_v9 = vld [vmem:[%s7269_s0 + $0x20] sm:$0xff]  ;;  %v3848_v11 = vld [vmem:[%s7269_s0 + $0x58] sm:$0x3] }
   0x5   :  { %4515 = vmatpush3.msra.mxu0 %v68_v1  ;;  %4546 = vmatprep.subr.mxu1 %v3826_v5  ;;  %v5676_v12 = vld [vmem:[%s7270_s1 + $0x18] sm:$0xff]  ;;  %v5683_v13 = vld [vmem:[%s7270_s1 + $0x20] sm:$0xff]  ;;  %v3847_v14 = vld [vmem:[%s7269_s0 + $0x50] sm:$0xff] }
   0x6   :  { %4516 = vmatprep.subr.mxu0 %v67_v4  ;;  %4547 = vmatpush3.msra.mxu1 %v3826_v5  ;;  %v3869_v15 = vld [vmem:[%s7269_s0 + $0x78] sm:$0x3]  ;;  %v3846_v16 = vld [vmem:[%s7269_s0 + $0x48] sm:$0xff]  ;;  %v5712_v18 = vld [vmem:[%s7270_s1 + $0x30] sm:$0xff] }
   0x7   :  { %4517 = vmatpush3.msra.mxu0 %v67_v4  ;;  %4548 = vmatprep.subr.mxu1 %v3825_v7  ;;  %v5707_v17 = vld [vmem:[%s7270_s1 + $0x28] sm:$0xff]  ;;  %v3845_v19 = vld [vmem:[%s7269_s0 + $0x40] sm:$0xff]  ;;  %v5729_v20 = vld [vmem:[%s7270_s1 + $0x38] sm:$0xff] }
   0x8   :  { %4518 = vmatprep.subr.mxu0 %v66_v6  ;;  %4549 = vmatpush3.msra.mxu1 %v3825_v7  ;;  %v5734_v21 = vld [vmem:[%s7270_s1 + $0x40] sm:$0xff]  ;;  %v3868_v22 = vld [vmem:[%s7269_s0 + $0x70] sm:$0xff]  ;;  %v3890_v23 = vld [vmem:[%s7269_s0 + $0x98] sm:$0x3] }
   0x9   :  { %4519 = vmatpush3.msra.mxu0 %v66_v6  ;;  %4550 = vmatprep.subr.mxu1 %v3824_v9  ;;  %v3867_v24 = vld [vmem:[%s7269_s0 + $0x68] sm:$0xff]  ;;  %v5762_v26 = vld [vmem:[%s7270_s1 + $0x50] sm:$0xff]  ;;  %v3866_v27 = vld [vmem:[%s7269_s0 + $0x60] sm:$0xff] }
   0xa   :  { %4521 = vmatmul.mubr.msk.f32.vlgmr.msra.gmra.mxu0 %vm150_vm1, %v5656_v8  ;;  %4551 = vmatpush3.msra.mxu1 %v3824_v9  ;;  %v5757_v25 = vld [vmem:[%s7270_s1 + $0x48] sm:$0xff] }
   0xb   :  { %4523 = vmatprep.mubr.msk.f32.mxu0 %vm150_vm1, %v5664_v10  ;;  %4552 = vmatprep.mubr.msk.f32.mxu1 %vm150_vm1, %v5634_v3 }
   0xc   :  { %4576 = vmatprep.subr.msk.mxu0 %vm199_vm0, %v3848_v11  ;;  %4553 = vmatmul.mubr.msk.f32.vlgmr.msra.gmra.mxu1 %vm150_vm1, %v5656_v8 }
   0xd   :  { %4577 = vmatpush3.msk.msra.mxu0 %vm199_vm0, %v3848_v11  ;;  %4555 = vmatprep.mubr.msk.f32.mxu1 %vm150_vm1, %v5664_v10 }
   0xe   :  { %4524 = vmatmul.mubr.msk.f32.gmra.mxu0 %vm150_vm1, %v5676_v12  ;;  %4578 = vmatprep.subr.mxu0 %v3847_v14 }
   0xf   :  { %4526 = vmatprep.mubr.msk.f32.mxu0 %vm150_vm1, %v5683_v13  ;;  %4579 = vmatpush3.msra.mxu0 %v3847_v14 }
  0x10   :  { %4608 = vmatprep.subr.msk.mxu1 %vm199_vm0, %v3869_v15  ;;  %4556 = vmatmul.mubr.msk.f32.gmra.mxu1 %vm150_vm1, %v5676_v12 }
  0x11   :  { %4580 = vmatprep.subr.mxu0 %v3846_v16  ;;  %4558 = vmatprep.mubr.msk.f32.mxu1 %vm150_vm1, %v5683_v13 }
  0x12   :  { %4527 = vmatmul.mubr.msk.f32.gmra.mxu0 %vm150_vm1, %v5707_v17  ;;  %4609 = vmatpush3.msk.msra.mxu1 %vm199_vm0, %v3869_v15 }
  0x13   :  { %4529 = vmatprep.mubr.msk.f32.mxu0 %vm150_vm1, %v5712_v18  ;;  %4581 = vmatpush3.msra.mxu0 %v3846_v16 }
  0x14   :  { %4582 = vmatprep.subr.mxu0 %v3845_v19  ;;  %4559 = vmatmul.mubr.msk.f32.gmra.mxu1 %vm150_vm1, %v5707_v17 }
  0x15   :  { %4583 = vmatpush3.msra.mxu0 %v3845_v19  ;;  %4561 = vmatprep.mubr.msk.f32.mxu1 %vm150_vm1, %v5712_v18 }
  0x16   :  { %4530 = vmatmul.mubr.msk.f32.gmra.mxu0 %vm150_vm1, %v5729_v20  ;;  %4610 = vmatprep.subr.mxu1 %v3868_v22 }
  0x17   :  { %4532 = vmatprep.mubr.msk.f32.mxu0 %vm150_vm1, %v5734_v21  ;;  %4611 = vmatpush3.msra.mxu1 %v3868_v22 }
  0x18   :  { %4640 = vmatprep.subr.msk.mxu0 %vm199_vm0, %v3890_v23  ;;  %4562 = vmatmul.mubr.msk.f32.gmra.mxu1 %vm150_vm1, %v5729_v20 }
  0x19   :  { %4612 = vmatprep.subr.mxu1 %v3867_v24 }
  0x1a   :  { %9 = vsyncpa [#allocation4], 0  ;;  %4533 = vmatmul.mubr.msk.f32.gmra.mxu0 %vm150_vm1, %v5757_v25  ;;  %4564 = vmatprep.mubr.msk.f32.mxu1 %vm150_vm1, %v5734_v21  ;;  %v53_v28 = vld [vmem:[%s7272_s3 + $0x18] sm:$0xff]  ;;  %v5787_v30 = vld [vmem:[%s7270_s1 + $0x60] sm:$0xff]  ;;  %v5591_v31 = vmov 0   ;;  %v5592_v63 = vmov 0.0  }
  0x1b   :  { %4535 = vmatprep.mubr.msk.f32.mxu0 %vm150_vm1, %v5762_v26  ;;  %v5782_v29 = vld [vmem:[%s7270_s1 + $0x58] sm:$0xff]  ;;  %4613 = vmatpush3.msra.mxu1 %v3867_v24  ;;  %v5806_v34 = vld [vmem:[%s7270_s1 + $0x68] sm:$0xff]  ;;  %v5811_v35 = vld [vmem:[%s7270_s1 + $0x70] sm:$0xff]  ;;  %vm1570_vm2 = vcmask 261120  }
  0x1c   :  { %4614 = vmatprep.subr.mxu1 %v3866_v27  ;;  %5023 = vset.pattern.permute.xlu0 %v5591_v31  ;;  %v3911_v32 = vld [vmem:[%s7269_s0 + $0xb8] sm:$0x3]  ;;  %v52_v36 = vld [vmem:[%s7272_s3 + $0x10] sm:$0xff]  ;;  %v51_v37 = vld [vmem:[%s7272_s3 + $0x8] sm:$0xff] }
  0x1d   :  { %4565 = vmatmul.mubr.msk.f32.gmra.mxu1 %vm150_vm1, %v5757_v25  ;;  %87 = vperm.xlu0 %5023, %v53_v28   ;;  %v57_v33 = vld [vmem:[%s7272_s3 + $0x38] sm:$0xff]  ;;  %v56_v39 = vld [vmem:[%s7272_s3 + $0x30] sm:$0xff]  ;;  %v50_v40 = vld [vmem:[%s7272_s3] sm:$0xff] }
  0x1e   :  { %4536 = vmatmul.mubr.msk.f32.gmra.mxu0 %vm150_vm1, %v5782_v29  ;;  %4567 = vmatprep.mubr.msk.f32.mxu1 %vm150_vm1, %v5762_v26  ;;  %v5831_v38 = vld [vmem:[%s7270_s1 + $0x78] sm:$0xff]  ;;  %v3889_v41 = vld [vmem:[%s7269_s0 + $0x90] sm:$0xff]  ;;  %v55_v42 = vld [vmem:[%s7272_s3 + $0x28] sm:$0xff] }
  0x1f   :  { %4538 = vmatprep.mubr.msk.f32.mxu0 %vm150_vm1, %v5787_v30  ;;  %4615 = vmatpush3.msra.mxu1 %v3866_v27  ;;  %v3888_v43 = vld [vmem:[%s7269_s0 + $0x88] sm:$0xff]  ;;  %v3887_v44 = vld [vmem:[%s7269_s0 + $0x80] sm:$0xff]  ;;  %v3910_v45 = vld [vmem:[%s7269_s0 + $0xb0] sm:$0xff] }
  0x20   :  { %4672 = vmatprep.subr.msk.mxu1 %vm199_vm0, %v3911_v32  ;;  %5024 = vset.pattern.permute.xlu1 %v5591_v31  ;;  %v61_v46 = vld [vmem:[%s7272_s3 + $0x58] sm:$0xff]  ;;  %v54_v47 = vld [vmem:[%s7272_s3 + $0x20] sm:$0xff]  ;;  %v3909_v48 = vld [vmem:[%s7269_s0 + $0xa8] sm:$0xff] }
  0x21   :  { %4568 = vmatmul.mubr.msk.f32.gmra.mxu1 %vm150_vm1, %v5782_v29  ;;  %107 = vperm.xlu0 %5023, %v57_v33   ;;  %v60_v49 = vld [vmem:[%s7272_s3 + $0x50] sm:$0xff]  ;;  %v65_v50 = vld [vmem:[%s7272_s3 + $0x78] sm:$0xff]  ;;  %v3908_v51 = vld [vmem:[%s7269_s0 + $0xa0] sm:$0xff] }
  0x22   :  { %4539 = vmatmul.mubr.msk.f32.gmra.mxu0 %vm150_vm1, %v5806_v34  ;;  %4570 = vmatprep.mubr.msk.f32.mxu1 %vm150_vm1, %v5787_v30  ;;  %v59_v52 = vld [vmem:[%s7272_s3 + $0x48] sm:$0xff]  ;;  %v64_v53 = vld [vmem:[%s7272_s3 + $0x70] sm:$0xff]  ;;  %v58_v54 = vld [vmem:[%s7272_s3 + $0x40] sm:$0xff] }
  0x23   :  { %4541 = vmatprep.mubr.msk.f32.mxu0 %vm150_vm1, %v5811_v35  ;;  %82 = vperm.xlu1 %5024, %v52_v36   ;;  %v3932_v55 = vld [vmem:[%s7269_s0 + $0xd8] sm:$0x3]  ;;  %v63_v56 = vld [vmem:[%s7272_s3 + $0x68] sm:$0xff]  ;;  %v62_v58 = vld [vmem:[%s7272_s3 + $0x60] sm:$0xff] }
  0x24   :  { %v3953_v57 = vld [vmem:[%s7269_s0 + $0xf8] sm:$0x3]  ;;  %v3931_v59 = vld [vmem:[%s7269_s0 + $0xd0] sm:$0xff]  ;;  %v3930_v60 = vld [vmem:[%s7269_s0 + $0xc8] sm:$0xff] }
  0x25   :  { %4571 = vmatmul.mubr.msk.f32.gmra.mxu1 %vm150_vm1, %v5806_v34  ;;  %77 = vperm.xlu0 %5023, %v51_v37   ;;  %v3929_v61 = vld [vmem:[%s7269_s0 + $0xc0] sm:$0xff]  ;;  %v3952_v62 = vld [vmem:[%s7269_s0 + $0xf0] sm:$0xff]  ;;  %v3951_v0 = vld [vmem:[%s7269_s0 + $0xe8] sm:$0xff] }
  0x26   :  { %4542 = vmatmul.mubr.msk.f32.gmra.mxu0 %vm150_vm1, %v5831_v38  ;;  %4573 = vmatprep.mubr.msk.f32.mxu1 %vm150_vm1, %v5811_v35  ;;  %v3950_v1 = vld [vmem:[%s7269_s0 + $0xe0] sm:$0xff]  ;;  %v6130_v4 = vld [vmem:[%s7271_s2 + $0x10] sm:$0xff]  ;;  %v6143_v5 = vld [vmem:[%s7271_s2 + $0x18] sm:$0xff] }
  0x27   :  { %4584 = vmatprep.mubr.msk.f32.mxu0 %vm150_vm1, %v5634_v3  ;;  %102 = vperm.xlu1 %5024, %v56_v39   ;;  %v6112_v2 = vld [vmem:[%s7271_s2] sm:$0xff]  ;;  %v6157_v7 = vld [vmem:[%s7271_s2 + $0x28] sm:$0xff]  ;;  %v6171_v9 = vld [vmem:[%s7271_s2 + $0x38] sm:$0xff] }
  0x28   :  { %v6148_v6 = vld [vmem:[%s7271_s2 + $0x20] sm:$0xff]  ;;  %v6185_v11 = vld [vmem:[%s7271_s2 + $0x48] sm:$0xff]  ;;  %v6218_v16 = vld [vmem:[%s7271_s2 + $0x70] sm:$0xff] }
  0x29   :  { %4574 = vmatmul.mubr.msk.f32.gmra.mxu1 %vm150_vm1, %v5831_v38  ;;  %72 = vperm.xlu0 %5023, %v50_v40   ;;  %v6204_v14 = vld [vmem:[%s7271_s2 + $0x60] sm:$0xff]  ;;  %v6213_v15 = vld [vmem:[%s7271_s2 + $0x68] sm:$0xff] }
  0x2a   :  { %4585 = vmatmul.mubr.msk.f32.vlgmr.msra.gmra.mxu0 %vm150_vm1, %v5656_v8  ;;  %4616 = vmatprep.mubr.msk.f32.mxu1 %vm150_vm1, %v5634_v3 }
  0x2b   :  { %4587 = vmatprep.mubr.msk.f32.mxu0 %vm150_vm1, %v5664_v10  ;;  %4641 = vmatpush3.msk.msra.mxu0 %vm199_vm0, %v3890_v23 }
  0x2c   :  { %4642 = vmatprep.subr.mxu0 %v3889_v41  ;;  %97 = vperm.xlu1 %5024, %v55_v42  }
  0x2d   :  { %4617 = vmatmul.mubr.msk.f32.vlgmr.msra.gmra.mxu1 %vm150_vm1, %v5656_v8  ;;  %4643 = vmatpush3.msra.mxu0 %v3889_v41 }
  0x2e   :  { %4588 = vmatmul.mubr.msk.f32.gmra.mxu0 %vm150_vm1, %v5676_v12  ;;  %4619 = vmatprep.mubr.msk.f32.mxu1 %vm150_vm1, %v5664_v10 }
  0x2f   :  { %4590 = vmatprep.mubr.msk.f32.mxu0 %vm150_vm1, %v5683_v13  ;;  %4644 = vmatprep.subr.mxu0 %v3888_v43 }
  0x30   :  { %4645 = vmatpush3.msra.mxu0 %v3888_v43  ;;  %4673 = vmatpush3.msk.msra.mxu1 %vm199_vm0, %v3911_v32 }
  0x31   :  { %4620 = vmatmul.mubr.msk.f32.gmra.mxu1 %vm150_vm1, %v5676_v12  ;;  %4646 = vmatprep.subr.mxu0 %v3887_v44 }
  0x32   :  { %4591 = vmatmul.mubr.msk.f32.gmra.mxu0 %vm150_vm1, %v5707_v17  ;;  %4622 = vmatprep.mubr.msk.f32.mxu1 %vm150_vm1, %v5683_v13 }
  0x33   :  { %4593 = vmatprep.mubr.msk.f32.mxu0 %vm150_vm1, %v5712_v18  ;;  %4647 = vmatpush3.msra.mxu0 %v3887_v44 }
  0x34   :  { %4674 = vmatprep.subr.mxu1 %v3910_v45  ;;  %127 = vperm.xlu0 %5023, %v61_v46  }
  0x35   :  { %4623 = vmatmul.mubr.msk.f32.gmra.mxu1 %vm150_vm1, %v5707_v17  ;;  %92 = vperm.xlu1 %5024, %v54_v47  }
  0x36   :  { %4594 = vmatmul.mubr.msk.f32.gmra.mxu0 %vm150_vm1, %v5729_v20  ;;  %4625 = vmatprep.mubr.msk.f32.mxu1 %vm150_vm1, %v5712_v18 }
  0x37   :  { %4596 = vmatprep.mubr.msk.f32.mxu0 %vm150_vm1, %v5734_v21  ;;  %4675 = vmatpush3.msra.mxu1 %v3910_v45 }
  0x38   :  { %4676 = vmatprep.subr.mxu1 %v3909_v48  ;;  %122 = vperm.xlu0 %5023, %v60_v49  }
  0x39   :  { %4626 = vmatmul.mubr.msk.f32.gmra.mxu1 %vm150_vm1, %v5729_v20  ;;  %147 = vperm.xlu1 %5024, %v65_v50  }
  0x3a   :  { %4597 = vmatmul.mubr.msk.f32.gmra.mxu0 %vm150_vm1, %v5757_v25  ;;  %4628 = vmatprep.mubr.msk.f32.mxu1 %vm150_vm1, %v5734_v21 }
  0x3b   :  { %4599 = vmatprep.mubr.msk.f32.mxu0 %vm150_vm1, %v5762_v26  ;;  %4677 = vmatpush3.msra.mxu1 %v3909_v48 }
  0x3c   :  { %4678 = vmatprep.subr.mxu1 %v3908_v51  ;;  %117 = vperm.xlu0 %5023, %v59_v52  }
  0x3d   :  { %4629 = vmatmul.mubr.msk.f32.gmra.mxu1 %vm150_vm1, %v5757_v25  ;;  %142 = vperm.xlu1 %5024, %v64_v53  }
  0x3e   :  { %4600 = vmatmul.mubr.msk.f32.gmra.mxu0 %vm150_vm1, %v5782_v29  ;;  %4631 = vmatprep.mubr.msk.f32.mxu1 %vm150_vm1, %v5762_v26 }
  0x3f   :  { %4602 = vmatprep.mubr.msk.f32.mxu0 %vm150_vm1, %v5787_v30  ;;  %4679 = vmatpush3.msra.mxu1 %v3908_v51 }
  0x40   :  { %112 = vperm.xlu0 %5023, %v58_v54   ;;  %4704 = vmatprep.subr.msk.mxu0 %vm199_vm0, %v3932_v55 }
  0x41   :  { %4632 = vmatmul.mubr.msk.f32.gmra.mxu1 %vm150_vm1, %v5782_v29  ;;  %137 = vperm.xlu1 %5024, %v63_v56  }
  0x42   :  { %4603 = vmatmul.mubr.msk.f32.gmra.mxu0 %vm150_vm1, %v5806_v34  ;;  %4634 = vmatprep.mubr.msk.f32.mxu1 %vm150_vm1, %v5787_v30 }
  0x43   :  { %4605 = vmatprep.mubr.msk.f32.mxu0 %vm150_vm1, %v5811_v35  ;;  %4736 = vmatprep.subr.msk.mxu1 %vm199_vm0, %v3953_v57 }
  0x45   :  { %4635 = vmatmul.mubr.msk.f32.gmra.mxu1 %vm150_vm1, %v5806_v34  ;;  %132 = vperm.xlu1 %5024, %v62_v58  }
  0x46   :  { %4606 = vmatmul.mubr.msk.f32.gmra.mxu0 %vm150_vm1, %v5831_v38  ;;  %4637 = vmatprep.mubr.msk.f32.mxu1 %vm150_vm1, %v5811_v35 }
  0x47   :  { %4648 = vmatprep.mubr.msk.f32.mxu0 %vm150_vm1, %v5634_v3 }
  0x49   :  { %4638 = vmatmul.mubr.msk.f32.gmra.mxu1 %vm150_vm1, %v5831_v38 }
  0x4a   :  { %4649 = vmatmul.mubr.msk.f32.vlgmr.msra.gmra.mxu0 %vm150_vm1, %v5656_v8  ;;  %4680 = vmatprep.mubr.msk.f32.mxu1 %vm150_vm1, %v5634_v3 }
  0x4b   :  { %4651 = vmatprep.mubr.msk.f32.mxu0 %vm150_vm1, %v5664_v10  ;;  %4705 = vmatpush3.msk.msra.mxu0 %vm199_vm0, %v3932_v55 }
  0x4c   :  { %4706 = vmatprep.subr.mxu0 %v3931_v59 }
  0x4d   :  { %4681 = vmatmul.mubr.msk.f32.vlgmr.msra.gmra.mxu1 %vm150_vm1, %v5656_v8  ;;  %4707 = vmatpush3.msra.mxu0 %v3931_v59 }
  0x4e   :  { %4652 = vmatmul.mubr.msk.f32.gmra.mxu0 %vm150_vm1, %v5676_v12  ;;  %4683 = vmatprep.mubr.msk.f32.mxu1 %vm150_vm1, %v5664_v10 }
  0x4f   :  { %4654 = vmatprep.mubr.msk.f32.mxu0 %vm150_vm1, %v5683_v13  ;;  %4708 = vmatprep.subr.mxu0 %v3930_v60 }
  0x50   :  { %4709 = vmatpush3.msra.mxu0 %v3930_v60  ;;  %4737 = vmatpush3.msk.msra.mxu1 %vm199_vm0, %v3953_v57 }
  0x51   :  { %4684 = vmatmul.mubr.msk.f32.gmra.mxu1 %vm150_vm1, %v5676_v12  ;;  %4710 = vmatprep.subr.mxu0 %v3929_v61 }
  0x52   :  { %4655 = vmatmul.mubr.msk.f32.gmra.mxu0 %vm150_vm1, %v5707_v17  ;;  %4686 = vmatprep.mubr.msk.f32.mxu1 %vm150_vm1, %v5683_v13 }
  0x53   :  { %4657 = vmatprep.mubr.msk.f32.mxu0 %vm150_vm1, %v5712_v18  ;;  %4711 = vmatpush3.msra.mxu0 %v3929_v61 }
  0x54   :  { %4738 = vmatprep.subr.mxu1 %v3952_v62  ;;  %4768 = vmatprep.subr.mxu0 %v5592_v63 }
  0x55   :  { %4687 = vmatmul.mubr.msk.f32.gmra.mxu1 %vm150_vm1, %v5707_v17 }
  0x56   :  { %4658 = vmatmul.mubr.msk.f32.gmra.mxu0 %vm150_vm1, %v5729_v20  ;;  %4689 = vmatprep.mubr.msk.f32.mxu1 %vm150_vm1, %v5712_v18 }
  0x57   :  { %4660 = vmatprep.mubr.msk.f32.mxu0 %vm150_vm1, %v5734_v21  ;;  %4739 = vmatpush3.msra.mxu1 %v3952_v62 }
  0x58   :  { %4740 = vmatprep.subr.mxu1 %v3951_v0 }
  0x59   :  { %4690 = vmatmul.mubr.msk.f32.gmra.mxu1 %vm150_vm1, %v5729_v20 }
  0x5a   :  { %4661 = vmatmul.mubr.msk.f32.gmra.mxu0 %vm150_vm1, %v5757_v25  ;;  %4692 = vmatprep.mubr.msk.f32.mxu1 %vm150_vm1, %v5734_v21 }
  0x5b   :  { %4663 = vmatprep.mubr.msk.f32.mxu0 %vm150_vm1, %v5762_v26  ;;  %4741 = vmatpush3.msra.mxu1 %v3951_v0 }
  0x5c   :  { %4742 = vmatprep.subr.mxu1 %v3950_v1 }
  0x5d   :  { %4693 = vmatmul.mubr.msk.f32.gmra.mxu1 %vm150_vm1, %v5757_v25 }
  0x5e   :  { %4664 = vmatmul.mubr.msk.f32.gmra.mxu0 %vm150_vm1, %v5782_v29  ;;  %4695 = vmatprep.mubr.msk.f32.mxu1 %vm150_vm1, %v5762_v26 }
  0x5f   :  { %4666 = vmatprep.mubr.msk.f32.mxu0 %vm150_vm1, %v5787_v30  ;;  %4743 = vmatpush3.msra.mxu1 %v3950_v1 }
  0x61   :  { %4696 = vmatmul.mubr.msk.f32.gmra.mxu1 %vm150_vm1, %v5782_v29 }
  0x62   :  { %4667 = vmatmul.mubr.msk.f32.gmra.mxu0 %vm150_vm1, %v5806_v34  ;;  %4698 = vmatprep.mubr.msk.f32.mxu1 %vm150_vm1, %v5787_v30 }
  0x63   :  { %4669 = vmatprep.mubr.msk.f32.mxu0 %vm150_vm1, %v5811_v35 }
  0x65   :  { %4699 = vmatmul.mubr.msk.f32.gmra.mxu1 %vm150_vm1, %v5806_v34 }
  0x66   :  { %4670 = vmatmul.mubr.msk.f32.gmra.mxu0 %vm150_vm1, %v5831_v38  ;;  %4701 = vmatprep.mubr.msk.f32.mxu1 %vm150_vm1, %v5811_v35 }
  0x67   :  { %4712 = vmatprep.mubr.msk.f32.mxu0 %vm150_vm1, %v5634_v3 }
  0x69   :  { %4702 = vmatmul.mubr.msk.f32.gmra.mxu1 %vm150_vm1, %v5831_v38 }
  0x6a   :  { %4713 = vmatmul.mubr.msk.f32.vlgmr.msra.gmra.mxu0 %vm150_vm1, %v5656_v8  ;;  %4744 = vmatprep.mubr.msk.f32.mxu1 %vm150_vm1, %v5634_v3  ;;  %v6125_v3 = vld [vmem:[%s7271_s2 + $0x8] sm:$0xff] }
  0x6b   :  { %4715 = vmatprep.mubr.msk.f32.mxu0 %vm150_vm1, %v5664_v10  ;;  %4769 = vmatpush3.msra.mxu0 %v5592_v63 }
  0x6d   :  { %4745 = vmatmul.mubr.msk.f32.vlgmr.msra.gmra.mxu1 %vm150_vm1, %v5656_v8  ;;  %v6162_v8 = vld [vmem:[%s7271_s2 + $0x30] sm:$0xff] }
  0x6e   :  { %4716 = vmatmul.mubr.msk.f32.gmra.mxu0 %vm150_vm1, %v5676_v12  ;;  %4747 = vmatprep.mubr.msk.f32.mxu1 %vm150_vm1, %v5664_v10  ;;  %v6176_v10 = vld [vmem:[%s7271_s2 + $0x40] sm:$0xff] }
  0x6f   :  { %4718 = vmatprep.mubr.msk.f32.mxu0 %vm150_vm1, %v5683_v13 }
  0x71   :  { %4748 = vmatmul.mubr.msk.f32.gmra.mxu1 %vm150_vm1, %v5676_v12  ;;  %v6190_v12 = vld [vmem:[%s7271_s2 + $0x50] sm:$0xff] }
  0x72   :  { %4719 = vmatmul.mubr.msk.f32.gmra.mxu0 %vm150_vm1, %v5707_v17  ;;  %4750 = vmatprep.mubr.msk.f32.mxu1 %vm150_vm1, %v5683_v13  ;;  %v6199_v13 = vld [vmem:[%s7271_s2 + $0x58] sm:$0xff] }
  0x73   :  { %4721 = vmatprep.mubr.msk.f32.mxu0 %vm150_vm1, %v5712_v18 }
  0x75   :  { %4751 = vmatmul.mubr.msk.f32.gmra.mxu1 %vm150_vm1, %v5707_v17  ;;  %v6227_v17 = vld [vmem:[%s7271_s2 + $0x78] sm:$0xff] }
  0x76   :  { %4722 = vmatmul.mubr.msk.f32.gmra.mxu0 %vm150_vm1, %v5729_v20  ;;  %4753 = vmatprep.mubr.msk.f32.mxu1 %vm150_vm1, %v5712_v18 }
  0x77   :  { %4724 = vmatprep.mubr.msk.f32.mxu0 %vm150_vm1, %v5734_v21 }
  0x79   :  { %4754 = vmatmul.mubr.msk.f32.gmra.mxu1 %vm150_vm1, %v5729_v20 }
  0x7a   :  { %4725 = vmatmul.mubr.msk.f32.gmra.mxu0 %vm150_vm1, %v5757_v25  ;;  %4756 = vmatprep.mubr.msk.f32.mxu1 %vm150_vm1, %v5734_v21 }
  0x7b   :  { %4727 = vmatprep.mubr.msk.f32.mxu0 %vm150_vm1, %v5762_v26 }
  0x7d   :  { %4757 = vmatmul.mubr.msk.f32.gmra.mxu1 %vm150_vm1, %v5757_v25 }
  0x7e   :  { %4728 = vmatmul.mubr.msk.f32.gmra.mxu0 %vm150_vm1, %v5782_v29  ;;  %4759 = vmatprep.mubr.msk.f32.mxu1 %vm150_vm1, %v5762_v26 }
  0x7f   :  { %4730 = vmatprep.mubr.msk.f32.mxu0 %vm150_vm1, %v5787_v30 }
  0x81   :  { %4760 = vmatmul.mubr.msk.f32.gmra.mxu1 %vm150_vm1, %v5782_v29 }
  0x82   :  { %4731 = vmatmul.mubr.msk.f32.gmra.mxu0 %vm150_vm1, %v5806_v34  ;;  %4762 = vmatprep.mubr.msk.f32.mxu1 %vm150_vm1, %v5787_v30 }
  0x83   :  { %4733 = vmatprep.mubr.msk.f32.mxu0 %vm150_vm1, %v5811_v35 }
  0x85   :  { %4763 = vmatmul.mubr.msk.f32.gmra.mxu1 %vm150_vm1, %v5806_v34 }
  0x86   :  { %4734 = vmatmul.mubr.msk.f32.gmra.mxu0 %vm150_vm1, %v5831_v38  ;;  %4765 = vmatprep.mubr.msk.f32.mxu1 %vm150_vm1, %v5811_v35 }
  0x87   :  { %4770 = vmatprep.mubr.msk.f32.mxu0 %vm1570_vm2, %v6112_v2 }
  0x89   :  { %4766 = vmatmul.mubr.msk.f32.gmra.mxu1 %vm150_vm1, %v5831_v38 }
  0x8a   :  { %4771 = vmatmul.mubr.msk.f32.vlgmr.msra.gmra.mxu0 %vm1570_vm2, %v6125_v3  ;;  %4802 = vmatprep.mubr.msk.f32.mxu1 %vm1570_vm2, %v6112_v2 }
  0x8b   :  { %4773 = vmatprep.mubr.msk.f32.mxu0 %vm1570_vm2, %v6130_v4 }
  0x8e   :  { %4774 = vmatmul.mubr.msk.f32.gmra.mxu0 %vm1570_vm2, %v6143_v5 }
  0x8f   :  { %4776 = vmatprep.mubr.msk.f32.mxu0 %vm1570_vm2, %v6148_v6 }
  0x92   :  { %4777 = vmatmul.mubr.msk.f32.gmra.mxu0 %vm1570_vm2, %v6157_v7 }
  0x93   :  { %4779 = vmatprep.mubr.msk.f32.mxu0 %vm1570_vm2, %v6162_v8 }
  0x96   :  { %4780 = vmatmul.mubr.msk.f32.gmra.mxu0 %vm1570_vm2, %v6171_v9 }
  0x97   :  { %4782 = vmatprep.mubr.msk.f32.mxu0 %vm1570_vm2, %v6176_v10 }
  0x9a   :  { %4783 = vmatmul.mubr.msk.f32.gmra.mxu0 %vm1570_vm2, %v6185_v11 }
  0x9b   :  { %4785 = vmatprep.mubr.msk.f32.mxu0 %vm1570_vm2, %v6190_v12 }
  0x9e   :  { %4786 = vmatmul.mubr.msk.f32.gmra.mxu0 %vm1570_vm2, %v6199_v13 }
  0x9f   :  { %4788 = vmatprep.mubr.msk.f32.mxu0 %vm1570_vm2, %v6204_v14 }
  0xa2   :  { %4789 = vmatmul.mubr.msk.f32.gmra.mxu0 %vm1570_vm2, %v6213_v15 }
  0xa3   :  { %4791 = vmatprep.mubr.msk.f32.mxu0 %vm1570_vm2, %v6218_v16 }
  0xa6   :  { %4792 = vmatmul.mubr.msk.f32.gmra.mxu0 %vm1570_vm2, %v6227_v17 }
  0xa7   :  { %4834 = vmatprep.mubr.msk.f32.mxu0 %vm1570_vm2, %v6112_v2 }
  0xca   :  { %v6233_v18 = vpop.f32.mrf.mxu0 }
  0xcc   :  { %v6235_v19 = vpop.f32.mrf.mxu0 }
  0xce   :  { %v6237_v20 = vpop.f32.mrf.mxu0 }
  0xd0   :  { %v6239_v21 = vpop.f32.mrf.mxu0 }
  0xd2   :  { %v6241_v22 = vpop.f32.mrf.mxu0 }
  0xd4   :  { %v6243_v23 = vpop.f32.mrf.mxu0 }
  0xd6   :  { %v6245_v24 = vpop.f32.mrf.mxu0 }
  0xd8   :  { %v6247_v25 = vpop.f32.mrf.mxu0 }
  0xda   :  { %v6249_v26 = vpop.f32.mrf.mxu0 }
  0xdc   :  { %v6251_v27 = vpop.f32.mrf.mxu0 }
  0xde   :  { %v6253_v28 = vpop.f32.mrf.mxu0 }
  0xe0   :  { %v6255_v29 = vpop.f32.mrf.mxu0 }
  0xe2   :  { %v6257_v30 = vpop.f32.mrf.mxu0 }
  0xe4   :  { %v6259_v31 = vpop.f32.mrf.mxu0 }
  0xe6   :  { %v6261_v32 = vpop.f32.mrf.mxu0 }
  0xe8   :  { %v6263_v33 = vpop.f32.mrf.mxu0 }
  0xea   :  { %v6265_v34 = vpop.f32.mrf.mxu0 }
  0xeb   :  { %7276 = vst [vmem:[#allocation6_spill] sm:$0xff] %v6265_v34 }
  0xec   :  { %v6267_v35 = vpop.f32.mrf.mxu0 }
  0xed   :  { %7277 = vst [vmem:[#allocation7_spill] sm:$0xff] %v6267_v35 }
  0xee   :  { %v6269_v36 = vpop.f32.mrf.mxu0 }
  0xef   :  { %7278 = vst [vmem:[#allocation8_spill] sm:$0xff] %v6269_v36 }
  0xf0   :  { %v6271_v37 = vpop.f32.mrf.mxu0 }
  0xf1   :  { %7279 = vst [vmem:[#allocation9_spill] sm:$0xff] %v6271_v37 }
  0xf2   :  { %v6273_v38 = vpop.f32.mrf.mxu0 }
  0xf3   :  { %7280 = vst [vmem:[#allocation10_spill] sm:$0xff] %v6273_v38 }
  0xf4   :  { %v6275_v39 = vpop.f32.mrf.mxu0 }
  0xf5   :  { %7281 = vst [vmem:[#allocation11_spill] sm:$0xff] %v6275_v39 }
  0xf6   :  { %v6277_v40 = vpop.f32.mrf.mxu0 }
  0xf7   :  { %7282 = vst [vmem:[#allocation12_spill] sm:$0xff] %v6277_v40 }
  0xf8   :  { %v6279_v41 = vpop.f32.mrf.mxu0 }
  0xf9   :  { %7283 = vst [vmem:[#allocation13_spill] sm:$0xff] %v6279_v41 }
  0xfa   :  { %v6281_v42 = vpop.f32.mrf.mxu0 }
  0xfb   :  { %7284 = vst [vmem:[#allocation14_spill] sm:$0xff] %v6281_v42 }
  0xfc   :  { %v6283_v43 = vpop.f32.mrf.mxu0 }
  0xfd   :  { %7285 = vst [vmem:[#allocation15_spill] sm:$0xff] %v6283_v43 }
  0xfe   :  { %v6285_v44 = vpop.f32.mrf.mxu0 }
  0xff   :  { %7286 = vst [vmem:[#allocation16_spill] sm:$0xff] %v6285_v44 }
 0x100   :  { %v6287_v45 = vpop.f32.mrf.mxu0 }
 0x101   :  { %7287 = vst [vmem:[#allocation17_spill] sm:$0xff] %v6287_v45 }
 0x102   :  { %v6289_v46 = vpop.f32.mrf.mxu0 }
 0x103   :  { %7288 = vst [vmem:[#allocation18_spill] sm:$0xff] %v6289_v46 }
 0x104   :  { %v6291_v47 = vpop.f32.mrf.mxu0 }
 0x105   :  { %7289 = vst [vmem:[#allocation19_spill] sm:$0xff] %v6291_v47 }
 0x106   :  { %v6293_v48 = vpop.f32.mrf.mxu0 }
 0x107   :  { %7290 = vst [vmem:[#allocation20_spill] sm:$0xff] %v6293_v48 }
 0x108   :  { %v6295_v49 = vpop.f32.mrf.mxu0 }
 0x109   :  { %7291 = vst [vmem:[#allocation21_spill] sm:$0xff] %v6295_v49 }
 0x10a   :  { %v6297_v50 = vpop.f32.mrf.mxu0 }
 0x10b   :  { %7292 = vst [vmem:[#allocation22_spill] sm:$0xff] %v6297_v50 }
 0x10c   :  { %v6299_v51 = vpop.f32.mrf.mxu0 }
 0x10d   :  { %7293 = vst [vmem:[#allocation23_spill] sm:$0xff] %v6299_v51 }
 0x10e   :  { %v6301_v52 = vpop.f32.mrf.mxu0 }
 0x10f   :  { %7294 = vst [vmem:[#allocation24_spill] sm:$0xff] %v6301_v52 }
 0x110   :  { %v6303_v53 = vpop.f32.mrf.mxu0 }
 0x111   :  { %7295 = vst [vmem:[#allocation25_spill] sm:$0xff] %v6303_v53 }
 0x112   :  { %v6305_v54 = vpop.f32.mrf.mxu0 }
 0x113   :  { %7296 = vst [vmem:[#allocation26_spill] sm:$0xff] %v6305_v54 }
 0x114   :  { %v6307_v55 = vpop.f32.mrf.mxu0 }
 0x115   :  { %7297 = vst [vmem:[#allocation27_spill] sm:$0xff] %v6307_v55 }
 0x116   :  { %v6309_v56 = vpop.f32.mrf.mxu0 }
 0x117   :  { %7298 = vst [vmem:[#allocation28_spill] sm:$0xff] %v6309_v56 }
 0x118   :  { %v6311_v57 = vpop.f32.mrf.mxu0 }
 0x119   :  { %7299 = vst [vmem:[#allocation29_spill] sm:$0xff] %v6311_v57 }
 0x11a   :  { %v6313_v58 = vpop.f32.mrf.mxu0 }
 0x11b   :  { %7300 = vst [vmem:[#allocation30_spill] sm:$0xff] %v6313_v58 }
 0x11c   :  { %v6315_v59 = vpop.f32.mrf.mxu0 }
 0x11d   :  { %7301 = vst [vmem:[#allocation31_spill] sm:$0xff] %v6315_v59  ;;  %v6337_v59 = vpop.permute.xlu0 %87 }
 0x11e   :  { %v6317_v60 = vpop.f32.mrf.mxu0 }
 0x11f   :  { %7302 = vst [vmem:[#allocation32_spill] sm:$0xff] %v6317_v60 }
 0x120   :  { %v6319_v61 = vpop.f32.mrf.mxu0 }
 0x121   :  { %7303 = vst [vmem:[#allocation33_spill] sm:$0xff] %v6319_v61 }
 0x122   :  { %v6321_v62 = vpop.f32.mrf.mxu0 }
 0x123   :  { %7304 = vst [vmem:[#allocation34_spill] sm:$0xff] %v6321_v62 }
 0x124   :  { %v6323_v63 = vpop.f32.mrf.mxu0 }
 0x125   :  { %7305 = vst [vmem:[#allocation35_spill] sm:$0xff] %v6323_v63  ;;  %v6345_v63 = vpop.permute.xlu0 %107 }
 0x126   :  { %v6325_v0 = vpop.f32.mrf.mxu0 }
 0x127   :  { %7306 = vst [vmem:[#allocation36_spill] sm:$0xff] %v6325_v0  ;;  %v6347_v0 = vpop.permute.xlu1 %82 }
 0x128   :  { %v6327_v1 = vpop.f32.mrf.mxu0 }
 0x129   :  { %7307 = vst [vmem:[#allocation37_spill] sm:$0xff] %v6327_v1 }
 0x12a   :  { %v6329_v55 = vpop.f32.mrf.mxu0 }
 0x12b   :  { %7308 = vst [vmem:[#allocation38_spill] sm:$0xff] %v6329_v55 }
 0x12c   :  { %v6331_v56 = vpop.f32.mrf.mxu0 }
 0x12d   :  { %7309 = vst [vmem:[#allocation39_spill] sm:$0xff] %v6331_v56 }
 0x12e   :  { %v6333_v57 = vpop.f32.mrf.mxu0 }
 0x12f   :  { %7310 = vst [vmem:[#allocation40_spill] sm:$0xff] %v6333_v57  ;;  %v6355_v57 = vpop.permute.xlu0 %77 }
 0x130   :  { %v6335_v58 = vpop.f32.mrf.mxu0 }
 0x131   :  { %7311 = vst [vmem:[#allocation41_spill] sm:$0xff] %v6335_v58  ;;  %v6357_v58 = vpop.permute.xlu1 %102 }
 0x132   :  { %v6339_v60 = vpop.f32.mrf.mxu0 }
 0x133   :  { %7312 = vst [vmem:[#allocation42_spill] sm:$0xff] %v6339_v60 }
 0x134   :  { %v6341_v61 = vpop.f32.mrf.mxu0 }
 0x135   :  { %7313 = vst [vmem:[#allocation43_spill] sm:$0xff] %v6341_v61  ;;  %v6367_v53 = vpop.permute.xlu1 %97 }
 0x136   :  { %v6343_v62 = vpop.f32.mrf.mxu0 }
 0x137   :  { %7314 = vst [vmem:[#allocation44_spill] sm:$0xff] %v6343_v62  ;;  %v6365_v62 = vpop.permute.xlu0 %72 }
 0x138   :  { %v6349_v1 = vpop.f32.mrf.mxu0 }
 0x139   :  { %7315 = vst [vmem:[#allocation45_spill] sm:$0xff] %v6349_v1 }
 0x13a   :  { %v6351_v55 = vpop.f32.mrf.mxu0 }
 0x13b   :  { %7316 = vst [vmem:[#allocation46_spill] sm:$0xff] %v6351_v55  ;;  %v6377_v51 = vpop.permute.xlu0 %127 }
 0x13c   :  { %v6353_v56 = vpop.f32.mrf.mxu0 }
 0x13d   :  { %7317 = vst [vmem:[#allocation47_spill] sm:$0xff] %v6353_v56  ;;  %v275_v56 = vadd.f32 %v6233_v18, %v6355_v57 }
 0x13e   :  { %v6359_v54 = vpop.f32.mrf.mxu0 }
 0x13f   :  { %7318 = vst [vmem:[#allocation48_spill] sm:$0xff] %v6359_v54  ;;  %v6379_v54 = vpop.permute.xlu1 %92  ;;  %v6387_v18 = vpop.permute.xlu0 %122 }
 0x140   :  { %v6361_v60 = vpop.f32.mrf.mxu0 }
 0x141   :  { %7319 = vst [vmem:[#allocation49_spill] sm:$0xff] %v6361_v60 }
 0x142   :  { %v6363_v61 = vpop.f32.mrf.mxu0 }
 0x143   :  { %7320 = vst [vmem:[#allocation50_spill] sm:$0xff] %v6363_v61  ;;  %v270_v61 = vadd.f32 %v6235_v19, %v6365_v62  ;;  %v6389_v44 = vpop.permute.xlu1 %147  ;;  %v295_v19 = vadd.f32 %v6241_v22, %v6367_v53 }
 0x144   :  { %v6369_v52 = vpop.f32.mrf.mxu0 }
 0x145   :  { %7321 = vst [vmem:[#allocation51_spill] sm:$0xff] %v6369_v52  ;;  %v285_v52 = vadd.f32 %v6237_v20, %v6337_v59 }
 0x146   :  { %v6371_v1 = vpop.f32.mrf.mxu0 }
 0x147   :  { %7322 = vst [vmem:[#allocation52_spill] sm:$0xff] %v6371_v1  ;;  %v6399_v22 = vpop.permute.xlu1 %142 }
 0x148   :  { %v6373_v55 = vpop.f32.mrf.mxu0  ;;  %7324 = vst [vmem:[#allocation54_spill] sm:$0xff] %v6399_v22 }
 0x149   :  { %7323 = vst [vmem:[#allocation53_spill] sm:$0xff] %v6373_v55  ;;  %v280_v55 = vadd.f32 %v6239_v21, %v6347_v0 }
 0x14a   :  { %v4772_v60 = vpop.f32.mrf.mxu0 }
 0x14b   :  { %v1765_v50 = vadd.f32 %v4772_v60, %v275_v56 }
 0x14c   :  { %v1685_v49 = vpop.f32.mrf.mxu0 }
 0x14d   :  { %v3988_v48 = vmul.f32 -1.442695, %v1765_v50  ;;  %v1764_v1 = vadd.f32 %v1685_v49, %v270_v61  ;;  %v290_v49 = vadd.f32 %v6243_v23, %v6379_v54  ;;  %v300_v23 = vadd.f32 %v6247_v25, %v6357_v58  ;;  %v6411_v25 = vpop.permute.xlu1 %137 }
 0x14e   :  { %v4775_v47 = vpop.f32.mrf.mxu0 }
 0x14f   :  { %5025 = vpow2.f32 %v3988_v48  ;;  %v3987_v46 = vmul.f32 -1.442695, %v1764_v1  ;;  %v1767_v45 = vadd.f32 %v4775_v47, %v285_v52  ;;  %v305_v47 = vadd.f32 %v6245_v24, %v6345_v63  ;;  %v6397_v48 = vpop.permute.xlu0 %117 }
 0x150   :  { %v1695_v43 = vpop.f32.mrf.mxu0  ;;  %v315_v24 = vadd.f32 %v6249_v26, %v6397_v48 }
 0x151   :  { %5027 = vpow2.f32 %v3987_v46  ;;  %v3990_v56 = vmul.f32 -1.442695, %v1767_v45  ;;  %v1766_v20 = vadd.f32 %v1695_v43, %v280_v55  ;;  %v6401_v43 = vpop.f32.mrf.mxu1  ;;  %v6423_v41 = vpop.permute.xlu1 %132 }
 0x152   :  { %v4778_v50 = vpop.f32.mrf.mxu0 }
 0x153   :  { %5029 = vpow2.f32 %v3990_v56  ;;  %v3989_v21 = vmul.f32 -1.442695, %v1766_v20  ;;  %v1769_v60 = vadd.f32 %v4778_v50, %v295_v19 }
 0x154   :  { %v1705_v61 = vpop.f32.mrf.mxu0 }
 0x155   :  { %5031 = vpow2.f32 %v3989_v21  ;;  %v3992_v52 = vmul.f32 -1.442695, %v1769_v60  ;;  %v1768_v1 = vadd.f32 %v1705_v61, %v290_v49  ;;  %v6407_v49 = vpop.f32.mrf.mxu1  ;;  %v6409_v21 = vpop.permute.xlu0 %112 }
 0x156   :  { %v4781_v45 = vpop.f32.mrf.mxu0 }
 0x157   :  { %5033 = vpow2.f32 %v3992_v52  ;;  %v3991_v46 = vmul.f32 -1.442695, %v1768_v1  ;;  %v1771_v55 = vadd.f32 %v4781_v45, %v305_v47  ;;  %v325_v47 = vadd.f32 %v6253_v28, %v6377_v51 }
 0x158   :  { %v1715_v19 = vpop.f32.mrf.mxu0  ;;  %v310_v45 = vadd.f32 %v6251_v27, %v6409_v21  ;;  %v335_v28 = vadd.f32 %v6257_v30, %v6411_v25  ;;  %v345_v30 = vadd.f32 %v6261_v32, %v6389_v44 }
 0x159   :  { %5035 = vpow2.f32 %v3991_v46  ;;  %v3994_v56 = vmul.f32 -1.442695, %v1771_v55  ;;  %v1770_v20 = vadd.f32 %v1715_v19, %v300_v23  ;;  %v6417_v46 = vpop.f32.mrf.mxu1 }
 0x15a   :  { %v4784_v50 = vpop.f32.mrf.mxu0 }
 0x15b   :  { %5037 = vpow2.f32 %v3994_v56  ;;  %v3993_v60 = vmul.f32 -1.442695, %v1770_v20  ;;  %v1773_v61 = vadd.f32 %v4784_v50, %v315_v24  ;;  %v320_v24 = vadd.f32 %v6255_v29, %v6387_v18  ;;  %v6425_v40 = vpop.f32.mrf.mxu1 }
 0x15c   :  { %v5026_v42 = vpop.eup %5025  ;;  %v1725_v52 = vpop.f32.mrf.mxu0 }
 0x15d   :  { %v1793_v1 = vadd.f32 1.0, %v5026_v42  ;;  %5039 = vpow2.f32 %v3993_v60  ;;  %v1772_v56 = vadd.f32 %v1725_v52, %v310_v45  ;;  %v330_v52 = vadd.f32 %v6259_v31, %v6423_v41 }
 0x15e   :  { %v5028_v26 = vpop.eup %5027  ;;  %5041 = vtanh.f32 %v1773_v61  ;;  %v4787_v23 = vpop.f32.mrf.mxu0 }
 0x15f   :  { %5043 = vrcp.f32 %v1793_v1  ;;  %v1775_v55 = vadd.f32 %v4787_v23, %v325_v47  ;;  %v1792_v42 = vadd.f32 1.0, %v5028_v26 }
 0x160   :  { %v5030_v19 = vpop.eup %5029  ;;  %v1735_v20 = vpop.f32.mrf.mxu0 }
 0x161   :  { %v1795_v50 = vadd.f32 1.0, %v5030_v19  ;;  %5045 = vtanh.f32 %v1775_v55  ;;  %v1774_v27 = vadd.f32 %v1735_v20, %v320_v24  ;;  %v340_v55 = vadd.f32 %v6263_v33, %v6399_v22  ;;  %v6433_v20 = vpop.f32.mrf.mxu1 }
 0x162   :  { %v5032_v60 = vpop.eup %5031  ;;  %v4790_v61 = vpop.f32.mrf.mxu0 }
 0x163   :  { %5047 = vrcp.f32 %v1795_v50  ;;  %v1777_v47 = vadd.f32 %v4790_v61, %v335_v28  ;;  %v1794_v23 = vadd.f32 1.0, %v5032_v60  ;;  %v6435_v33 = vpop.f32.mrf.mxu1 }
 0x164   :  { %v5034_v1 = vpop.eup %5033  ;;  %5049 = vtanh.f32 %v1772_v56  ;;  %v1745_v29 = vpop.f32.mrf.mxu0 }
 0x165   :  { %5051 = vrcp.f32 %v1792_v42  ;;  %v1817_v26 = vadd.f32 1.0, %v5034_v1  ;;  %v3996_v19 = vmul.f32 -1.442695, %v1777_v47  ;;  %v1776_v28 = vadd.f32 %v1745_v29, %v330_v52  ;;  %v6437_v52 = vpop.f32.mrf.mxu1 }
 0x166   :  { %v5036_v45 = vpop.eup %5035  ;;  %5053 = vtanh.f32 %v1774_v27  ;;  %v4793_v24 = vpop.f32.mrf.mxu0 }
 0x167   :  { %5055 = vrcp.f32 %v1817_v26  ;;  %v1816_v56 = vadd.f32 1.0, %v5036_v45  ;;  %v1779_v50 = vadd.f32 %v4793_v24, %v345_v30  ;;  %v3995_v47 = vmul.f32 -1.442695, %v1776_v28 }
 0x168   :  { %v5038_v60 = vpop.eup %5037  ;;  %5057 = vrcp.f32 %v1794_v23  ;;  %v1755_v31 = vpop.f32.mrf.mxu0 }
 0x169   :  { %5059 = vrcp.f32 %v1816_v56  ;;  %v1819_v32 = vadd.f32 1.0, %v5038_v60  ;;  %v3998_v42 = vmul.f32 -1.442695, %v1779_v50  ;;  %v1778_v61 = vadd.f32 %v1755_v31, %v340_v55  ;;  %v6439_v56 = vpop.f32.mrf.mxu1 }
 0x16a   :  { %v5040_v1 = vpop.eup %5039  ;;  %5061 = vpow2.f32 %v3996_v19 }
 0x16b   :  { %v5042_v39 = vpop.eup %5041  ;;  %5063 = vrcp.f32 %v1819_v32  ;;  %v1818_v27 = vadd.f32 1.0, %v5040_v1  ;;  %v3997_v38 = vmul.f32 -1.442695, %v1778_v61 }
 0x16c   :  { %v5044_v26 = vpop.eup %5043  ;;  %5065 = vpow2.f32 %v3998_v42  ;;  %v6441_v42 = vpop.f32.mrf.mxu1 }
 0x16d   :  { %5067 = vrcp.f32 %v1818_v27  ;;  %v1861_v29 = vmul.f32 %v5044_v26, %v5042_v39 }
 0x16e   :  { %5069 = vpow2.f32 %v3997_v38  ;;  %v5046_v23 = vpop.eup %5045  ;;  %v6445_v37 = vpop.f32.mrf.mxu1 }
 0x16f   :  { %5071 = vpow2.f32 %v3995_v47 }
 0x170   :  { %v5048_v30 = vpop.eup %5047 }
 0x171   :  { %v5050_v45 = vpop.eup %5049  ;;  %v1863_v55 = vmul.f32 %v5048_v30, %v5046_v23 }
 0x172   :  { %v5052_v19 = vpop.eup %5051 }
 0x173   :  { %v5054_v24 = vpop.eup %5053  ;;  %v1860_v26 = vmul.f32 %v5052_v19, %v5050_v45  ;;  %v6455_v45 = vpop.f32.mrf.mxu1 }
 0x174   :  { %v5056_v50 = vpop.eup %5055 }
 0x175   :  { %v5058_v60 = vpop.eup %5057  ;;  %v1857_v28 = vmul.f32 0.0, %v5056_v50 }
 0x176   :  { %v5060_v31 = vpop.eup %5059  ;;  %v1862_v50 = vmul.f32 %v5058_v60, %v5054_v24 }
 0x177   :  { %v5062_v32 = vpop.eup %5061  ;;  %v6443_v39 = vadd.f32 %v1861_v29, %v1857_v28  ;;  %v1856_v1 = vmul.f32 0.0, %v5060_v31 }
 0x178   :  { %v5064_v38 = vpop.eup %5063  ;;  %v1845_v22 = vadd.f32 1.0, %v5062_v32 }
 0x179   :  { %v5066_v61 = vpop.eup %5065  ;;  %v1859_v27 = vmul.f32 0.0, %v5064_v38  ;;  %5073 = vtanh.f32 %v6443_v39  ;;  %v6450_v28 = vadd.f32 %v1860_v26, %v1856_v1 }
 0x17a   :  { %v5068_v47 = vpop.eup %5067  ;;  %v1847_v23 = vadd.f32 1.0, %v5066_v61 }
 0x17b   :  { %v5070_v30 = vpop.eup %5069  ;;  %v1858_v36 = vmul.f32 0.0, %v5068_v47  ;;  %v6447_v35 = vadd.f32 %v1863_v55, %v1859_v27  ;;  %v6459_v55 = vpop.f32.mrf.mxu1 }
 0x17c   :  { %v5072_v34 = vpop.eup %5071  ;;  %5075 = vrcp.f32 %v1847_v23  ;;  %v1846_v29 = vadd.f32 1.0, %v5070_v30 }
 0x17d   :  { %v6452_v31 = vadd.f32 %v1862_v50, %v1858_v36  ;;  %5077 = vtanh.f32 %v6447_v35  ;;  %v1844_v19 = vadd.f32 1.0, %v5072_v34  ;;  %v6461_v24 = vpop.f32.mrf.mxu1 }
 0x17e   :  { %5079 = vrcp.f32 %v1846_v29 }
 0x17f   :  { %5081 = vtanh.f32 %v6452_v31  ;;  %v6463_v61 = vpop.f32.mrf.mxu1 }
 0x180   :  { %5083 = vrcp.f32 %v1845_v22 }
 0x181   :  { %5085 = vtanh.f32 %v6450_v28  ;;  %v6465_v22 = vpop.f32.mrf.mxu1 }
 0x182   :  { %5087 = vrcp.f32 %v1844_v19 }
 0x183   :  { %v6467_v29 = vpop.f32.mrf.mxu1 }
 0x185   :  { %v6473_v19 = vpop.f32.mrf.mxu1 }
 0x186   :  { %v5074_v60 = vpop.eup %5073 }
 0x189   :  { %v5076_v32 = vpop.eup %5075 }
 0x18a   :  { %v5078_v36 = vpop.eup %5077 }
 0x18b   :  { %v5080_v38 = vpop.eup %5079  ;;  %v1875_v1 = vmul.f32 %v5078_v36, %v5076_v32 }
 0x18c   :  { %v5082_v27 = vpop.eup %5081 }
 0x18d   :  { %v5084_v47 = vpop.eup %5083  ;;  %4794 = vmatprep.subr.mxu1 %v1875_v1  ;;  %v1874_v34 = vmul.f32 %v5082_v27, %v5080_v38 }
 0x18e   :  { %v5086_v26 = vpop.eup %5085  ;;  %4795 = vmatpush3.msra.mxu1 %v1875_v1  ;;  %v1873_v23 = vmul.f32 %v5084_v47, %v5074_v60  ;;  %v6479_v60 = vpop.f32.mrf.mxu1 }
 0x18f   :  { %4796 = vmatprep.subr.mxu1 %v1874_v34  ;;  %v5088_v30 = vpop.eup %5087 }
 0x190   :  { %4797 = vmatpush3.msra.mxu1 %v1874_v34  ;;  %v1872_v50 = vmul.f32 %v5088_v30, %v5086_v26 }
 0x191   :  { %4798 = vmatprep.subr.mxu1 %v1873_v23 }
 0x192   :  { %4799 = vmatpush3.msra.mxu1 %v1873_v23 }
 0x193   :  { %4800 = vmatprep.subr.mxu1 %v1872_v50 }
 0x194   :  { %4801 = vmatpush3.msra.mxu1 %v1872_v50 }
 0x195   :  { %4803 = vmatmul.mubr.msk.f32.vlgmr.msra.gmra.mxu1 %vm1570_vm2, %v6125_v3  ;;  %v6485_v3 = vpop.f32.mrf.mxu1 }
 0x196   :  { %4805 = vmatprep.mubr.msk.f32.mxu1 %vm1570_vm2, %v6130_v4 }
 0x197   :  { %v6491_v4 = vpop.f32.mrf.mxu1 }
 0x198   :  { %7325 = vst [vmem:[#allocation55_spill] sm:$0xff] %v6491_v4 }
 0x199   :  { %4806 = vmatmul.mubr.msk.f32.gmra.mxu1 %vm1570_vm2, %v6143_v5  ;;  %v6497_v32 = vpop.f32.mrf.mxu1 }
 0x19a   :  { %4808 = vmatprep.mubr.msk.f32.mxu1 %vm1570_vm2, %v6148_v6  ;;  %7326 = vst [vmem:[#allocation56_spill] sm:$0xff] %v6497_v32 }
 0x19b   :  { %v6503_v36 = vpop.f32.mrf.mxu1 }
 0x19c   :  { %7327 = vst [vmem:[#allocation57_spill] sm:$0xff] %v6503_v36 }
 0x19d   :  { %4809 = vmatmul.mubr.msk.f32.gmra.mxu1 %vm1570_vm2, %v6157_v7  ;;  %v6509_v38 = vpop.f32.mrf.mxu1 }
 0x19e   :  { %4811 = vmatprep.mubr.msk.f32.mxu1 %vm1570_vm2, %v6162_v8  ;;  %7328 = vst [vmem:[#allocation58_spill] sm:$0xff] %v6509_v38 }
 0x19f   :  { %v6515_v1 = vpop.f32.mrf.mxu1 }
 0x1a0   :  { %7329 = vst [vmem:[#allocation59_spill] sm:$0xff] %v6515_v1 }
 0x1a1   :  { %4812 = vmatmul.mubr.msk.f32.gmra.mxu1 %vm1570_vm2, %v6171_v9  ;;  %v6517_v27 = vpop.f32.mrf.mxu1 }
 0x1a2   :  { %4814 = vmatprep.mubr.msk.f32.mxu1 %vm1570_vm2, %v6176_v10  ;;  %7330 = vst [vmem:[#allocation60_spill] sm:$0xff] %v6517_v27 }
 0x1a3   :  { %v6519_v47 = vpop.f32.mrf.mxu1 }
 0x1a4   :  { %7331 = vst [vmem:[#allocation61_spill] sm:$0xff] %v6519_v47 }
 0x1a5   :  { %4815 = vmatmul.mubr.msk.f32.gmra.mxu1 %vm1570_vm2, %v6185_v11  ;;  %v6521_v34 = vpop.f32.mrf.mxu1 }
 0x1a6   :  { %4817 = vmatprep.mubr.msk.f32.mxu1 %vm1570_vm2, %v6190_v12  ;;  %7332 = vst [vmem:[#allocation62_spill] sm:$0xff] %v6521_v34 }
 0x1a7   :  { %v6523_v26 = vpop.f32.mrf.mxu1 }
 0x1a8   :  { %7333 = vst [vmem:[#allocation63_spill] sm:$0xff] %v6523_v26 }
 0x1a9   :  { %4818 = vmatmul.mubr.msk.f32.gmra.mxu1 %vm1570_vm2, %v6199_v13  ;;  %v6525_v23 = vpop.f32.mrf.mxu1 }
 0x1aa   :  { %4820 = vmatprep.mubr.msk.f32.mxu1 %vm1570_vm2, %v6204_v14  ;;  %7334 = vst [vmem:[#allocation64_spill] sm:$0xff] %v6525_v23 }
 0x1ab   :  { %v6527_v30 = vpop.f32.mrf.mxu1 }
 0x1ac   :  { %7335 = vst [vmem:[#allocation65_spill] sm:$0xff] %v6527_v30 }
 0x1ad   :  { %4821 = vmatmul.mubr.msk.f32.gmra.mxu1 %vm1570_vm2, %v6213_v15  ;;  %v6529_v50 = vpop.f32.mrf.mxu1 }
 0x1ae   :  { %4823 = vmatprep.mubr.msk.f32.mxu1 %vm1570_vm2, %v6218_v16  ;;  %7336 = vst [vmem:[#allocation66_spill] sm:$0xff] %v6529_v50 }
 0x1af   :  { %v6531_v38 = vpop.f32.mrf.mxu1 }
 0x1b0   :  { %7337 = vst [vmem:[#allocation67_spill] sm:$0xff] %v6531_v38 }
 0x1b1   :  { %4824 = vmatmul.mubr.msk.f32.gmra.mxu1 %vm1570_vm2, %v6227_v17  ;;  %v6533_v36 = vpop.f32.mrf.mxu1 }
 0x1b2   :  { %4866 = vmatprep.mubr.msk.f32.mxu1 %vm1570_vm2, %v6112_v2  ;;  %7338 = vst [vmem:[#allocation68_spill] sm:$0xff] %v6533_v36 }
 0x1b3   :  { %v6535_v2 = vpop.f32.mrf.mxu1 }
 0x1b4   :  { %7339 = vst [vmem:[#allocation69_spill] sm:$0xff] %v6535_v2 }
 0x1b5   :  { %v6537_v1 = vpop.f32.mrf.mxu1 }
 0x1b6   :  { %7340 = vst [vmem:[#allocation70_spill] sm:$0xff] %v6537_v1 }
 0x1b7   :  { %v6539_v27 = vpop.f32.mrf.mxu1 }
 0x1b8   :  { %7341 = vst [vmem:[#allocation71_spill] sm:$0xff] %v6539_v27 }
 0x1b9   :  { %v6541_v47 = vpop.f32.mrf.mxu1 }
 0x1ba   :  { %7342 = vst [vmem:[#allocation72_spill] sm:$0xff] %v6541_v47 }
 0x1bb   :  { %v6543_v34 = vpop.f32.mrf.mxu1 }
 0x1bc   :  { %7343 = vst [vmem:[#allocation73_spill] sm:$0xff] %v6543_v34 }
 0x1bd   :  { %v6545_v26 = vpop.f32.mrf.mxu1 }
 0x1be   :  { %7344 = vst [vmem:[#allocation74_spill] sm:$0xff] %v6545_v26 }
 0x1bf   :  { %v6547_v23 = vpop.f32.mrf.mxu1 }
 0x1c0   :  { %7345 = vst [vmem:[#allocation75_spill] sm:$0xff] %v6547_v23 }
 0x1c1   :  { %v6549_v30 = vpop.f32.mrf.mxu1 }
 0x1c2   :  { %7346 = vst [vmem:[#allocation76_spill] sm:$0xff] %v6549_v30 }
 0x1c3   :  { %v6551_v50 = vpop.f32.mrf.mxu1 }
 0x1c4   :  { %7347 = vst [vmem:[#allocation77_spill] sm:$0xff] %v6551_v50 }
 0x1c5   :  { %v6553_v38 = vpop.f32.mrf.mxu1 }
 0x1c6   :  { %7348 = vst [vmem:[#allocation78_spill] sm:$0xff] %v6553_v38 }
 0x1c7   :  { %v6555_v36 = vpop.f32.mrf.mxu1 }
 0x1c8   :  { %7349 = vst [vmem:[#allocation79_spill] sm:$0xff] %v6555_v36 }
 0x1c9   :  { %v6557_v2 = vpop.f32.mrf.mxu1 }
 0x1ca   :  { %7350 = vst [vmem:[#allocation80_spill] sm:$0xff] %v6557_v2 }
 0x1cb   :  { %v6559_v1 = vpop.f32.mrf.mxu1 }
 0x1cc   :  { %7351 = vst [vmem:[#allocation81_spill] sm:$0xff] %v6559_v1 }
 0x1cd   :  { %v6561_v27 = vpop.f32.mrf.mxu1 }
 0x1ce   :  { %7352 = vst [vmem:[#allocation82_spill] sm:$0xff] %v6561_v27 }
 0x1cf   :  { %v6563_v47 = vpop.f32.mrf.mxu1 }
 0x1d0   :  { %7353 = vst [vmem:[#allocation83_spill] sm:$0xff] %v6563_v47 }
 0x1d1   :  { %v6565_v34 = vpop.f32.mrf.mxu1 }
 0x1d2   :  { %7354 = vst [vmem:[#allocation84_spill] sm:$0xff] %v6565_v34 }
 0x1d3   :  { %v6567_v26 = vpop.f32.mrf.mxu1 }
 0x1d4   :  { %7355 = vst [vmem:[#allocation85_spill] sm:$0xff] %v6567_v26 }
 0x1d5   :  { %v6569_v23 = vpop.f32.mrf.mxu1 }
 0x1d6   :  { %7356 = vst [vmem:[#allocation86_spill] sm:$0xff] %v6569_v23 }
 0x1d7   :  { %v6571_v30 = vpop.f32.mrf.mxu1 }
 0x1d8   :  { %7357 = vst [vmem:[#allocation87_spill] sm:$0xff] %v6571_v30 }
 0x1d9   :  { %v6573_v50 = vpop.f32.mrf.mxu1 }
 0x1da   :  { %7358 = vst [vmem:[#allocation88_spill] sm:$0xff] %v6573_v50 }
 0x1db   :  { %v6575_v38 = vpop.f32.mrf.mxu1 }
 0x1dc   :  { %7359 = vst [vmem:[#allocation89_spill] sm:$0xff] %v6575_v38 }
 0x1dd   :  { %v6577_v36 = vpop.f32.mrf.mxu1 }
 0x1de   :  { %7360 = vst [vmem:[#allocation90_spill] sm:$0xff] %v6577_v36  ;;  %v444_v36 = vadd.f32 %v6401_v43, %v6355_v57  ;;  %v464_v43 = vadd.f32 %v6433_v20, %v6367_v53  ;;  %v469_v20 = vadd.f32 %v6439_v56, %v6357_v58 }
 0x1df   :  { %v6579_v2 = vpop.f32.mrf.mxu1 }
 0x1e0   :  { %7361 = vst [vmem:[#allocation91_spill] sm:$0xff] %v6579_v2 }
 0x1e1   :  { %v6581_v1 = vpop.f32.mrf.mxu1 }
 0x1e2   :  { %7362 = vst [vmem:[#allocation92_spill] sm:$0xff] %v6581_v1  ;;  %v439_v1 = vadd.f32 %v6407_v49, %v6365_v62 }
 0x1e3   :  { %v6583_v27 = vpop.f32.mrf.mxu1 }
 0x1e4   :  { %7363 = vst [vmem:[#allocation93_spill] sm:$0xff] %v6583_v27 }
 0x1e5   :  { %v6585_v47 = vpop.f32.mrf.mxu1 }
 0x1e6   :  { %7364 = vst [vmem:[#allocation94_spill] sm:$0xff] %v6585_v47 }
 0x1e7   :  { %v6587_v34 = vpop.f32.mrf.mxu1 }
 0x1e8   :  { %7365 = vst [vmem:[#allocation95_spill] sm:$0xff] %v6587_v34  ;;  %v454_v34 = vadd.f32 %v6417_v46, %v6337_v59  ;;  %v459_v46 = vadd.f32 %v6435_v33, %v6379_v54  ;;  %v484_v33 = vadd.f32 %v6441_v42, %v6397_v48 }
 0x1e9   :  { %v6589_v26 = vpop.f32.mrf.mxu1 }
 0x1ea   :  { %7366 = vst [vmem:[#allocation96_spill] sm:$0xff] %v6589_v26 }
 0x1eb   :  { %v6591_v23 = vpop.f32.mrf.mxu1 }
 0x1ec   :  { %7367 = vst [vmem:[#allocation97_spill] sm:$0xff] %v6591_v23 }
 0x1ed   :  { %v6593_v30 = vpop.f32.mrf.mxu1 }
 0x1ee   :  { %7368 = vst [vmem:[#allocation98_spill] sm:$0xff] %v6593_v30  ;;  %v449_v30 = vadd.f32 %v6425_v40, %v6347_v0  ;;  %v474_v40 = vadd.f32 %v6437_v52, %v6345_v63 }
 0x1ef   :  { %v6595_v50 = vpop.f32.mrf.mxu1 }
 0x1f0   :  { %7369 = vst [vmem:[#allocation99_spill] sm:$0xff] %v6595_v50 }
 0x255   :  { %v4804_v2 = vpop.f32.mrf.mxu1 }
 0x256   :  { %v2038_v27 = vadd.f32 %v4804_v2, %v444_v36 }
 0x257   :  { %v1958_v38 = vpop.f32.mrf.mxu1 }
 0x258   :  { %v4016_v47 = vmul.f32 -1.442695, %v2038_v27  ;;  %v2037_v26 = vadd.f32 %v1958_v38, %v439_v1 }
 0x259   :  { %v4807_v32 = vpop.f32.mrf.mxu1 }
 0x25a   :  { %5089 = vpow2.f32 %v4016_v47  ;;  %v4015_v50 = vmul.f32 -1.442695, %v2037_v26  ;;  %v2040_v23 = vadd.f32 %v4807_v32, %v454_v34 }
 0x25b   :  { %v1968_v4 = vpop.f32.mrf.mxu1 }
 0x25c   :  { %5091 = vpow2.f32 %v4015_v50  ;;  %v4018_v49 = vmul.f32 -1.442695, %v2040_v23  ;;  %v2039_v36 = vadd.f32 %v1968_v4, %v449_v30 }
 0x25d   :  { %v4810_v2 = vpop.f32.mrf.mxu1 }
 0x25e   :  { %5093 = vpow2.f32 %v4018_v49  ;;  %v4017_v38 = vmul.f32 -1.442695, %v2039_v36  ;;  %v2042_v1 = vadd.f32 %v4810_v2, %v464_v43 }
 0x25f   :  { %v1978_v27 = vpop.f32.mrf.mxu1 }
 0x260   :  { %5095 = vpow2.f32 %v4017_v38  ;;  %v4020_v32 = vmul.f32 -1.442695, %v2042_v1  ;;  %v2041_v47 = vadd.f32 %v1978_v27, %v459_v46  ;;  %v494_v46 = vadd.f32 %v6455_v45, %v6377_v51 }
 0x261   :  { %v4813_v34 = vpop.f32.mrf.mxu1  ;;  %v479_v1 = vadd.f32 %v6445_v37, %v6409_v21 }
 0x262   :  { %5097 = vpow2.f32 %v4020_v32  ;;  %v4019_v4 = vmul.f32 -1.442695, %v2041_v47  ;;  %v2044_v26 = vadd.f32 %v4813_v34, %v474_v40  ;;  %v489_v32 = vadd.f32 %v6459_v55, %v6387_v18 }
 0x263   :  { %v1988_v23 = vpop.f32.mrf.mxu1  ;;  %v499_v55 = vadd.f32 %v6463_v61, %v6423_v41 }
 0x264   :  { %5099 = vpow2.f32 %v4019_v4  ;;  %v4022_v30 = vmul.f32 -1.442695, %v2044_v26  ;;  %v2043_v50 = vadd.f32 %v1988_v23, %v469_v20  ;;  %v504_v20 = vadd.f32 %v6461_v24, %v6411_v25 }
 0x265   :  { %v4816_v43 = vpop.f32.mrf.mxu1 }
 0x266   :  { %5101 = vpow2.f32 %v4022_v30  ;;  %v4021_v52 = vmul.f32 -1.442695, %v2043_v50  ;;  %v2046_v49 = vadd.f32 %v4816_v43, %v484_v33 }
 0x267   :  { %v5090_v36 = vpop.eup %5089  ;;  %v1998_v2 = vpop.f32.mrf.mxu1 }
 0x268   :  { %v2066_v56 = vadd.f32 1.0, %v5090_v36  ;;  %5103 = vpow2.f32 %v4021_v52  ;;  %v2045_v47 = vadd.f32 %v1998_v2, %v479_v1  ;;  %v514_v52 = vadd.f32 %v6465_v22, %v6389_v44  ;;  %v7370_v36 = vld [vmem:[#allocation54_spill] sm:$0xff] }
 0x269   :  { %v5092_v38 = vpop.eup %5091  ;;  %5105 = vtanh.f32 %v2046_v49  ;;  %v4819_v42 = vpop.f32.mrf.mxu1  ;;  %v509_v2 = vadd.f32 %v6467_v29, %v7370_v36 }
 0x26a   :  { %5107 = vrcp.f32 %v2066_v56  ;;  %v2048_v27 = vadd.f32 %v4819_v42, %v494_v46  ;;  %v2065_v45 = vadd.f32 1.0, %v5092_v38 }
 0x26b   :  { %v5094_v40 = vpop.eup %5093  ;;  %v2008_v34 = vpop.f32.mrf.mxu1 }
 0x26c   :  { %v2068_v4 = vadd.f32 1.0, %v5094_v40  ;;  %5109 = vtanh.f32 %v2048_v27  ;;  %v2047_v23 = vadd.f32 %v2008_v34, %v489_v32 }
 0x26d   :  { %v5096_v26 = vpop.eup %5095  ;;  %v4822_v33 = vpop.f32.mrf.mxu1 }
 0x26e   :  { %5111 = vrcp.f32 %v2068_v4  ;;  %v2050_v37 = vadd.f32 %v4822_v33, %v504_v20  ;;  %v2067_v50 = vadd.f32 1.0, %v5096_v26 }
 0x26f   :  { %v5098_v30 = vpop.eup %5097  ;;  %5113 = vtanh.f32 %v2045_v47  ;;  %v2018_v43 = vpop.f32.mrf.mxu1 }
 0x270   :  { %5115 = vrcp.f32 %v2065_v45  ;;  %v2090_v24 = vadd.f32 1.0, %v5098_v30  ;;  %v4024_v46 = vmul.f32 -1.442695, %v2050_v37  ;;  %v2049_v1 = vadd.f32 %v2018_v43, %v499_v55 }
 0x271   :  { %v5100_v49 = vpop.eup %5099  ;;  %5117 = vtanh.f32 %v2047_v23  ;;  %v4825_v56 = vpop.f32.mrf.mxu1 }
 0x272   :  { %5119 = vrcp.f32 %v2090_v24  ;;  %v2089_v38 = vadd.f32 1.0, %v5100_v49  ;;  %v2052_v42 = vadd.f32 %v4825_v56, %v514_v52  ;;  %v4023_v29 = vmul.f32 -1.442695, %v2049_v1 }
 0x273   :  { %v5102_v27 = vpop.eup %5101  ;;  %5121 = vrcp.f32 %v2067_v50  ;;  %v2028_v40 = vpop.f32.mrf.mxu1 }
 0x274   :  { %5123 = vrcp.f32 %v2089_v38  ;;  %v2092_v61 = vadd.f32 1.0, %v5102_v27  ;;  %v4026_v32 = vmul.f32 -1.442695, %v2052_v42  ;;  %v2051_v22 = vadd.f32 %v2028_v40, %v509_v2 }
 0x275   :  { %v5104_v47 = vpop.eup %5103  ;;  %5125 = vpow2.f32 %v4024_v46 }
 0x276   :  { %v5106_v34 = vpop.eup %5105  ;;  %5127 = vrcp.f32 %v2092_v61  ;;  %v2091_v20 = vadd.f32 1.0, %v5104_v47  ;;  %v4025_v45 = vmul.f32 -1.442695, %v2051_v22 }
 0x277   :  { %v5108_v4 = vpop.eup %5107  ;;  %5129 = vpow2.f32 %v4026_v32 }
 0x278   :  { %5131 = vrcp.f32 %v2091_v20  ;;  %v2134_v26 = vmul.f32 %v5108_v4, %v5106_v34 }
 0x279   :  { %5133 = vpow2.f32 %v4025_v45  ;;  %v5110_v23 = vpop.eup %5109 }
 0x27a   :  { %5135 = vpow2.f32 %v4023_v29 }
 0x27b   :  { %v5112_v33 = vpop.eup %5111 }
 0x27c   :  { %v5114_v37 = vpop.eup %5113  ;;  %v2136_v30 = vmul.f32 %v5112_v33, %v5110_v23 }
 0x27d   :  { %v5116_v50 = vpop.eup %5115 }
 0x27e   :  { %v5118_v43 = vpop.eup %5117  ;;  %v2133_v40 = vmul.f32 %v5116_v50, %v5114_v37 }
 0x27f   :  { %v5120_v55 = vpop.eup %5119 }
 0x280   :  { %v5122_v52 = vpop.eup %5121  ;;  %v2130_v24 = vmul.f32 %v5120_v55, %v6443_v39 }
 0x281   :  { %v5124_v49 = vpop.eup %5123  ;;  %v2135_v34 = vmul.f32 %v5122_v52, %v5118_v43 }
 0x282   :  { %v5126_v2 = vpop.eup %5125  ;;  %v6630_v46 = vadd.f32 %v2134_v26, %v2130_v24  ;;  %v2129_v1 = vmul.f32 %v5124_v49, %v6450_v28  ;;  %v6648_v49 = vld [vmem:[%s7271_s2 + $0x8] sm:$0xff] }
 0x283   :  { %v5128_v56 = vpop.eup %5127  ;;  %v2118_v20 = vadd.f32 1.0, %v5126_v2  ;;  %v6655_v2 = vld [vmem:[%s7271_s2 + $0x10] sm:$0xff] }
 0x284   :  { %v5130_v38 = vpop.eup %5129  ;;  %v2132_v42 = vmul.f32 %v5128_v56, %v6447_v35  ;;  %5137 = vtanh.f32 %v6630_v46  ;;  %v6638_v45 = vadd.f32 %v2133_v40, %v2129_v1  ;;  %v7374_v56 = vld [vmem:[#allocation9_spill] sm:$0xff]  ;;  %v7375_v40 = vld [vmem:[#allocation10_spill] sm:$0xff] }
 0x285   :  { %v5132_v27 = vpop.eup %5131  ;;  %v2120_v61 = vadd.f32 1.0, %v5130_v38  ;;  %v619_v38 = vadd.f32 %v7374_v56, %v6347_v0 }
 0x286   :  { %v5134_v32 = vpop.eup %5133  ;;  %v6634_v22 = vadd.f32 %v2136_v30, %v2132_v42  ;;  %v2131_v47 = vmul.f32 %v5132_v27, %v6452_v31 }
 0x287   :  { %v5136_v39 = vpop.eup %5135  ;;  %5139 = vrcp.f32 %v2120_v61  ;;  %v2119_v29 = vadd.f32 1.0, %v5134_v32  ;;  %v634_v61 = vadd.f32 %v7375_v40, %v6367_v53 }
 0x288   :  { %v6640_v28 = vadd.f32 %v2135_v34, %v2131_v47  ;;  %5141 = vtanh.f32 %v6634_v22  ;;  %v2117_v35 = vadd.f32 1.0, %v5136_v39  ;;  %v7376_v39 = vld [vmem:[#allocation11_spill] sm:$0xff] }
 0x289   :  { %5143 = vrcp.f32 %v2119_v29 }
 0x28a   :  { %5145 = vtanh.f32 %v6640_v28 }
 0x28b   :  { %5147 = vrcp.f32 %v2118_v20  ;;  %v629_v20 = vadd.f32 %v7376_v39, %v6379_v54  ;;  %v7383_v39 = vld [vmem:[#allocation18_spill] sm:$0xff] }
 0x28c   :  { %5149 = vtanh.f32 %v6638_v45 }
 0x28d   :  { %5151 = vrcp.f32 %v2117_v35 }
 0x291   :  { %v5138_v31 = vpop.eup %5137 }
 0x294   :  { %v5140_v4 = vpop.eup %5139 }
 0x295   :  { %v5142_v26 = vpop.eup %5141 }
 0x296   :  { %v5144_v23 = vpop.eup %5143  ;;  %v2148_v33 = vmul.f32 %v5142_v26, %v5140_v4  ;;  %v7377_v4 = vld [vmem:[#allocation12_spill] sm:$0xff] }
 0x297   :  { %v5146_v37 = vpop.eup %5145  ;;  %v644_v26 = vadd.f32 %v7377_v4, %v6345_v63 }
 0x298   :  { %v5148_v30 = vpop.eup %5147  ;;  %4826 = vmatprep.subr.mxu0 %v2148_v33  ;;  %v2147_v50 = vmul.f32 %v5146_v37, %v5144_v23 }
 0x299   :  { %v5150_v43 = vpop.eup %5149  ;;  %4827 = vmatpush3.msra.mxu0 %v2148_v33  ;;  %v2146_v55 = vmul.f32 %v5148_v30, %v5138_v31  ;;  %v7378_v30 = vld [vmem:[#allocation13_spill] sm:$0xff] }
 0x29a   :  { %4828 = vmatprep.subr.mxu0 %v2147_v50  ;;  %v5152_v52 = vpop.eup %5151 }
 0x29b   :  { %4829 = vmatpush3.msra.mxu0 %v2147_v50  ;;  %v2145_v24 = vmul.f32 %v5152_v52, %v5150_v43  ;;  %v639_v50 = vadd.f32 %v7378_v30, %v6357_v58  ;;  %v7384_v30 = vld [vmem:[#allocation19_spill] sm:$0xff] }
 0x29c   :  { %4830 = vmatprep.subr.mxu0 %v2146_v55 }
 0x29d   :  { %4831 = vmatpush3.msra.mxu0 %v2146_v55 }
 0x29e   :  { %4832 = vmatprep.subr.mxu0 %v2145_v24 }
 0x29f   :  { %4833 = vmatpush3.msra.mxu0 %v2145_v24  ;;  %v7379_v24 = vld [vmem:[#allocation14_spill] sm:$0xff] }
 0x2a0   :  { %4835 = vmatmul.mubr.msk.f32.vlgmr.msra.gmra.mxu0 %vm1570_vm2, %v6648_v49 }
 0x2a1   :  { %4837 = vmatprep.mubr.msk.f32.mxu0 %vm1570_vm2, %v6655_v2 }
 0x2a4   :  { %4838 = vmatmul.mubr.msk.f32.gmra.mxu0 %vm1570_vm2, %v6143_v5  ;;  %v6688_v5 = vld [vmem:[%s7271_s2] sm:$0xff] }
 0x2a5   :  { %4840 = vmatprep.mubr.msk.f32.mxu0 %vm1570_vm2, %v6148_v6  ;;  %v7371_v6 = vld [vmem:[#allocation6_spill] sm:$0xff] }
 0x2a8   :  { %4841 = vmatmul.mubr.msk.f32.gmra.mxu0 %vm1570_vm2, %v6157_v7  ;;  %v614_v7 = vadd.f32 %v7371_v6, %v6355_v57  ;;  %v654_v6 = vadd.f32 %v7379_v24, %v6397_v48 }
 0x2a9   :  { %4843 = vmatprep.mubr.msk.f32.mxu0 %vm1570_vm2, %v6162_v8 }
 0x2ac   :  { %4844 = vmatmul.mubr.msk.f32.gmra.mxu0 %vm1570_vm2, %v6171_v9  ;;  %v7372_v9 = vld [vmem:[#allocation7_spill] sm:$0xff] }
 0x2ad   :  { %4846 = vmatprep.mubr.msk.f32.mxu0 %vm1570_vm2, %v6176_v10  ;;  %v609_v10 = vadd.f32 %v7372_v9, %v6365_v62 }
 0x2b0   :  { %4847 = vmatmul.mubr.msk.f32.gmra.mxu0 %vm1570_vm2, %v6185_v11 }
 0x2b1   :  { %4849 = vmatprep.mubr.msk.f32.mxu0 %vm1570_vm2, %v6190_v12 }
 0x2b4   :  { %4850 = vmatmul.mubr.msk.f32.gmra.mxu0 %vm1570_vm2, %v6199_v13  ;;  %v7373_v13 = vld [vmem:[#allocation8_spill] sm:$0xff] }
 0x2b5   :  { %4852 = vmatprep.mubr.msk.f32.mxu0 %vm1570_vm2, %v6204_v14  ;;  %v624_v14 = vadd.f32 %v7373_v13, %v6337_v59 }
 0x2b8   :  { %4853 = vmatmul.mubr.msk.f32.gmra.mxu0 %vm1570_vm2, %v6213_v15 }
 0x2b9   :  { %4855 = vmatprep.mubr.msk.f32.mxu0 %vm1570_vm2, %v6218_v16 }
 0x2bc   :  { %4856 = vmatmul.mubr.msk.f32.gmra.mxu0 %vm1570_vm2, %v6227_v17 }
 0x2bd   :  { %4898 = vmatprep.mubr.msk.f32.mxu0 %vm1570_vm2, %v6688_v5 }
 0x360   :  { %v4836_v8 = vpop.f32.mrf.mxu0 }
 0x361   :  { %v2311_v11 = vadd.f32 %v4836_v8, %v614_v7 }
 0x362   :  { %v2231_v12 = vpop.f32.mrf.mxu0 }
 0x363   :  { %v4044_v15 = vmul.f32 -1.442695, %v2311_v11  ;;  %v2310_v16 = vadd.f32 %v2231_v12, %v609_v10  ;;  %v7380_v10 = vld [vmem:[#allocation15_spill] sm:$0xff] }
 0x364   :  { %v4839_v17 = vpop.f32.mrf.mxu0  ;;  %v649_v11 = vadd.f32 %v7380_v10, %v6409_v21 }
 0x365   :  { %5153 = vpow2.f32 %v4044_v15  ;;  %v4043_v1 = vmul.f32 -1.442695, %v2310_v16  ;;  %v2313_v42 = vadd.f32 %v4839_v17, %v624_v14  ;;  %v7381_v16 = vld [vmem:[#allocation16_spill] sm:$0xff] }
 0x366   :  { %v2241_v27 = vpop.f32.mrf.mxu0  ;;  %v664_v17 = vadd.f32 %v7381_v16, %v6377_v51 }
 0x367   :  { %5155 = vpow2.f32 %v4043_v1  ;;  %v4046_v32 = vmul.f32 -1.442695, %v2313_v42  ;;  %v2312_v47 = vadd.f32 %v2241_v27, %v619_v38  ;;  %v7382_v27 = vld [vmem:[#allocation17_spill] sm:$0xff] }
 0x368   :  { %v4842_v34 = vpop.f32.mrf.mxu0  ;;  %v659_v40 = vadd.f32 %v7382_v27, %v6387_v18 }
 0x369   :  { %5157 = vpow2.f32 %v4046_v32  ;;  %v4045_v29 = vmul.f32 -1.442695, %v2312_v47  ;;  %v2315_v35 = vadd.f32 %v4842_v34, %v634_v61 }
 0x36a   :  { %v2251_v31 = vpop.f32.mrf.mxu0 }
 0x36b   :  { %5159 = vpow2.f32 %v4045_v29  ;;  %v4048_v23 = vmul.f32 -1.442695, %v2315_v35  ;;  %v2314_v33 = vadd.f32 %v2251_v31, %v629_v20  ;;  %v674_v20 = vadd.f32 %v7383_v39, %v6411_v25 }
 0x36c   :  { %v4845_v37 = vpop.f32.mrf.mxu0 }
 0x36d   :  { %5161 = vpow2.f32 %v4048_v23  ;;  %v4047_v43 = vmul.f32 -1.442695, %v2314_v33  ;;  %v2317_v55 = vadd.f32 %v4845_v37, %v644_v26 }
 0x36e   :  { %v2261_v52 = vpop.f32.mrf.mxu0 }
 0x36f   :  { %5163 = vpow2.f32 %v4047_v43  ;;  %v4050_v7 = vmul.f32 -1.442695, %v2317_v55  ;;  %v2316_v8 = vadd.f32 %v2261_v52, %v639_v50  ;;  %v669_v50 = vadd.f32 %v7384_v30, %v6423_v41  ;;  %v7385_v43 = vld [vmem:[#allocation20_spill] sm:$0xff] }
 0x370   :  { %v4848_v9 = vpop.f32.mrf.mxu0  ;;  %v684_v55 = vadd.f32 %v7385_v43, %v6389_v44 }
 0x371   :  { %5165 = vpow2.f32 %v4050_v7  ;;  %v4049_v12 = vmul.f32 -1.442695, %v2316_v8  ;;  %v2319_v13 = vadd.f32 %v4848_v9, %v654_v6  ;;  %v7386_v6 = vld [vmem:[#allocation21_spill] sm:$0xff] }
 0x372   :  { %v5154_v14 = vpop.eup %5153  ;;  %v2271_v15 = vpop.f32.mrf.mxu0  ;;  %v679_v7 = vadd.f32 %v7386_v6, %v7370_v36 }
 0x373   :  { %v2339_v56 = vadd.f32 1.0, %v5154_v14  ;;  %5167 = vpow2.f32 %v4049_v12  ;;  %v2318_v38 = vadd.f32 %v2271_v15, %v649_v11 }
 0x374   :  { %v5156_v1 = vpop.eup %5155  ;;  %5169 = vtanh.f32 %v2319_v13  ;;  %v4851_v42 = vpop.f32.mrf.mxu0 }
 0x375   :  { %5171 = vrcp.f32 %v2339_v56  ;;  %v2338_v61 = vadd.f32 1.0, %v5156_v1  ;;  %v2321_v32 = vadd.f32 %v4851_v42, %v664_v17 }
 0x376   :  { %v5158_v47 = vpop.eup %5157  ;;  %5173 = vtanh.f32 %v2318_v38  ;;  %v2281_v34 = vpop.f32.mrf.mxu0 }
 0x377   :  { %5175 = vrcp.f32 %v2338_v61  ;;  %v2341_v29 = vadd.f32 1.0, %v5158_v47  ;;  %v2320_v35 = vadd.f32 %v2281_v34, %v659_v40 }
 0x378   :  { %v5160_v31 = vpop.eup %5159  ;;  %5177 = vtanh.f32 %v2321_v32  ;;  %v4854_v4 = vpop.f32.mrf.mxu0 }
 0x379   :  { %5179 = vrcp.f32 %v2341_v29  ;;  %v2340_v26 = vadd.f32 1.0, %v5160_v31  ;;  %v2323_v23 = vadd.f32 %v4854_v4, %v674_v20 }
 0x37a   :  { %v5162_v33 = vpop.eup %5161  ;;  %5181 = vtanh.f32 %v2320_v35  ;;  %v2291_v37 = vpop.f32.mrf.mxu0 }
 0x37b   :  { %5183 = vrcp.f32 %v2340_v26  ;;  %v2363_v52 = vadd.f32 1.0, %v5162_v33  ;;  %v4052_v8 = vmul.f32 -1.442695, %v2323_v23  ;;  %v2322_v11 = vadd.f32 %v2291_v37, %v669_v50 }
 0x37c   :  { %v5164_v24 = vpop.eup %5163  ;;  %v4857_v9 = vpop.f32.mrf.mxu0 }
 0x37d   :  { %5185 = vrcp.f32 %v2363_v52  ;;  %v2362_v10 = vadd.f32 1.0, %v5164_v24  ;;  %v2325_v12 = vadd.f32 %v4857_v9, %v684_v55  ;;  %v4051_v42 = vmul.f32 -1.442695, %v2322_v11 }
 0x37e   :  { %v5166_v13 = vpop.eup %5165  ;;  %v2301_v14 = vpop.f32.mrf.mxu0 }
 0x37f   :  { %5187 = vrcp.f32 %v2362_v10  ;;  %v2365_v15 = vadd.f32 1.0, %v5166_v13  ;;  %v4054_v16 = vmul.f32 -1.442695, %v2325_v12  ;;  %v2324_v17 = vadd.f32 %v2301_v14, %v679_v7 }
 0x380   :  { %v5168_v56 = vpop.eup %5167  ;;  %5189 = vpow2.f32 %v4052_v8 }
 0x381   :  { %v5170_v38 = vpop.eup %5169  ;;  %5191 = vrcp.f32 %v2365_v15  ;;  %v2364_v1 = vadd.f32 1.0, %v5168_v56  ;;  %v4053_v27 = vmul.f32 -1.442695, %v2324_v17 }
 0x382   :  { %v5172_v40 = vpop.eup %5171  ;;  %5193 = vpow2.f32 %v4054_v16 }
 0x383   :  { %v5174_v61 = vpop.eup %5173  ;;  %5195 = vrcp.f32 %v2364_v1  ;;  %v2407_v32 = vmul.f32 %v5172_v40, %v5170_v38 }
 0x384   :  { %v5176_v47 = vpop.eup %5175  ;;  %5197 = vpow2.f32 %v4053_v27 }
 0x385   :  { %v5178_v34 = vpop.eup %5177  ;;  %v2406_v39 = vmul.f32 %v5176_v47, %v5174_v61  ;;  %5199 = vpow2.f32 %v4051_v42  ;;  %v6747_v61 = vld [vmem:[%s7271_s2 + $0x18] sm:$0xff]  ;;  %v6761_v47 = vld [vmem:[%s7271_s2 + $0x28] sm:$0xff] }
 0x386   :  { %v5180_v20 = vpop.eup %5179 }
 0x387   :  { %v5182_v29 = vpop.eup %5181  ;;  %v2409_v35 = vmul.f32 %v5180_v20, %v5178_v34  ;;  %v6768_v34 = vld [vmem:[%s7271_s2 + $0x30] sm:$0xff]  ;;  %v6782_v20 = vld [vmem:[%s7271_s2 + $0x40] sm:$0xff] }
 0x388   :  { %v5184_v31 = vpop.eup %5183 }
 0x389   :  { %v2408_v4 = vmul.f32 %v5184_v31, %v5182_v29  ;;  %v6789_v29 = vld [vmem:[%s7271_s2 + $0x48] sm:$0xff]  ;;  %v6803_v31 = vld [vmem:[%s7271_s2 + $0x58] sm:$0xff] }
 0x38a   :  { %v5186_v26 = vpop.eup %5185 }
 0x38b   :  { %v2403_v23 = vmul.f32 %v5186_v26, %v6630_v46  ;;  %v6817_v26 = vld [vmem:[%s7271_s2 + $0x68] sm:$0xff] }
 0x38c   :  { %v5188_v33 = vpop.eup %5187 }
 0x38d   :  { %v5190_v37 = vpop.eup %5189  ;;  %v6725_v30 = vadd.f32 %v2407_v32, %v2403_v23  ;;  %v2402_v50 = vmul.f32 %v5188_v33, %v6638_v45  ;;  %v6754_v32 = vld [vmem:[%s7271_s2 + $0x20] sm:$0xff]  ;;  %v6824_v23 = vld [vmem:[%s7271_s2 + $0x70] sm:$0xff]  ;;  %v6831_v33 = vld [vmem:[%s7271_s2 + $0x78] sm:$0xff] }
 0x38e   :  { %v5192_v43 = vpop.eup %5191  ;;  %v2391_v11 = vadd.f32 1.0, %v5190_v37  ;;  %v784_v37 = vadd.f32 %v6473_v19, %v6355_v57  ;;  %v7388_v19 = vld [vmem:[#allocation56_spill] sm:$0xff] }
 0x38f   :  { %v5194_v55 = vpop.eup %5193  ;;  %v6728_v52 = vadd.f32 %v2406_v39, %v2402_v50  ;;  %v2405_v24 = vmul.f32 %v5192_v43, %v6634_v22  ;;  %5201 = vtanh.f32 %v6725_v30  ;;  %v6775_v39 = vld [vmem:[%s7271_s2 + $0x38] sm:$0xff]  ;;  %v779_v43 = vadd.f32 %v6479_v60, %v6365_v62 }
 0x390   :  { %v5196_v6 = vpop.eup %5195  ;;  %v2393_v7 = vadd.f32 1.0, %v5194_v55 }
 0x391   :  { %v5198_v8 = vpop.eup %5197  ;;  %v6731_v9 = vadd.f32 %v2409_v35, %v2405_v24  ;;  %v2404_v10 = vmul.f32 %v5196_v6, %v6640_v28  ;;  %v6796_v35 = vld [vmem:[%s7271_s2 + $0x50] sm:$0xff]  ;;  %v794_v6 = vadd.f32 %v6485_v3, %v6337_v59 }
 0x392   :  { %v5200_v46 = vpop.eup %5199  ;;  %5203 = vrcp.f32 %v2393_v7  ;;  %v2392_v12 = vadd.f32 1.0, %v5198_v8 }
 0x393   :  { %v6735_v45 = vadd.f32 %v2408_v4, %v2404_v10  ;;  %5205 = vtanh.f32 %v6731_v9  ;;  %v2390_v13 = vadd.f32 1.0, %v5200_v46  ;;  %v6810_v4 = vld [vmem:[%s7271_s2 + $0x60] sm:$0xff]  ;;  %v7387_v46 = vld [vmem:[#allocation55_spill] sm:$0xff] }
 0x394   :  { %5207 = vrcp.f32 %v2392_v12 }
 0x395   :  { %5209 = vtanh.f32 %v6735_v45 }
 0x396   :  { %5211 = vrcp.f32 %v2391_v11  ;;  %v789_v11 = vadd.f32 %v7387_v46, %v6347_v0 }
 0x397   :  { %5213 = vtanh.f32 %v6728_v52 }
 0x398   :  { %5215 = vrcp.f32 %v2390_v13 }
 0x39c   :  { %v5202_v22 = vpop.eup %5201 }
 0x39f   :  { %v5204_v28 = vpop.eup %5203 }
 0x3a0   :  { %v5206_v14 = vpop.eup %5205 }
 0x3a1   :  { %v5208_v15 = vpop.eup %5207  ;;  %v2421_v16 = vmul.f32 %v5206_v14, %v5204_v28  ;;  %v804_v28 = vadd.f32 %v7388_v19, %v6367_v53 }
 0x3a2   :  { %v5210_v17 = vpop.eup %5209 }
 0x3a3   :  { %v5212_v56 = vpop.eup %5211  ;;  %4858 = vmatprep.subr.mxu1 %v2421_v16  ;;  %v2420_v38 = vmul.f32 %v5210_v17, %v5208_v15 }
 0x3a4   :  { %v5214_v1 = vpop.eup %5213  ;;  %4859 = vmatpush3.msra.mxu1 %v2421_v16  ;;  %v2419_v42 = vmul.f32 %v5212_v56, %v5202_v22  ;;  %v7389_v16 = vld [vmem:[#allocation57_spill] sm:$0xff] }
 0x3a5   :  { %4860 = vmatprep.subr.mxu1 %v2420_v38  ;;  %v5216_v27 = vpop.eup %5215  ;;  %v799_v3 = vadd.f32 %v7389_v16, %v6379_v54 }
 0x3a6   :  { %4861 = vmatpush3.msra.mxu1 %v2420_v38  ;;  %v2418_v40 = vmul.f32 %v5216_v27, %v5214_v1  ;;  %v7390_v1 = vld [vmem:[#allocation58_spill] sm:$0xff] }
 0x3a7   :  { %4862 = vmatprep.subr.mxu1 %v2419_v42 }
 0x3a8   :  { %4863 = vmatpush3.msra.mxu1 %v2419_v42  ;;  %v814_v42 = vadd.f32 %v7390_v1, %v6345_v63 }
 0x3a9   :  { %4864 = vmatprep.subr.mxu1 %v2418_v40 }
 0x3aa   :  { %4865 = vmatpush3.msra.mxu1 %v2418_v40 }
 0x3ab   :  { %4867 = vmatmul.mubr.msk.f32.vlgmr.msra.gmra.mxu1 %vm1570_vm2, %v6648_v49 }
 0x3ac   :  { %4869 = vmatprep.mubr.msk.f32.mxu1 %vm1570_vm2, %v6655_v2 }
 0x3af   :  { %4870 = vmatmul.mubr.msk.f32.gmra.mxu1 %vm1570_vm2, %v6747_v61 }
 0x3b0   :  { %4872 = vmatprep.mubr.msk.f32.mxu1 %vm1570_vm2, %v6754_v32 }
 0x3b3   :  { %4873 = vmatmul.mubr.msk.f32.gmra.mxu1 %vm1570_vm2, %v6761_v47 }
 0x3b4   :  { %4875 = vmatprep.mubr.msk.f32.mxu1 %vm1570_vm2, %v6768_v34 }
 0x3b7   :  { %4876 = vmatmul.mubr.msk.f32.gmra.mxu1 %vm1570_vm2, %v6775_v39 }
 0x3b8   :  { %4878 = vmatprep.mubr.msk.f32.mxu1 %vm1570_vm2, %v6782_v20 }
 0x3bb   :  { %4879 = vmatmul.mubr.msk.f32.gmra.mxu1 %vm1570_vm2, %v6789_v29 }
 0x3bc   :  { %4881 = vmatprep.mubr.msk.f32.mxu1 %vm1570_vm2, %v6796_v35 }
 0x3bf   :  { %4882 = vmatmul.mubr.msk.f32.gmra.mxu1 %vm1570_vm2, %v6803_v31 }
 0x3c0   :  { %4884 = vmatprep.mubr.msk.f32.mxu1 %vm1570_vm2, %v6810_v4 }
 0x3c3   :  { %4885 = vmatmul.mubr.msk.f32.gmra.mxu1 %vm1570_vm2, %v6817_v26 }
 0x3c4   :  { %4887 = vmatprep.mubr.msk.f32.mxu1 %vm1570_vm2, %v6824_v23 }
 0x3c7   :  { %4888 = vmatmul.mubr.msk.f32.gmra.mxu1 %vm1570_vm2, %v6831_v33 }
 0x3c8   :  { %4930 = vmatprep.mubr.msk.f32.mxu1 %vm1570_vm2, %v6688_v5 }
 0x46b   :  { %v4868_v50 = vpop.f32.mrf.mxu1 }
 0x46c   :  { %v2584_v55 = vadd.f32 %v4868_v50, %v784_v37  ;;  %v7391_v50 = vld [vmem:[#allocation59_spill] sm:$0xff] }
 0x46d   :  { %v2504_v24 = vpop.f32.mrf.mxu1 }
 0x46e   :  { %v4072_v7 = vmul.f32 -1.442695, %v2584_v55  ;;  %v2583_v8 = vadd.f32 %v2504_v24, %v779_v43  ;;  %v809_v43 = vadd.f32 %v7391_v50, %v6357_v58  ;;  %v7396_v50 = vld [vmem:[#allocation64_spill] sm:$0xff] }
 0x46f   :  { %v4871_v10 = vpop.f32.mrf.mxu1 }
 0x470   :  { %5217 = vpow2.f32 %v4072_v7  ;;  %v4071_v12 = vmul.f32 -1.442695, %v2583_v8  ;;  %v2586_v13 = vadd.f32 %v4871_v10, %v794_v6  ;;  %v7392_v7 = vld [vmem:[#allocation60_spill] sm:$0xff] }
 0x471   :  { %v2514_v22 = vpop.f32.mrf.mxu1  ;;  %v824_v8 = vadd.f32 %v7392_v7, %v6397_v48 }
 0x472   :  { %5219 = vpow2.f32 %v4071_v12  ;;  %v4074_v60 = vmul.f32 -1.442695, %v2586_v13  ;;  %v2585_v14 = vadd.f32 %v2514_v22, %v789_v11  ;;  %v7393_v12 = vld [vmem:[#allocation61_spill] sm:$0xff] }
 0x473   :  { %v4874_v15 = vpop.f32.mrf.mxu1  ;;  %v819_v13 = vadd.f32 %v7393_v12, %v6409_v21  ;;  %v7397_v12 = vld [vmem:[#allocation65_spill] sm:$0xff] }
 0x474   :  { %5221 = vpow2.f32 %v4074_v60  ;;  %v4073_v17 = vmul.f32 -1.442695, %v2585_v14  ;;  %v2588_v56 = vadd.f32 %v4874_v15, %v804_v28  ;;  %v7394_v14 = vld [vmem:[#allocation62_spill] sm:$0xff] }
 0x475   :  { %v2524_v38 = vpop.f32.mrf.mxu1  ;;  %v834_v15 = vadd.f32 %v7394_v14, %v6377_v51  ;;  %v7399_v14 = vld [vmem:[#allocation67_spill] sm:$0xff] }
 0x476   :  { %5223 = vpow2.f32 %v4073_v17  ;;  %v4076_v27 = vmul.f32 -1.442695, %v2588_v56  ;;  %v2587_v40 = vadd.f32 %v2524_v38, %v799_v3  ;;  %v7395_v38 = vld [vmem:[#allocation63_spill] sm:$0xff] }
 0x477   :  { %v4877_v37 = vpop.f32.mrf.mxu1  ;;  %v829_v1 = vadd.f32 %v7395_v38, %v6387_v18 }
 0x478   :  { %5225 = vpow2.f32 %v4076_v27  ;;  %v4075_v55 = vmul.f32 -1.442695, %v2587_v40  ;;  %v2590_v24 = vadd.f32 %v4877_v37, %v814_v42 }
 0x479   :  { %v2534_v6 = vpop.f32.mrf.mxu1 }
 0x47a   :  { %5227 = vpow2.f32 %v4075_v55  ;;  %v4078_v10 = vmul.f32 -1.442695, %v2590_v24  ;;  %v2589_v46 = vadd.f32 %v2534_v6, %v809_v43  ;;  %v844_v43 = vadd.f32 %v7396_v50, %v6411_v25 }
 0x47b   :  { %v4880_v11 = vpop.f32.mrf.mxu1 }
 0x47c   :  { %5229 = vpow2.f32 %v4078_v10  ;;  %v4077_v22 = vmul.f32 -1.442695, %v2589_v46  ;;  %v2592_v19 = vadd.f32 %v4880_v11, %v824_v8 }
 0x47d   :  { %v5218_v28 = vpop.eup %5217  ;;  %v2544_v60 = vpop.f32.mrf.mxu1 }
 0x47e   :  { %v2612_v16 = vadd.f32 1.0, %v5218_v28  ;;  %5231 = vpow2.f32 %v4077_v22  ;;  %v2591_v3 = vadd.f32 %v2544_v60, %v819_v13  ;;  %v839_v13 = vadd.f32 %v7397_v12, %v6423_v41  ;;  %v7398_v22 = vld [vmem:[#allocation66_spill] sm:$0xff] }
 0x47f   :  { %v5220_v17 = vpop.eup %5219  ;;  %5233 = vtanh.f32 %v2592_v19  ;;  %v4883_v56 = vpop.f32.mrf.mxu1  ;;  %v854_v19 = vadd.f32 %v7398_v22, %v6389_v44 }
 0x480   :  { %5235 = vrcp.f32 %v2612_v16  ;;  %v2611_v42 = vadd.f32 1.0, %v5220_v17  ;;  %v2594_v27 = vadd.f32 %v4883_v56, %v834_v15  ;;  %v849_v15 = vadd.f32 %v7399_v14, %v7370_v36 }
 0x481   :  { %v5222_v40 = vpop.eup %5221  ;;  %5237 = vtanh.f32 %v2591_v3  ;;  %v2554_v37 = vpop.f32.mrf.mxu1 }
 0x482   :  { %5239 = vrcp.f32 %v2611_v42  ;;  %v2614_v55 = vadd.f32 1.0, %v5222_v40  ;;  %v2593_v24 = vadd.f32 %v2554_v37, %v829_v1 }
 0x483   :  { %v5224_v6 = vpop.eup %5223  ;;  %5241 = vtanh.f32 %v2594_v27  ;;  %v4886_v7 = vpop.f32.mrf.mxu1 }
 0x484   :  { %5243 = vrcp.f32 %v2614_v55  ;;  %v2613_v8 = vadd.f32 1.0, %v5224_v6  ;;  %v2596_v10 = vadd.f32 %v4886_v7, %v844_v43 }
 0x485   :  { %v5226_v46 = vpop.eup %5225  ;;  %5245 = vtanh.f32 %v2593_v24  ;;  %v2564_v11 = vpop.f32.mrf.mxu1 }
 0x486   :  { %5247 = vrcp.f32 %v2613_v8  ;;  %v2636_v28 = vadd.f32 1.0, %v5226_v46  ;;  %v4080_v16 = vmul.f32 -1.442695, %v2596_v10  ;;  %v2595_v56 = vadd.f32 %v2564_v11, %v839_v13 }
 0x487   :  { %v5228_v60 = vpop.eup %5227  ;;  %v4889_v3 = vpop.f32.mrf.mxu1 }
 0x488   :  { %5249 = vrcp.f32 %v2636_v28  ;;  %v2635_v17 = vadd.f32 1.0, %v5228_v60  ;;  %v2598_v38 = vadd.f32 %v4889_v3, %v854_v19  ;;  %v4079_v24 = vmul.f32 -1.442695, %v2595_v56 }
 0x489   :  { %v5230_v1 = vpop.eup %5229  ;;  %v2574_v42 = vpop.f32.mrf.mxu1 }
 0x48a   :  { %5251 = vrcp.f32 %v2635_v17  ;;  %v2638_v27 = vadd.f32 1.0, %v5230_v1  ;;  %v4082_v40 = vmul.f32 -1.442695, %v2598_v38  ;;  %v2597_v37 = vadd.f32 %v2574_v42, %v849_v15 }
 0x48b   :  { %v5232_v50 = vpop.eup %5231  ;;  %5253 = vpow2.f32 %v4080_v16 }
 0x48c   :  { %v5234_v43 = vpop.eup %5233  ;;  %5255 = vrcp.f32 %v2638_v27  ;;  %v2637_v55 = vadd.f32 1.0, %v5232_v50  ;;  %v4081_v6 = vmul.f32 -1.442695, %v2597_v37 }
 0x48d   :  { %v5236_v7 = vpop.eup %5235  ;;  %5257 = vpow2.f32 %v4082_v40 }
 0x48e   :  { %v5238_v8 = vpop.eup %5237  ;;  %5259 = vrcp.f32 %v2637_v55  ;;  %v2680_v10 = vmul.f32 %v5236_v7, %v5234_v43 }
 0x48f   :  { %v5240_v46 = vpop.eup %5239  ;;  %5261 = vpow2.f32 %v4081_v6 }
 0x490   :  { %v5242_v11 = vpop.eup %5241  ;;  %v2679_v12 = vmul.f32 %v5240_v46, %v5238_v8  ;;  %5263 = vpow2.f32 %v4079_v24 }
 0x491   :  { %v5244_v13 = vpop.eup %5243 }
 0x492   :  { %v5246_v22 = vpop.eup %5245  ;;  %v2682_v19 = vmul.f32 %v5244_v13, %v5242_v11 }
 0x493   :  { %v5248_v28 = vpop.eup %5247 }
 0x494   :  { %v2681_v60 = vmul.f32 %v5248_v28, %v5246_v22 }
 0x495   :  { %v5250_v14 = vpop.eup %5249 }
 0x496   :  { %v2676_v15 = vmul.f32 %v5250_v14, %v6725_v30 }
 0x497   :  { %v5252_v16 = vpop.eup %5251 }
 0x498   :  { %v5254_v3 = vpop.eup %5253  ;;  %v6870_v17 = vadd.f32 %v2680_v10, %v2676_v15  ;;  %v2675_v56 = vmul.f32 %v5252_v16, %v6728_v52  ;;  %v7401_v15 = vld [vmem:[#allocation23_spill] sm:$0xff] }
 0x499   :  { %v5256_v38 = vpop.eup %5255  ;;  %v2664_v24 = vadd.f32 1.0, %v5254_v3  ;;  %v949_v16 = vadd.f32 %v7401_v15, %v6365_v62 }
 0x49a   :  { %v5258_v1 = vpop.eup %5257  ;;  %v6873_v42 = vadd.f32 %v2679_v12, %v2675_v56  ;;  %v2678_v27 = vmul.f32 %v5256_v38, %v6731_v9  ;;  %5265 = vtanh.f32 %v6870_v17  ;;  %v7402_v38 = vld [vmem:[#allocation24_spill] sm:$0xff] }
 0x49b   :  { %v5260_v40 = vpop.eup %5259  ;;  %v2666_v37 = vadd.f32 1.0, %v5258_v1  ;;  %v964_v1 = vadd.f32 %v7402_v38, %v6337_v59 }
 0x49c   :  { %v5262_v50 = vpop.eup %5261  ;;  %v6876_v43 = vadd.f32 %v2682_v19, %v2678_v27  ;;  %v2677_v55 = vmul.f32 %v5260_v40, %v6735_v45 }
 0x49d   :  { %v5264_v30 = vpop.eup %5263  ;;  %5267 = vrcp.f32 %v2666_v37  ;;  %v2665_v6 = vadd.f32 1.0, %v5262_v50  ;;  %v7403_v50 = vld [vmem:[#allocation25_spill] sm:$0xff] }
 0x49e   :  { %v6880_v52 = vadd.f32 %v2681_v60, %v2677_v55  ;;  %5269 = vtanh.f32 %v6876_v43  ;;  %v2663_v7 = vadd.f32 1.0, %v5264_v30  ;;  %v959_v55 = vadd.f32 %v7403_v50, %v6347_v0 }
 0x49f   :  { %5271 = vrcp.f32 %v2665_v6  ;;  %v7404_v6 = vld [vmem:[#allocation26_spill] sm:$0xff] }
 0x4a0   :  { %5273 = vtanh.f32 %v6880_v52 }
 0x4a1   :  { %5275 = vrcp.f32 %v2664_v24 }
 0x4a2   :  { %5277 = vtanh.f32 %v6873_v42 }
 0x4a3   :  { %5279 = vrcp.f32 %v2663_v7  ;;  %v974_v7 = vadd.f32 %v7404_v6, %v6367_v53  ;;  %v7410_v6 = vld [vmem:[#allocation32_spill] sm:$0xff] }
 0x4a7   :  { %v5266_v9 = vpop.eup %5265 }
 0x4aa   :  { %v5268_v45 = vpop.eup %5267 }
 0x4ab   :  { %v5270_v8 = vpop.eup %5269 }
 0x4ac   :  { %v5272_v10 = vpop.eup %5271  ;;  %v2694_v46 = vmul.f32 %v5270_v8, %v5268_v45 }
 0x4ad   :  { %v5274_v11 = vpop.eup %5273 }
 0x4ae   :  { %v5276_v12 = vpop.eup %5275  ;;  %4890 = vmatprep.subr.mxu0 %v2694_v46  ;;  %v2693_v13 = vmul.f32 %v5274_v11, %v5272_v10  ;;  %v7405_v10 = vld [vmem:[#allocation27_spill] sm:$0xff] }
 0x4af   :  { %v5278_v22 = vpop.eup %5277  ;;  %4891 = vmatpush3.msra.mxu0 %v2694_v46  ;;  %v2692_v19 = vmul.f32 %v5276_v12, %v5266_v9  ;;  %v969_v46 = vadd.f32 %v7405_v10, %v6379_v54 }
 0x4b0   :  { %4892 = vmatprep.subr.mxu0 %v2693_v13  ;;  %v5280_v28 = vpop.eup %5279 }
 0x4b1   :  { %4893 = vmatpush3.msra.mxu0 %v2693_v13  ;;  %v2691_v60 = vmul.f32 %v5280_v28, %v5278_v22  ;;  %v7406_v22 = vld [vmem:[#allocation28_spill] sm:$0xff] }
 0x4b2   :  { %4894 = vmatprep.subr.mxu0 %v2692_v19 }
 0x4b3   :  { %4895 = vmatpush3.msra.mxu0 %v2692_v19  ;;  %v984_v19 = vadd.f32 %v7406_v22, %v6345_v63 }
 0x4b4   :  { %4896 = vmatprep.subr.mxu0 %v2691_v60 }
 0x4b5   :  { %4897 = vmatpush3.msra.mxu0 %v2691_v60 }
 0x4b6   :  { %4899 = vmatmul.mubr.msk.f32.vlgmr.msra.gmra.mxu0 %vm1570_vm2, %v6648_v49  ;;  %v7400_v49 = vld [vmem:[#allocation22_spill] sm:$0xff] }
 0x4b7   :  { %4901 = vmatprep.mubr.msk.f32.mxu0 %vm1570_vm2, %v6655_v2  ;;  %v954_v2 = vadd.f32 %v7400_v49, %v6355_v57 }
 0x4ba   :  { %4902 = vmatmul.mubr.msk.f32.gmra.mxu0 %vm1570_vm2, %v6747_v61 }
 0x4bb   :  { %4904 = vmatprep.mubr.msk.f32.mxu0 %vm1570_vm2, %v6754_v32 }
 0x4be   :  { %4905 = vmatmul.mubr.msk.f32.gmra.mxu0 %vm1570_vm2, %v6761_v47 }
 0x4bf   :  { %4907 = vmatprep.mubr.msk.f32.mxu0 %vm1570_vm2, %v6768_v34 }
 0x4c2   :  { %4908 = vmatmul.mubr.msk.f32.gmra.mxu0 %vm1570_vm2, %v6775_v39 }
 0x4c3   :  { %4910 = vmatprep.mubr.msk.f32.mxu0 %vm1570_vm2, %v6782_v20 }
 0x4c6   :  { %4911 = vmatmul.mubr.msk.f32.gmra.mxu0 %vm1570_vm2, %v6789_v29 }
 0x4c7   :  { %4913 = vmatprep.mubr.msk.f32.mxu0 %vm1570_vm2, %v6796_v35 }
 0x4ca   :  { %4914 = vmatmul.mubr.msk.f32.gmra.mxu0 %vm1570_vm2, %v6803_v31 }
 0x4cb   :  { %4916 = vmatprep.mubr.msk.f32.mxu0 %vm1570_vm2, %v6810_v4 }
 0x4ce   :  { %4917 = vmatmul.mubr.msk.f32.gmra.mxu0 %vm1570_vm2, %v6817_v26 }
 0x4cf   :  { %4919 = vmatprep.mubr.msk.f32.mxu0 %vm1570_vm2, %v6824_v23 }
 0x4d2   :  { %4920 = vmatmul.mubr.msk.f32.gmra.mxu0 %vm1570_vm2, %v6831_v33 }
 0x4d3   :  { %4962 = vmatprep.mubr.msk.f32.mxu0 %vm1570_vm2, %v6688_v5 }
 0x576   :  { %v4900_v14 = vpop.f32.mrf.mxu0 }
 0x577   :  { %v2857_v3 = vadd.f32 %v4900_v14, %v954_v2  ;;  %v7407_v2 = vld [vmem:[#allocation29_spill] sm:$0xff] }
 0x578   :  { %v2777_v56 = vpop.f32.mrf.mxu0  ;;  %v979_v14 = vadd.f32 %v7407_v2, %v6357_v58 }
 0x579   :  { %v4100_v27 = vmul.f32 -1.442695, %v2857_v3  ;;  %v2856_v40 = vadd.f32 %v2777_v56, %v949_v16  ;;  %v7408_v56 = vld [vmem:[#allocation30_spill] sm:$0xff] }
 0x57a   :  { %v4903_v37 = vpop.f32.mrf.mxu0  ;;  %v994_v38 = vadd.f32 %v7408_v56, %v6397_v48 }
 0x57b   :  { %5281 = vpow2.f32 %v4100_v27  ;;  %v4099_v5 = vmul.f32 -1.442695, %v2856_v40  ;;  %v2859_v30 = vadd.f32 %v4903_v37, %v964_v1  ;;  %v7409_v37 = vld [vmem:[#allocation31_spill] sm:$0xff] }
 0x57c   :  { %v2787_v24 = vpop.f32.mrf.mxu0  ;;  %v989_v50 = vadd.f32 %v7409_v37, %v6409_v21 }
 0x57d   :  { %5283 = vpow2.f32 %v4099_v5  ;;  %v4102_v9 = vmul.f32 -1.442695, %v2859_v30  ;;  %v2858_v45 = vadd.f32 %v2787_v24, %v959_v55 }
 0x57e   :  { %v4906_v8 = vpop.f32.mrf.mxu0 }
 0x57f   :  { %5285 = vpow2.f32 %v4102_v9  ;;  %v4101_v11 = vmul.f32 -1.442695, %v2858_v45  ;;  %v2861_v12 = vadd.f32 %v4906_v8, %v974_v7  ;;  %v1004_v7 = vadd.f32 %v7410_v6, %v6377_v51 }
 0x580   :  { %v2797_v13 = vpop.f32.mrf.mxu0 }
 0x581   :  { %5287 = vpow2.f32 %v4101_v11  ;;  %v4104_v28 = vmul.f32 -1.442695, %v2861_v12  ;;  %v2860_v60 = vadd.f32 %v2797_v13, %v969_v46  ;;  %v7411_v46 = vld [vmem:[#allocation33_spill] sm:$0xff] }
 0x582   :  { %v4909_v49 = vpop.f32.mrf.mxu0  ;;  %v999_v11 = vadd.f32 %v7411_v46, %v6387_v18 }
 0x583   :  { %5289 = vpow2.f32 %v4104_v28  ;;  %v4103_v15 = vmul.f32 -1.442695, %v2860_v60  ;;  %v2863_v16 = vadd.f32 %v4909_v49, %v984_v19  ;;  %v7412_v28 = vld [vmem:[#allocation34_spill] sm:$0xff] }
 0x584   :  { %v2807_v3 = vpop.f32.mrf.mxu0  ;;  %v1014_v60 = vadd.f32 %v7412_v28, %v6411_v25 }
 0x585   :  { %5291 = vpow2.f32 %v4103_v15  ;;  %v4106_v1 = vmul.f32 -1.442695, %v2863_v16  ;;  %v2862_v27 = vadd.f32 %v2807_v3, %v979_v14 }
 0x586   :  { %v4912_v40 = vpop.f32.mrf.mxu0 }
 0x587   :  { %5293 = vpow2.f32 %v4106_v1  ;;  %v4105_v55 = vmul.f32 -1.442695, %v2862_v27  ;;  %v2865_v5 = vadd.f32 %v4912_v40, %v994_v38  ;;  %v7413_v1 = vld [vmem:[#allocation35_spill] sm:$0xff]  ;;  %v7414_v40 = vld [vmem:[#allocation36_spill] sm:$0xff] }
 0x588   :  { %v5282_v30 = vpop.eup %5281  ;;  %v2817_v24 = vpop.f32.mrf.mxu0  ;;  %v1009_v27 = vadd.f32 %v7413_v1, %v6423_v41  ;;  %v1024_v37 = vadd.f32 %v7414_v40, %v6389_v44 }
 0x589   :  { %v2885_v9 = vadd.f32 1.0, %v5282_v30  ;;  %5295 = vpow2.f32 %v4105_v55  ;;  %v2864_v45 = vadd.f32 %v2817_v24, %v989_v50 }
 0x58a   :  { %v5284_v8 = vpop.eup %5283  ;;  %5297 = vtanh.f32 %v2865_v5  ;;  %v4915_v10 = vpop.f32.mrf.mxu0  ;;  %v7415_v5 = vld [vmem:[#allocation37_spill] sm:$0xff] }
 0x58b   :  { %5299 = vrcp.f32 %v2885_v9  ;;  %v2884_v12 = vadd.f32 1.0, %v5284_v8  ;;  %v2867_v13 = vadd.f32 %v4915_v10, %v1004_v7  ;;  %v1019_v30 = vadd.f32 %v7415_v5, %v7370_v36 }
 0x58c   :  { %v5286_v22 = vpop.eup %5285  ;;  %5301 = vtanh.f32 %v2864_v45  ;;  %v2827_v19 = vpop.f32.mrf.mxu0 }
 0x58d   :  { %5303 = vrcp.f32 %v2884_v12  ;;  %v2887_v49 = vadd.f32 1.0, %v5286_v22  ;;  %v2866_v2 = vadd.f32 %v2827_v19, %v999_v11 }
 0x58e   :  { %v5288_v14 = vpop.eup %5287  ;;  %5305 = vtanh.f32 %v2867_v13  ;;  %v4918_v15 = vpop.f32.mrf.mxu0 }
 0x58f   :  { %5307 = vrcp.f32 %v2887_v49  ;;  %v2886_v16 = vadd.f32 1.0, %v5288_v14  ;;  %v2869_v3 = vadd.f32 %v4918_v15, %v1014_v60 }
 0x590   :  { %v5290_v56 = vpop.eup %5289  ;;  %5309 = vtanh.f32 %v2866_v2  ;;  %v2837_v38 = vpop.f32.mrf.mxu0 }
 0x591   :  { %5311 = vrcp.f32 %v2886_v16  ;;  %v2909_v50 = vadd.f32 1.0, %v5290_v56  ;;  %v4108_v24 = vmul.f32 -1.442695, %v2869_v3  ;;  %v2868_v9 = vadd.f32 %v2837_v38, %v1009_v27 }
 0x592   :  { %v5292_v55 = vpop.eup %5291  ;;  %v4921_v6 = vpop.f32.mrf.mxu0 }
 0x593   :  { %5313 = vrcp.f32 %v2909_v50  ;;  %v2908_v7 = vadd.f32 1.0, %v5292_v55  ;;  %v2871_v45 = vadd.f32 %v4921_v6, %v1024_v37  ;;  %v4107_v28 = vmul.f32 -1.442695, %v2868_v9 }
 0x594   :  { %v5294_v8 = vpop.eup %5293  ;;  %v2847_v10 = vpop.f32.mrf.mxu0 }
 0x595   :  { %5315 = vrcp.f32 %v2908_v7  ;;  %v2911_v46 = vadd.f32 1.0, %v5294_v8  ;;  %v4110_v11 = vmul.f32 -1.442695, %v2871_v45  ;;  %v2870_v12 = vadd.f32 %v2847_v10, %v1019_v30 }
 0x596   :  { %v5296_v13 = vpop.eup %5295  ;;  %5317 = vpow2.f32 %v4108_v24 }
 0x597   :  { %v5298_v22 = vpop.eup %5297  ;;  %5319 = vrcp.f32 %v2911_v46  ;;  %v2910_v19 = vadd.f32 1.0, %v5296_v13  ;;  %v4109_v60 = vmul.f32 -1.442695, %v2870_v12 }
 0x598   :  { %v5300_v49 = vpop.eup %5299  ;;  %5321 = vpow2.f32 %v4110_v11 }
 0x599   :  { %v5302_v2 = vpop.eup %5301  ;;  %5323 = vrcp.f32 %v2910_v19  ;;  %v2953_v14 = vmul.f32 %v5300_v49, %v5298_v22 }
 0x59a   :  { %v5304_v15 = vpop.eup %5303  ;;  %5325 = vpow2.f32 %v4109_v60 }
 0x59b   :  { %v5306_v16 = vpop.eup %5305  ;;  %v2952_v3 = vmul.f32 %v5304_v15, %v5302_v2  ;;  %5327 = vpow2.f32 %v4107_v28 }
 0x59c   :  { %v5308_v56 = vpop.eup %5307 }
 0x59d   :  { %v5310_v38 = vpop.eup %5309  ;;  %v2955_v1 = vmul.f32 %v5308_v56, %v5306_v16 }
 0x59e   :  { %v5312_v27 = vpop.eup %5311 }
 0x59f   :  { %v2954_v40 = vmul.f32 %v5312_v27, %v5310_v38  ;;  %v6975_v27 = vld [vmem:[%s7271_s2 + $0x10] sm:$0xff] }
 0x5a0   :  { %v5314_v37 = vpop.eup %5313 }
 0x5a1   :  { %v2949_v50 = vmul.f32 %v5314_v37, %v6870_v17 }
 0x5a2   :  { %v5316_v55 = vpop.eup %5315 }
 0x5a3   :  { %v5318_v5 = vpop.eup %5317  ;;  %v6950_v30 = vadd.f32 %v2953_v14, %v2949_v50  ;;  %v2948_v24 = vmul.f32 %v5316_v55, %v6873_v42 }
 0x5a4   :  { %v5320_v6 = vpop.eup %5319  ;;  %v2937_v13 = vadd.f32 1.0, %v5318_v5 }
 0x5a5   :  { %v5322_v7 = vpop.eup %5321  ;;  %v6953_v9 = vadd.f32 %v2952_v3, %v2948_v24  ;;  %v2951_v45 = vmul.f32 %v5320_v6, %v6876_v43  ;;  %5329 = vtanh.f32 %v6950_v30  ;;  %v7420_v24 = vld [vmem:[#allocation72_spill] sm:$0xff] }
 0x5a6   :  { %v5324_v8 = vpop.eup %5323  ;;  %v2939_v10 = vadd.f32 1.0, %v5322_v7  ;;  %v1144_v6 = vadd.f32 %v7420_v24, %v6367_v53 }
 0x5a7   :  { %v5326_v46 = vpop.eup %5325  ;;  %v6956_v11 = vadd.f32 %v2955_v1, %v2951_v45  ;;  %v2950_v12 = vmul.f32 %v5324_v8, %v6880_v52  ;;  %v6968_v1 = vld [vmem:[%s7271_s2 + $0x8] sm:$0xff] }
 0x5a8   :  { %v5328_v17 = vpop.eup %5327  ;;  %5331 = vrcp.f32 %v2939_v10  ;;  %v2938_v22 = vadd.f32 1.0, %v5326_v46  ;;  %v7421_v10 = vld [vmem:[#allocation73_spill] sm:$0xff] }
 0x5a9   :  { %v6960_v42 = vadd.f32 %v2954_v40, %v2950_v12  ;;  %5333 = vtanh.f32 %v6956_v11  ;;  %v2936_v19 = vadd.f32 1.0, %v5328_v17  ;;  %v7419_v40 = vld [vmem:[#allocation71_spill] sm:$0xff]  ;;  %v1139_v46 = vadd.f32 %v7421_v10, %v6379_v54 }
 0x5aa   :  { %5335 = vrcp.f32 %v2938_v22  ;;  %v1129_v37 = vadd.f32 %v7419_v40, %v6347_v0  ;;  %v7422_v22 = vld [vmem:[#allocation74_spill] sm:$0xff]  ;;  %v7427_v40 = vld [vmem:[#allocation79_spill] sm:$0xff] }
 0x5ab   :  { %5337 = vtanh.f32 %v6960_v42 }
 0x5ac   :  { %5339 = vrcp.f32 %v2937_v13 }
 0x5ad   :  { %5341 = vtanh.f32 %v6953_v9 }
 0x5ae   :  { %5343 = vrcp.f32 %v2936_v19  ;;  %v1154_v19 = vadd.f32 %v7422_v22, %v6345_v63 }
 0x5b2   :  { %v5330_v43 = vpop.eup %5329 }
 0x5b5   :  { %v5332_v52 = vpop.eup %5331 }
 0x5b6   :  { %v5334_v28 = vpop.eup %5333 }
 0x5b7   :  { %v5336_v60 = vpop.eup %5335  ;;  %v2967_v49 = vmul.f32 %v5334_v28, %v5332_v52 }
 0x5b8   :  { %v5338_v2 = vpop.eup %5337 }
 0x5b9   :  { %v5340_v14 = vpop.eup %5339  ;;  %4922 = vmatprep.subr.mxu1 %v2967_v49  ;;  %v2966_v15 = vmul.f32 %v5338_v2, %v5336_v60  ;;  %v7423_v60 = vld [vmem:[#allocation75_spill] sm:$0xff] }
 0x5ba   :  { %v5342_v16 = vpop.eup %5341  ;;  %4923 = vmatpush3.msra.mxu1 %v2967_v49  ;;  %v2965_v3 = vmul.f32 %v5340_v14, %v5330_v43  ;;  %v1149_v49 = vadd.f32 %v7423_v60, %v6357_v58 }
 0x5bb   :  { %4924 = vmatprep.subr.mxu1 %v2966_v15  ;;  %v5344_v56 = vpop.eup %5343 }
 0x5bc   :  { %4925 = vmatpush3.msra.mxu1 %v2966_v15  ;;  %v2964_v38 = vmul.f32 %v5344_v56, %v5342_v16  ;;  %v7424_v16 = vld [vmem:[#allocation76_spill] sm:$0xff] }
 0x5bd   :  { %4926 = vmatprep.subr.mxu1 %v2965_v3 }
 0x5be   :  { %4927 = vmatpush3.msra.mxu1 %v2965_v3  ;;  %v1164_v3 = vadd.f32 %v7424_v16, %v6397_v48 }
 0x5bf   :  { %4928 = vmatprep.subr.mxu1 %v2964_v38 }
 0x5c0   :  { %4929 = vmatpush3.msra.mxu1 %v2964_v38 }
 0x5c1   :  { %4931 = vmatmul.mubr.msk.f32.vlgmr.msra.gmra.mxu1 %vm1570_vm2, %v6968_v1 }
 0x5c2   :  { %4933 = vmatprep.mubr.msk.f32.mxu1 %vm1570_vm2, %v6975_v27 }
 0x5c5   :  { %4934 = vmatmul.mubr.msk.f32.gmra.mxu1 %vm1570_vm2, %v6747_v61  ;;  %v5555_v61 = vld [vmem:[%s7271_s2] sm:$0xff] }
 0x5c6   :  { %4936 = vmatprep.mubr.msk.f32.mxu1 %vm1570_vm2, %v6754_v32  ;;  %v7416_v32 = vld [vmem:[#allocation68_spill] sm:$0xff] }
 0x5c9   :  { %4937 = vmatmul.mubr.msk.f32.gmra.mxu1 %vm1570_vm2, %v6761_v47  ;;  %v1124_v47 = vadd.f32 %v7416_v32, %v6355_v57  ;;  %v7425_v32 = vld [vmem:[#allocation77_spill] sm:$0xff] }
 0x5ca   :  { %4939 = vmatprep.mubr.msk.f32.mxu1 %vm1570_vm2, %v6768_v34 }
 0x5cd   :  { %4940 = vmatmul.mubr.msk.f32.gmra.mxu1 %vm1570_vm2, %v6775_v39  ;;  %v7417_v39 = vld [vmem:[#allocation69_spill] sm:$0xff] }
 0x5ce   :  { %4942 = vmatprep.mubr.msk.f32.mxu1 %vm1570_vm2, %v6782_v20  ;;  %v1119_v20 = vadd.f32 %v7417_v39, %v6365_v62 }
 0x5d1   :  { %4943 = vmatmul.mubr.msk.f32.gmra.mxu1 %vm1570_vm2, %v6789_v29 }
 0x5d2   :  { %4945 = vmatprep.mubr.msk.f32.mxu1 %vm1570_vm2, %v6796_v35 }
 0x5d5   :  { %4946 = vmatmul.mubr.msk.f32.gmra.mxu1 %vm1570_vm2, %v6803_v31  ;;  %v7418_v31 = vld [vmem:[#allocation70_spill] sm:$0xff] }
 0x5d6   :  { %4948 = vmatprep.mubr.msk.f32.mxu1 %vm1570_vm2, %v6810_v4  ;;  %v1134_v4 = vadd.f32 %v7418_v31, %v6337_v59 }
 0x5d9   :  { %4949 = vmatmul.mubr.msk.f32.gmra.mxu1 %vm1570_vm2, %v6817_v26 }
 0x5da   :  { %4951 = vmatprep.mubr.msk.f32.mxu1 %vm1570_vm2, %v6824_v23 }
 0x5dd   :  { %4952 = vmatmul.mubr.msk.f32.gmra.mxu1 %vm1570_vm2, %v6831_v33 }
 0x5de   :  { %4994 = vmatprep.mubr.msk.f32.mxu1 %vm1570_vm2, %v5555_v61 }
 0x681   :  { %v4932_v34 = vpop.f32.mrf.mxu1 }
 0x682   :  { %v3130_v29 = vadd.f32 %v4932_v34, %v1124_v47  ;;  %v1159_v47 = vadd.f32 %v7425_v32, %v6409_v21 }
 0x683   :  { %v3050_v35 = vpop.f32.mrf.mxu1 }
 0x684   :  { %v4128_v26 = vmul.f32 -1.442695, %v3130_v29  ;;  %v3129_v23 = vadd.f32 %v3050_v35, %v1119_v20  ;;  %v7426_v35 = vld [vmem:[#allocation78_spill] sm:$0xff] }
 0x685   :  { %v4935_v33 = vpop.f32.mrf.mxu1  ;;  %v1174_v31 = vadd.f32 %v7426_v35, %v6377_v51 }
 0x686   :  { %5345 = vpow2.f32 %v4128_v26  ;;  %v4127_v50 = vmul.f32 -1.442695, %v3129_v23  ;;  %v3132_v55 = vadd.f32 %v4935_v33, %v1134_v4 }
 0x687   :  { %v3060_v5 = vpop.f32.mrf.mxu1 }
 0x688   :  { %5347 = vpow2.f32 %v4127_v50  ;;  %v4130_v7 = vmul.f32 -1.442695, %v3132_v55  ;;  %v3131_v45 = vadd.f32 %v3060_v5, %v1129_v37  ;;  %v1169_v37 = vadd.f32 %v7427_v40, %v6387_v18 }
 0x689   :  { %v4938_v8 = vpop.f32.mrf.mxu1 }
 0x68a   :  { %5349 = vpow2.f32 %v4130_v7  ;;  %v4129_v12 = vmul.f32 -1.442695, %v3131_v45  ;;  %v3134_v17 = vadd.f32 %v4938_v8, %v1144_v6  ;;  %v7428_v6 = vld [vmem:[#allocation80_spill] sm:$0xff] }
 0x68b   :  { %v3070_v13 = vpop.f32.mrf.mxu1  ;;  %v1184_v7 = vadd.f32 %v7428_v6, %v6411_v25 }
 0x68c   :  { %5351 = vpow2.f32 %v4129_v12  ;;  %v4132_v43 = vmul.f32 -1.442695, %v3134_v17  ;;  %v3133_v52 = vadd.f32 %v3070_v13, %v1139_v46 }
 0x68d   :  { %v4941_v28 = vpop.f32.mrf.mxu1 }
 0x68e   :  { %5353 = vpow2.f32 %v4132_v43  ;;  %v4131_v2 = vmul.f32 -1.442695, %v3133_v52  ;;  %v3136_v14 = vadd.f32 %v4941_v28, %v1154_v19  ;;  %v7429_v19 = vld [vmem:[#allocation81_spill] sm:$0xff]  ;;  %v7430_v52 = vld [vmem:[#allocation82_spill] sm:$0xff] }
 0x68f   :  { %v3080_v15 = vpop.f32.mrf.mxu1  ;;  %v1179_v43 = vadd.f32 %v7429_v19, %v6423_v41  ;;  %v1194_v28 = vadd.f32 %v7430_v52, %v6389_v44 }
 0x690   :  { %5355 = vpow2.f32 %v4131_v2  ;;  %v4134_v56 = vmul.f32 -1.442695, %v3136_v14  ;;  %v3135_v38 = vadd.f32 %v3080_v15, %v1149_v49  ;;  %v7431_v2 = vld [vmem:[#allocation83_spill] sm:$0xff] }
 0x691   :  { %v4944_v61 = vpop.f32.mrf.mxu1  ;;  %v1189_v14 = vadd.f32 %v7431_v2, %v7370_v36 }
 0x692   :  { %5357 = vpow2.f32 %v4134_v56  ;;  %v4133_v34 = vmul.f32 -1.442695, %v3135_v38  ;;  %v3138_v39 = vadd.f32 %v4944_v61, %v1164_v3 }
 0x693   :  { %v5346_v20 = vpop.eup %5345  ;;  %v3090_v29 = vpop.f32.mrf.mxu1 }
 0x694   :  { %v3158_v4 = vadd.f32 1.0, %v5346_v20  ;;  %5359 = vpow2.f32 %v4133_v34  ;;  %v3137_v26 = vadd.f32 %v3090_v29, %v1159_v47 }
 0x695   :  { %v5348_v23 = vpop.eup %5347  ;;  %5361 = vtanh.f32 %v3138_v39  ;;  %v4947_v33 = vpop.f32.mrf.mxu1 }
 0x696   :  { %5363 = vrcp.f32 %v3158_v4  ;;  %v3157_v50 = vadd.f32 1.0, %v5348_v23  ;;  %v3140_v55 = vadd.f32 %v4947_v33, %v1174_v31 }
 0x697   :  { %v5350_v5 = vpop.eup %5349  ;;  %5365 = vtanh.f32 %v3137_v26  ;;  %v3100_v24 = vpop.f32.mrf.mxu1 }
 0x698   :  { %5367 = vrcp.f32 %v3157_v50  ;;  %v3160_v45 = vadd.f32 1.0, %v5350_v5  ;;  %v3139_v8 = vadd.f32 %v3100_v24, %v1169_v37 }
 0x699   :  { %v5352_v10 = vpop.eup %5351  ;;  %5369 = vtanh.f32 %v3140_v55  ;;  %v4950_v46 = vpop.f32.mrf.mxu1 }
 0x69a   :  { %5371 = vrcp.f32 %v3160_v45  ;;  %v3159_v12 = vadd.f32 1.0, %v5352_v10  ;;  %v3142_v17 = vadd.f32 %v4950_v46, %v1184_v7 }
 0x69b   :  { %v5354_v13 = vpop.eup %5353  ;;  %5373 = vtanh.f32 %v3139_v8  ;;  %v3110_v22 = vpop.f32.mrf.mxu1 }
 0x69c   :  { %5375 = vrcp.f32 %v3159_v12  ;;  %v3182_v60 = vadd.f32 1.0, %v5354_v13  ;;  %v4136_v15 = vmul.f32 -1.442695, %v3142_v17  ;;  %v3141_v56 = vadd.f32 %v3110_v22, %v1179_v43 }
 0x69d   :  { %v5356_v49 = vpop.eup %5355  ;;  %v4953_v16 = vpop.f32.mrf.mxu1 }
 0x69e   :  { %5377 = vrcp.f32 %v3182_v60  ;;  %v3181_v3 = vadd.f32 1.0, %v5356_v49  ;;  %v3144_v38 = vadd.f32 %v4953_v16, %v1194_v28  ;;  %v4135_v31 = vmul.f32 -1.442695, %v3141_v56 }
 0x69f   :  { %v5358_v61 = vpop.eup %5357  ;;  %v3120_v32 = vpop.f32.mrf.mxu1 }
 0x6a0   :  { %5379 = vrcp.f32 %v3181_v3  ;;  %v3184_v47 = vadd.f32 1.0, %v5358_v61  ;;  %v4138_v34 = vmul.f32 -1.442695, %v3144_v38  ;;  %v3143_v39 = vadd.f32 %v3120_v32, %v1189_v14 }
 0x6a1   :  { %v5360_v20 = vpop.eup %5359  ;;  %5381 = vpow2.f32 %v4136_v15 }
 0x6a2   :  { %v5362_v29 = vpop.eup %5361  ;;  %5383 = vrcp.f32 %v3184_v47  ;;  %v3183_v35 = vadd.f32 1.0, %v5360_v20  ;;  %v4137_v4 = vmul.f32 -1.442695, %v3143_v39 }
 0x6a3   :  { %v5364_v26 = vpop.eup %5363  ;;  %5385 = vpow2.f32 %v4138_v34 }
 0x6a4   :  { %v5366_v23 = vpop.eup %5365  ;;  %5387 = vrcp.f32 %v3183_v35  ;;  %v3226_v33 = vmul.f32 %v5364_v26, %v5362_v29  ;;  %v7064_v35 = vld [vmem:[%s7271_s2 + $0x18] sm:$0xff]  ;;  %v7085_v26 = vld [vmem:[%s7271_s2 + $0x30] sm:$0xff] }
 0x6a5   :  { %v5368_v40 = vpop.eup %5367  ;;  %5389 = vpow2.f32 %v4137_v4  ;;  %v7078_v4 = vld [vmem:[%s7271_s2 + $0x28] sm:$0xff] }
 0x6a6   :  { %v5370_v37 = vpop.eup %5369  ;;  %v3225_v50 = vmul.f32 %v5368_v40, %v5366_v23  ;;  %5391 = vpow2.f32 %v4135_v31  ;;  %v7071_v31 = vld [vmem:[%s7271_s2 + $0x20] sm:$0xff]  ;;  %v7092_v23 = vld [vmem:[%s7271_s2 + $0x38] sm:$0xff]  ;;  %v7106_v40 = vld [vmem:[%s7271_s2 + $0x48] sm:$0xff] }
 0x6a7   :  { %v5372_v55 = vpop.eup %5371 }
 0x6a8   :  { %v5374_v5 = vpop.eup %5373  ;;  %v3228_v24 = vmul.f32 %v5372_v55, %v5370_v37  ;;  %v7113_v37 = vld [vmem:[%s7271_s2 + $0x50] sm:$0xff]  ;;  %v7127_v55 = vld [vmem:[%s7271_s2 + $0x60] sm:$0xff] }
 0x6a9   :  { %v5376_v6 = vpop.eup %5375 }
 0x6aa   :  { %v3227_v7 = vmul.f32 %v5376_v6, %v5374_v5  ;;  %v7134_v5 = vld [vmem:[%s7271_s2 + $0x68] sm:$0xff]  ;;  %v7148_v6 = vld [vmem:[%s7271_s2 + $0x78] sm:$0xff] }
 0x6ab   :  { %v5378_v45 = vpop.eup %5377 }
 0x6ac   :  { %v3222_v8 = vmul.f32 %v5378_v45, %v6950_v30 }
 0x6ad   :  { %v5380_v10 = vpop.eup %5379 }
 0x6ae   :  { %v5382_v46 = vpop.eup %5381  ;;  %v7042_v12 = vadd.f32 %v3226_v33, %v3222_v8  ;;  %v3221_v17 = vmul.f32 %v5380_v10, %v6953_v9  ;;  %v7099_v33 = vld [vmem:[%s7271_s2 + $0x40] sm:$0xff]  ;;  %v7433_v10 = vld [vmem:[#allocation39_spill] sm:$0xff] }
 0x6af   :  { %v5384_v13 = vpop.eup %5383  ;;  %v3210_v14 = vadd.f32 1.0, %v5382_v46  ;;  %v1289_v46 = vadd.f32 %v7433_v10, %v6365_v62  ;;  %v7439_v10 = vld [vmem:[#allocation45_spill] sm:$0xff] }
 0x6b0   :  { %v5386_v22 = vpop.eup %5385  ;;  %v7045_v19 = vadd.f32 %v3225_v50, %v3221_v17  ;;  %v3224_v43 = vmul.f32 %v5384_v13, %v6956_v11  ;;  %5393 = vtanh.f32 %v7042_v12  ;;  %v7120_v50 = vld [vmem:[%s7271_s2 + $0x58] sm:$0xff] }
 0x6b1   :  { %v5388_v52 = vpop.eup %5387  ;;  %v3212_v28 = vadd.f32 1.0, %v5386_v22  ;;  %v7434_v22 = vld [vmem:[#allocation40_spill] sm:$0xff] }
 0x6b2   :  { %v5390_v60 = vpop.eup %5389  ;;  %v7048_v49 = vadd.f32 %v3228_v24, %v3224_v43  ;;  %v3223_v2 = vmul.f32 %v5388_v52, %v6960_v42  ;;  %v7141_v24 = vld [vmem:[%s7271_s2 + $0x70] sm:$0xff]  ;;  %v1304_v43 = vadd.f32 %v7434_v22, %v6337_v59  ;;  %s5593_s2 = smov [#allocation3]  }
 0x6b3   :  { %v5392_v30 = vpop.eup %5391  ;;  %5395 = vrcp.f32 %v3212_v28  ;;  %v3211_v15 = vadd.f32 1.0, %v5390_v60  ;;  %s3796_s17 = sshll.u32 %s5593_s2, 4  ;;  %s3797_s17 = int_to_ptr.vmem [resolvable:$true] %s3796_s17 }
 0x6b4   :  { %v7052_v9 = vadd.f32 %v3227_v7, %v3223_v2  ;;  %5397 = vtanh.f32 %v7048_v49  ;;  %v3209_v16 = vadd.f32 1.0, %v5392_v30  ;;  %v7432_v7 = vld [vmem:[#allocation38_spill] sm:$0xff]  ;;  %v7435_v2 = vld [vmem:[#allocation41_spill] sm:$0xff]  ;;  %s5569_s18 = scalar_lea.vmem %s3797_s17, 512  ;;  %p5574_p1 = scmp.lt.s32.totalorder %s3797_s17, %s3797_s17 }
 0x6b5   :  { %5399 = vrcp.f32 %v3211_v15  ;;  %v1294_v45 = vadd.f32 %v7432_v7, %v6355_v57  ;;  %v1299_v30 = vadd.f32 %v7435_v2, %v6347_v0  ;;  %p5570_p0 = scmp.ne.s32.totalorder %s3797_s17, %s5569_s18  ;;  %p5575_p2 = scmp.lt.s32.totalorder %s5569_s18, %s5569_s18 }
 0x6b6   :  { %5401 = vtanh.f32 %v7052_v9 }
 0x6b7   :  { %5403 = vrcp.f32 %v3210_v14  ;;  %p5576_p3 = por %p5575_p2, %p5574_p1 }
 0x6b8   :  { %5405 = vtanh.f32 %v7045_v19 }
 0x6b9   :  { %5407 = vrcp.f32 %v3209_v16  ;;  %p5577_p4 = pnand %p5576_p3, %p5570_p0 }
 0x6bd   :  { %v5394_v11 = vpop.eup %5393 }
 0x6c0   :  { %v5396_v42 = vpop.eup %5395 }
 0x6c1   :  { %v5398_v3 = vpop.eup %5397 }
 0x6c2   :  { %v5400_v56 = vpop.eup %5399  ;;  %v3240_v38 = vmul.f32 %v5398_v3, %v5396_v42 }
 0x6c3   :  { %v5402_v61 = vpop.eup %5401 }
 0x6c4   :  { %v5404_v32 = vpop.eup %5403  ;;  %4954 = vmatprep.subr.mxu0 %v3240_v38  ;;  %v3239_v47 = vmul.f32 %v5402_v61, %v5400_v56  ;;  %v7437_v61 = vld [vmem:[#allocation43_spill] sm:$0xff] }
 0x6c5   :  { %v5406_v34 = vpop.eup %5405  ;;  %4955 = vmatpush3.msra.mxu0 %v3240_v38  ;;  %v3238_v39 = vmul.f32 %v5404_v32, %v5394_v11  ;;  %v7436_v11 = vld [vmem:[#allocation42_spill] sm:$0xff]  ;;  %v1309_v32 = vadd.f32 %v7437_v61, %v6379_v54 }
 0x6c6   :  { %4956 = vmatprep.subr.mxu0 %v3239_v47  ;;  %v5408_v20 = vpop.eup %5407  ;;  %v1314_v42 = vadd.f32 %v7436_v11, %v6367_v53 }
 0x6c7   :  { %4957 = vmatpush3.msra.mxu0 %v3239_v47  ;;  %v3237_v29 = vmul.f32 %v5408_v20, %v5406_v34  ;;  %v7438_v20 = vld [vmem:[#allocation44_spill] sm:$0xff] }
 0x6c8   :  { %4958 = vmatprep.subr.mxu0 %v3238_v39 }
 0x6c9   :  { %4959 = vmatpush3.msra.mxu0 %v3238_v39 }
 0x6ca   :  { %4960 = vmatprep.subr.mxu0 %v3237_v29 }
 0x6cb   :  { %4961 = vmatpush3.msra.mxu0 %v3237_v29  ;;  %v1324_v29 = vadd.f32 %v7438_v20, %v6345_v63 }
 0x6cc   :  { %4963 = vmatmul.mubr.msk.f32.vlgmr.msra.gmra.mxu0 %vm1570_vm2, %v6968_v1 }
 0x6cd   :  { %4965 = vmatprep.mubr.msk.f32.mxu0 %vm1570_vm2, %v6975_v27 }
 0x6d0   :  { %4966 = vmatmul.mubr.msk.f32.gmra.mxu0 %vm1570_vm2, %v7064_v35 }
 0x6d1   :  { %4968 = vmatprep.mubr.msk.f32.mxu0 %vm1570_vm2, %v7071_v31 }
 0x6d4   :  { %4969 = vmatmul.mubr.msk.f32.gmra.mxu0 %vm1570_vm2, %v7078_v4 }
 0x6d5   :  { %4971 = vmatprep.mubr.msk.f32.mxu0 %vm1570_vm2, %v7085_v26 }
 0x6d8   :  { %4972 = vmatmul.mubr.msk.f32.gmra.mxu0 %vm1570_vm2, %v7092_v23 }
 0x6d9   :  { %4974 = vmatprep.mubr.msk.f32.mxu0 %vm1570_vm2, %v7099_v33 }
 0x6dc   :  { %4975 = vmatmul.mubr.msk.f32.gmra.mxu0 %vm1570_vm2, %v7106_v40 }
 0x6dd   :  { %4977 = vmatprep.mubr.msk.f32.mxu0 %vm1570_vm2, %v7113_v37 }
 0x6e0   :  { %4978 = vmatmul.mubr.msk.f32.gmra.mxu0 %vm1570_vm2, %v7120_v50 }
 0x6e1   :  { %4980 = vmatprep.mubr.msk.f32.mxu0 %vm1570_vm2, %v7127_v55 }
 0x6e4   :  { %4981 = vmatmul.mubr.msk.f32.gmra.mxu0 %vm1570_vm2, %v7134_v5 }
 0x6e5   :  { %4983 = vmatprep.mubr.msk.f32.mxu0 %vm1570_vm2, %v7141_v24 }
 0x6e8   :  { %4984 = vmatmul.mubr.msk.f32.gmra.mxu0 %vm1570_vm2, %v7148_v6 }
 0x78c   :  { %v4964_v8 = vpop.f32.mrf.mxu0 }
 0x78d   :  { %v3403_v17 = vadd.f32 %v4964_v8, %v1294_v45 }
 0x78e   :  { %v3323_v13 = vpop.f32.mrf.mxu0 }
 0x78f   :  { %v4156_v52 = vmul.f32 -1.442695, %v3403_v17  ;;  %v3402_v28 = vadd.f32 %v3323_v13, %v1289_v46  ;;  %v1319_v46 = vadd.f32 %v7439_v10, %v6357_v58 }
 0x790   :  { %v4967_v60 = vpop.f32.mrf.mxu0 }
 0x791   :  { %5409 = vpow2.f32 %v4156_v52  ;;  %v4155_v14 = vmul.f32 -1.442695, %v3402_v28  ;;  %v3405_v15 = vadd.f32 %v4967_v60, %v1304_v43  ;;  %v7440_v43 = vld [vmem:[#allocation46_spill] sm:$0xff] }
 0x792   :  { %v3333_v16 = vpop.f32.mrf.mxu0  ;;  %v1334_v52 = vadd.f32 %v7440_v43, %v6397_v48 }
 0x793   :  { %5411 = vpow2.f32 %v4155_v14  ;;  %v4158_v3 = vmul.f32 -1.442695, %v3405_v15  ;;  %v3404_v56 = vadd.f32 %v3333_v16, %v1299_v30  ;;  %v7441_v30 = vld [vmem:[#allocation47_spill] sm:$0xff] }
 0x794   :  { %v4970_v38 = vpop.f32.mrf.mxu0  ;;  %v1329_v14 = vadd.f32 %v7441_v30, %v6409_v21 }
 0x795   :  { %5413 = vpow2.f32 %v4158_v3  ;;  %v4157_v47 = vmul.f32 -1.442695, %v3404_v56  ;;  %v3407_v34 = vadd.f32 %v4970_v38, %v1314_v42  ;;  %v7442_v3 = vld [vmem:[#allocation48_spill] sm:$0xff] }
 0x796   :  { %v3343_v39 = vpop.f32.mrf.mxu0  ;;  %v1344_v56 = vadd.f32 %v7442_v3, %v6377_v51 }
 0x797   :  { %5415 = vpow2.f32 %v4157_v47  ;;  %v4160_v7 = vmul.f32 -1.442695, %v3407_v34  ;;  %v3406_v45 = vadd.f32 %v3343_v39, %v1309_v32  ;;  %v7443_v34 = vld [vmem:[#allocation49_spill] sm:$0xff] }
 0x798   :  { %v4973_v8 = vpop.f32.mrf.mxu0  ;;  %v1339_v39 = vadd.f32 %v7443_v34, %v6387_v18 }
 0x799   :  { %5417 = vpow2.f32 %v4160_v7  ;;  %v4159_v17 = vmul.f32 -1.442695, %v3406_v45  ;;  %v3409_v13 = vadd.f32 %v4973_v8, %v1324_v29  ;;  %v7444_v8 = vld [vmem:[#allocation50_spill] sm:$0xff] }
 0x79a   :  { %v3353_v22 = vpop.f32.mrf.mxu0  ;;  %v1354_v10 = vadd.f32 %v7444_v8, %v6411_v25 }
 0x79b   :  { %5419 = vpow2.f32 %v4159_v17  ;;  %v4162_v28 = vmul.f32 -1.442695, %v3409_v13  ;;  %v3408_v60 = vadd.f32 %v3353_v22, %v1319_v46 }
 0x79c   :  { %v4976_v2 = vpop.f32.mrf.mxu0 }
 0x79d   :  { %5421 = vpow2.f32 %v4162_v28  ;;  %v4161_v15 = vmul.f32 -1.442695, %v3408_v60  ;;  %v3411_v16 = vadd.f32 %v4976_v2, %v1334_v52  ;;  %v7445_v2 = vld [vmem:[#allocation51_spill] sm:$0xff] }
 0x79e   :  { %v5410_v11 = vpop.eup %5409  ;;  %v3363_v42 = vpop.f32.mrf.mxu0  ;;  %v1349_v30 = vadd.f32 %v7445_v2, %v6423_v41 }
 0x79f   :  { %v3431_v38 = vadd.f32 1.0, %v5410_v11  ;;  %5423 = vpow2.f32 %v4161_v15  ;;  %v3410_v61 = vadd.f32 %v3363_v42, %v1329_v14  ;;  %v7446_v14 = vld [vmem:[#allocation52_spill] sm:$0xff]  ;;  %v7447_v42 = vld [vmem:[#allocation53_spill] sm:$0xff] }
 0x7a0   :  { %v5412_v32 = vpop.eup %5411  ;;  %5425 = vtanh.f32 %v3411_v16  ;;  %v4979_v47 = vpop.f32.mrf.mxu0  ;;  %v1364_v15 = vadd.f32 %v7446_v14, %v6389_v44  ;;  %v1359_v3 = vadd.f32 %v7447_v42, %v7370_v36 }
 0x7a1   :  { %5427 = vrcp.f32 %v3431_v38  ;;  %v3430_v20 = vadd.f32 1.0, %v5412_v32  ;;  %v3413_v29 = vadd.f32 %v4979_v47, %v1344_v56 }
 0x7a2   :  { %v5414_v7 = vpop.eup %5413  ;;  %5429 = vtanh.f32 %v3410_v61  ;;  %v3373_v45 = vpop.f32.mrf.mxu0 }
 0x7a3   :  { %5431 = vrcp.f32 %v3430_v20  ;;  %v3433_v46 = vadd.f32 1.0, %v5414_v7  ;;  %v3412_v17 = vadd.f32 %v3373_v45, %v1339_v39 }
 0x7a4   :  { %v5416_v13 = vpop.eup %5415  ;;  %5433 = vtanh.f32 %v3413_v29  ;;  %v4982_v22 = vpop.f32.mrf.mxu0 }
 0x7a5   :  { %5435 = vrcp.f32 %v3433_v46  ;;  %v3432_v43 = vadd.f32 1.0, %v5416_v13  ;;  %v3415_v52 = vadd.f32 %v4982_v22, %v1354_v10 }
 0x7a6   :  { %v5418_v28 = vpop.eup %5417  ;;  %5437 = vtanh.f32 %v3412_v17  ;;  %v3383_v60 = vpop.f32.mrf.mxu0 }
 0x7a7   :  { %5439 = vrcp.f32 %v3432_v43  ;;  %v3455_v16 = vadd.f32 1.0, %v5418_v28  ;;  %v4164_v56 = vmul.f32 -1.442695, %v3415_v52  ;;  %v3414_v32 = vadd.f32 %v3383_v60, %v1349_v30 }
 0x7a8   :  { %v5420_v11 = vpop.eup %5419  ;;  %v4985_v38 = vpop.f32.mrf.mxu0 }
 0x7a9   :  { %5441 = vrcp.f32 %v3455_v16  ;;  %v3454_v61 = vadd.f32 1.0, %v5420_v11  ;;  %v3417_v47 = vadd.f32 %v4985_v38, %v1364_v15  ;;  %v4163_v46 = vmul.f32 -1.442695, %v3414_v32 }
 0x7aa   :  { %v5422_v34 = vpop.eup %5421  ;;  %v3393_v39 = vpop.f32.mrf.mxu0 }
 0x7ab   :  { %5443 = vrcp.f32 %v3454_v61  ;;  %v3457_v20 = vadd.f32 1.0, %v5422_v34  ;;  %v4166_v29 = vmul.f32 -1.442695, %v3417_v47  ;;  %v3416_v7 = vadd.f32 %v3393_v39, %v1359_v3 }
 0x7ac   :  { %v5424_v45 = vpop.eup %5423  ;;  %5445 = vpow2.f32 %v4164_v56 }
 0x7ad   :  { %v5426_v8 = vpop.eup %5425  ;;  %5447 = vrcp.f32 %v3457_v20  ;;  %v3456_v10 = vadd.f32 1.0, %v5424_v45  ;;  %v4165_v17 = vmul.f32 -1.442695, %v3416_v7 }
 0x7ae   :  { %v5428_v13 = vpop.eup %5427  ;;  %5449 = vpow2.f32 %v4166_v29 }
 0x7af   :  { %v5430_v22 = vpop.eup %5429  ;;  %5451 = vrcp.f32 %v3456_v10  ;;  %v3499_v43 = vmul.f32 %v5428_v13, %v5426_v8 }
 0x7b0   :  { %v5432_v52 = vpop.eup %5431  ;;  %5453 = vpow2.f32 %v4165_v17 }
 0x7b1   :  { %v5434_v28 = vpop.eup %5433  ;;  %v3498_v60 = vmul.f32 %v5432_v52, %v5430_v22  ;;  %5455 = vpow2.f32 %v4163_v46 }
 0x7b2   :  { %v5436_v2 = vpop.eup %5435 }
 0x7b3   :  { %v5438_v30 = vpop.eup %5437  ;;  %v3501_v14 = vmul.f32 %v5436_v2, %v5434_v28 }
 0x7b4   :  { %v5440_v15 = vpop.eup %5439 }
 0x7b5   :  { %v3500_v16 = vmul.f32 %v5440_v15, %v5438_v30 }
 0x7b6   :  { %v5442_v11 = vpop.eup %5441 }
 0x7b7   :  { %v3495_v42 = vmul.f32 %v5442_v11, %v7042_v12 }
 0x7b8   :  { %v5444_v3 = vpop.eup %5443 }
 0x7b9   :  { %v5446_v56 = vpop.eup %5445  ;;  %v7185_v38 = vadd.f32 %v3499_v43, %v3495_v42  ;;  %v3494_v61 = vmul.f32 %v5444_v3, %v7045_v19 }
 0x7ba   :  { %v5448_v32 = vpop.eup %5447  ;;  %v3483_v10 = vadd.f32 1.0, %v5446_v56 }
 0x7bb   :  { %v5450_v47 = vpop.eup %5449  ;;  %v7188_v34 = vadd.f32 %v3498_v60, %v3494_v61  ;;  %v3497_v39 = vmul.f32 %v5448_v32, %v7048_v49  ;;  %5457 = vtanh.f32 %v7185_v38  ;;  %v7453_v61 = vld [vmem:[#allocation89_spill] sm:$0xff] }
 0x7bc   :  { %v5452_v20 = vpop.eup %5451  ;;  %v3485_v29 = vadd.f32 1.0, %v5450_v47 }
 0x7bd   :  { %v5454_v7 = vpop.eup %5453  ;;  %v7191_v45 = vadd.f32 %v3501_v14, %v3497_v39  ;;  %v3496_v8 = vmul.f32 %v5452_v20, %v7052_v9 }
 0x7be   :  { %v5456_v12 = vpop.eup %5455  ;;  %5459 = vrcp.f32 %v3485_v29  ;;  %v3484_v46 = vadd.f32 1.0, %v5454_v7 }
 0x7bf   :  { %v7195_v19 = vadd.f32 %v3500_v16, %v3496_v8  ;;  %5461 = vtanh.f32 %v7191_v45  ;;  %v3482_v17 = vadd.f32 1.0, %v5456_v12 }
 0x7c0   :  { %5463 = vrcp.f32 %v3484_v46 }
 0x7c1   :  { %5465 = vtanh.f32 %v7195_v19 }
 0x7c2   :  { %5467 = vrcp.f32 %v3483_v10 }
 0x7c3   :  { %5469 = vtanh.f32 %v7188_v34 }
 0x7c4   :  { %5471 = vrcp.f32 %v3482_v17 }
 0x7c8   :  { %v5458_v49 = vpop.eup %5457 }
 0x7cb   :  { %v5460_v9 = vpop.eup %5459 }
 0x7cc   :  { %v5462_v13 = vpop.eup %5461 }
 0x7cd   :  { %v5464_v22 = vpop.eup %5463  ;;  %v3513_v43 = vmul.f32 %v5462_v13, %v5460_v9 }
 0x7ce   :  { %v5466_v52 = vpop.eup %5465 }
 0x7cf   :  { %v5468_v28 = vpop.eup %5467  ;;  %4986 = vmatprep.subr.mxu1 %v3513_v43  ;;  %v3512_v60 = vmul.f32 %v5466_v52, %v5464_v22 }
 0x7d0   :  { %v5470_v2 = vpop.eup %5469  ;;  %4987 = vmatpush3.msra.mxu1 %v3513_v43  ;;  %v3511_v30 = vmul.f32 %v5468_v28, %v5458_v49 }
 0x7d1   :  { %4988 = vmatprep.subr.mxu1 %v3512_v60  ;;  %v5472_v14 = vpop.eup %5471 }
 0x7d2   :  { %4989 = vmatpush3.msra.mxu1 %v3512_v60  ;;  %v3510_v15 = vmul.f32 %v5472_v14, %v5470_v2 }
 0x7d3   :  { %4990 = vmatprep.subr.mxu1 %v3511_v30 }
 0x7d4   :  { %4991 = vmatpush3.msra.mxu1 %v3511_v30 }
 0x7d5   :  { %4992 = vmatprep.subr.mxu1 %v3510_v15 }
 0x7d6   :  { %4993 = vmatpush3.msra.mxu1 %v3510_v15 }
 0x7d7   :  { %4995 = vmatmul.mubr.msk.f32.vlgmr.msra.gmra.mxu1 %vm1570_vm2, %v6968_v1  ;;  %v7448_v1 = vld [vmem:[#allocation84_spill] sm:$0xff] }
 0x7d8   :  { %4997 = vmatprep.mubr.msk.f32.mxu1 %vm1570_vm2, %v6975_v27  ;;  %v1464_v27 = vadd.f32 %v7448_v1, %v6355_v57  ;;  %v7452_v57 = vld [vmem:[#allocation88_spill] sm:$0xff] }
 0x7d9   :  { %v1484_v42 = vadd.f32 %v7452_v57, %v6367_v53  ;;  %v7455_v53 = vld [vmem:[#allocation91_spill] sm:$0xff] }
 0x7da   :  { %v1489_v12 = vadd.f32 %v7455_v53, %v6357_v58  ;;  %v7458_v58 = vld [vmem:[#allocation94_spill] sm:$0xff] }
 0x7db   :  { %4998 = vmatmul.mubr.msk.f32.gmra.mxu1 %vm1570_vm2, %v7064_v35  ;;  %v1514_v30 = vadd.f32 %v7458_v58, %v6377_v51 }
 0x7dc   :  { %5000 = vmatprep.mubr.msk.f32.mxu1 %vm1570_vm2, %v7071_v31  ;;  %v7449_v31 = vld [vmem:[#allocation85_spill] sm:$0xff] }
 0x7df   :  { %5001 = vmatmul.mubr.msk.f32.gmra.mxu1 %vm1570_vm2, %v7078_v4  ;;  %v1459_v4 = vadd.f32 %v7449_v31, %v6365_v62 }
 0x7e0   :  { %5003 = vmatprep.mubr.msk.f32.mxu1 %vm1570_vm2, %v7085_v26 }
 0x7e3   :  { %5004 = vmatmul.mubr.msk.f32.gmra.mxu1 %vm1570_vm2, %v7092_v23 }
 0x7e4   :  { %5006 = vmatprep.mubr.msk.f32.mxu1 %vm1570_vm2, %v7099_v33  ;;  %v7450_v33 = vld [vmem:[#allocation86_spill] sm:$0xff] }
 0x7e7   :  { %5007 = vmatmul.mubr.msk.f32.gmra.mxu1 %vm1570_vm2, %v7106_v40  ;;  %v1474_v40 = vadd.f32 %v7450_v33, %v6337_v59  ;;  %v1479_v59 = vadd.f32 %v7453_v61, %v6379_v54  ;;  %v7456_v54 = vld [vmem:[#allocation92_spill] sm:$0xff] }
 0x7e8   :  { %5009 = vmatprep.mubr.msk.f32.mxu1 %vm1570_vm2, %v7113_v37  ;;  %v1504_v49 = vadd.f32 %v7456_v54, %v6397_v48 }
 0x7eb   :  { %5010 = vmatmul.mubr.msk.f32.gmra.mxu1 %vm1570_vm2, %v7120_v50 }
 0x7ec   :  { %5012 = vmatprep.mubr.msk.f32.mxu1 %vm1570_vm2, %v7127_v55 }
 0x7ef   :  { %5013 = vmatmul.mubr.msk.f32.gmra.mxu1 %vm1570_vm2, %v7134_v5  ;;  %v7451_v5 = vld [vmem:[#allocation87_spill] sm:$0xff] }
 0x7f0   :  { %5015 = vmatprep.mubr.msk.f32.mxu1 %vm1570_vm2, %v7141_v24  ;;  %v1469_v24 = vadd.f32 %v7451_v5, %v6347_v0  ;;  %v7454_v0 = vld [vmem:[#allocation90_spill] sm:$0xff] }
 0x7f1   :  { %v1494_v20 = vadd.f32 %v7454_v0, %v6345_v63  ;;  %v7457_v63 = vld [vmem:[#allocation93_spill] sm:$0xff] }
 0x7f2   :  { %v1499_v43 = vadd.f32 %v7457_v63, %v6409_v21 }
 0x7f3   :  { %5016 = vmatmul.mubr.msk.f32.gmra.mxu1 %vm1570_vm2, %v7148_v6 }
 0x897   :  { %v4996_v35 = vpop.f32.mrf.mxu1 }
 0x898   :  { %v3676_v26 = vadd.f32 %v4996_v35, %v1464_v27  ;;  %v7459_v27 = vld [vmem:[#allocation95_spill] sm:$0xff] }
 0x899   :  { %v3596_v23 = vpop.f32.mrf.mxu1  ;;  %v1509_v35 = vadd.f32 %v7459_v27, %v6387_v18 }
 0x89a   :  { %v4184_v37 = vmul.f32 -1.442695, %v3676_v26  ;;  %v3675_v50 = vadd.f32 %v3596_v23, %v1459_v4  ;;  %v7460_v23 = vld [vmem:[#allocation96_spill] sm:$0xff] }
 0x89b   :  { %v4999_v55 = vpop.f32.mrf.mxu1  ;;  %v1524_v33 = vadd.f32 %v7460_v23, %v6411_v25 }
 0x89c   :  { %5473 = vpow2.f32 %v4184_v37  ;;  %v4183_v6 = vmul.f32 -1.442695, %v3675_v50  ;;  %v3678_v16 = vadd.f32 %v4999_v55, %v1474_v40  ;;  %v7461_v55 = vld [vmem:[#allocation97_spill] sm:$0xff] }
 0x89d   :  { %v3606_v11 = vpop.f32.mrf.mxu1  ;;  %v1519_v5 = vadd.f32 %v7461_v55, %v6423_v41 }
 0x89e   :  { %5475 = vpow2.f32 %v4183_v6  ;;  %v4186_v62 = vmul.f32 -1.442695, %v3678_v16  ;;  %v3677_v3 = vadd.f32 %v3606_v11, %v1469_v24  ;;  %v7462_v16 = vld [vmem:[#allocation98_spill] sm:$0xff] }
 0x89f   :  { %v5002_v56 = vpop.f32.mrf.mxu1  ;;  %v1534_v11 = vadd.f32 %v7462_v16, %v6389_v44 }
 0x8a0   :  { %5477 = vpow2.f32 %v4186_v62  ;;  %v4185_v32 = vmul.f32 -1.442695, %v3677_v3  ;;  %v3680_v47 = vadd.f32 %v5002_v56, %v1484_v42  ;;  %v7463_v56 = vld [vmem:[#allocation99_spill] sm:$0xff] }
 0x8a1   :  { %v3616_v39 = vpop.f32.mrf.mxu1  ;;  %v1529_v61 = vadd.f32 %v7463_v56, %v7370_v36 }
 0x8a2   :  { %5479 = vpow2.f32 %v4185_v32  ;;  %v4188_v29 = vmul.f32 -1.442695, %v3680_v47  ;;  %v3679_v7 = vadd.f32 %v3616_v39, %v1479_v59 }
 0x8a3   :  { %v5005_v8 = vpop.f32.mrf.mxu1 }
 0x8a4   :  { %5481 = vpow2.f32 %v4188_v29  ;;  %v4187_v10 = vmul.f32 -1.442695, %v3679_v7  ;;  %v3682_v46 = vadd.f32 %v5005_v8, %v1494_v20 }
 0x8a5   :  { %v3626_v17 = vpop.f32.mrf.mxu1 }
 0x8a6   :  { %5483 = vpow2.f32 %v4187_v10  ;;  %v4190_v9 = vmul.f32 -1.442695, %v3682_v46  ;;  %v3681_v13 = vadd.f32 %v3626_v17, %v1489_v12 }
 0x8a7   :  { %v5008_v22 = vpop.f32.mrf.mxu1 }
 0x8a8   :  { %5485 = vpow2.f32 %v4190_v9  ;;  %v4189_v52 = vmul.f32 -1.442695, %v3681_v13  ;;  %v3684_v28 = vadd.f32 %v5008_v22, %v1504_v49 }
 0x8a9   :  { %v5474_v60 = vpop.eup %5473  ;;  %v3636_v2 = vpop.f32.mrf.mxu1 }
 0x8aa   :  { %v3704_v14 = vadd.f32 1.0, %v5474_v60  ;;  %5487 = vpow2.f32 %v4189_v52  ;;  %v3683_v15 = vadd.f32 %v3636_v2, %v1499_v43 }
 0x8ab   :  { %v5476_v1 = vpop.eup %5475  ;;  %5489 = vtanh.f32 %v3684_v28  ;;  %v5011_v48 = vpop.f32.mrf.mxu1 }
 0x8ac   :  { %5491 = vrcp.f32 %v3704_v14  ;;  %v3703_v31 = vadd.f32 1.0, %v5476_v1  ;;  %v3686_v21 = vadd.f32 %v5011_v48, %v1514_v30 }
 0x8ad   :  { %v5478_v4 = vpop.eup %5477  ;;  %5493 = vtanh.f32 %v3683_v15  ;;  %v3646_v26 = vpop.f32.mrf.mxu1 }
 0x8ae   :  { %5495 = vrcp.f32 %v3703_v31  ;;  %v3706_v51 = vadd.f32 1.0, %v5478_v4  ;;  %v3685_v40 = vadd.f32 %v3646_v26, %v1509_v35 }
 0x8af   :  { %v5480_v37 = vpop.eup %5479  ;;  %5497 = vtanh.f32 %v3686_v21  ;;  %v5014_v50 = vpop.f32.mrf.mxu1 }
 0x8b0   :  { %5499 = vrcp.f32 %v3706_v51  ;;  %v3705_v18 = vadd.f32 1.0, %v5480_v37  ;;  %v3688_v24 = vadd.f32 %v5014_v50, %v1524_v33 }
 0x8b1   :  { %v5482_v6 = vpop.eup %5481  ;;  %5501 = vtanh.f32 %v3685_v40  ;;  %v3656_v57 = vpop.f32.mrf.mxu1 }
 0x8b2   :  { %5503 = vrcp.f32 %v3705_v18  ;;  %v3728_v25 = vadd.f32 1.0, %v5482_v6  ;;  %v4192_v42 = vmul.f32 -1.442695, %v3688_v24  ;;  %v3687_v62 = vadd.f32 %v3656_v57, %v1519_v5 }
 0x8b3   :  { %v5484_v3 = vpop.eup %5483  ;;  %v5017_v59 = vpop.f32.mrf.mxu1 }
 0x8b4   :  { %5505 = vrcp.f32 %v3728_v25  ;;  %v3727_v41 = vadd.f32 1.0, %v5484_v3  ;;  %v4191_v32 = vmul.f32 -1.442695, %v3687_v62  ;;  %v3690_v47 = vadd.f32 %v5017_v59, %v1534_v11 }
 0x8b5   :  { %v5486_v39 = vpop.eup %5485  ;;  %5507 = vpow2.f32 %v4192_v42  ;;  %v3666_v0 = vpop.f32.mrf.mxu1 }
 0x8b6   :  { %5509 = vrcp.f32 %v3727_v41  ;;  %v3730_v44 = vadd.f32 1.0, %v5486_v39  ;;  %v4194_v20 = vmul.f32 -1.442695, %v3690_v47  ;;  %v3689_v29 = vadd.f32 %v3666_v0, %v1529_v61 }
 0x8b7   :  { %v5488_v7 = vpop.eup %5487  ;;  %5511 = vpow2.f32 %v4191_v32 }
 0x8b8   :  { %v5490_v8 = vpop.eup %5489  ;;  %5513 = vrcp.f32 %v3730_v44  ;;  %v3729_v53 = vadd.f32 1.0, %v5488_v7  ;;  %v4193_v12 = vmul.f32 -1.442695, %v3689_v29 }
 0x8b9   :  { %v5492_v10 = vpop.eup %5491  ;;  %5515 = vpow2.f32 %v4194_v20 }
 0x8ba   :  { %v5494_v36 = vpop.eup %5493  ;;  %5517 = vrcp.f32 %v3729_v53  ;;  %v3772_v46 = vmul.f32 %v5492_v10, %v5490_v8 }
 0x8bb   :  { %v5496_v17 = vpop.eup %5495  ;;  %5519 = vpow2.f32 %v4193_v12 }
 0x8bc   :  { %v5498_v54 = vpop.eup %5497  ;;  %v3771_v49 = vmul.f32 %v5496_v17, %v5494_v36 }
 0x8bd   :  { %v5500_v9 = vpop.eup %5499 }
 0x8be   :  { %v5502_v13 = vpop.eup %5501  ;;  %v3774_v22 = vmul.f32 %v5500_v9, %v5498_v54 }
 0x8bf   :  { %v5504_v63 = vpop.eup %5503 }
 0x8c0   :  { %v3773_v43 = vmul.f32 %v5504_v63, %v5502_v13 }
 0x8c1   :  { %v5506_v52 = vpop.eup %5505 }
 0x8c2   :  { %v5508_v28 = vpop.eup %5507  ;;  %v3768_v60 = vmul.f32 %v5506_v52, %v7185_v38 }
 0x8c3   :  { %v5510_v2 = vpop.eup %5509  ;;  %v3756_v58 = vadd.f32 1.0, %v5508_v28 }
 0x8c4   :  { %v5512_v30 = vpop.eup %5511  ;;  %v3776_v14 = vadd.f32 %v3772_v46, %v3768_v60  ;;  %v3767_v15 = vmul.f32 %v5510_v2, %v7188_v34 }
 0x8c5   :  { %v5514_v1 = vpop.eup %5513  ;;  %5521 = vrcp.f32 %v3756_v58  ;;  %v3755_v48 = vadd.f32 1.0, %v5512_v30 }
 0x8c6   :  { %v5516_v27 = vpop.eup %5515  ;;  %5523 = vtanh.f32 %v3776_v14  ;;  %v3775_v35 = vadd.f32 %v3771_v49, %v3767_v15  ;;  %v3770_v31 = vmul.f32 %v5514_v1, %v7191_v45 }
 0x8c7   :  { %v5518_v21 = vpop.eup %5517  ;;  %5525 = vrcp.f32 %v3755_v48  ;;  %v3758_v4 = vadd.f32 1.0, %v5516_v27 }
 0x8c8   :  { %v5520_v26 = vpop.eup %5519  ;;  %5527 = vtanh.f32 %v3775_v35  ;;  %v3778_v38 = vadd.f32 %v3774_v22, %v3770_v31  ;;  %v3769_v23 = vmul.f32 %v5518_v21, %v7195_v19 }
 0x8c9   :  { %5529 = vrcp.f32 %v3758_v4  ;;  %v3757_v33 = vadd.f32 1.0, %v5520_v26 }
 0x8ca   :  { %5531 = vtanh.f32 %v3778_v38  ;;  %v3777_v34 = vadd.f32 %v3773_v43, %v3769_v23 }
 0x8cb   :  { %5533 = vrcp.f32 %v3757_v33 }
 0x8cc   :  { %5535 = vtanh.f32 %v3777_v34 }
 0x8d2   :  { %v5522_v51 = vpop.eup %5521 }
 0x8d3   :  { %v5524_v40 = vpop.eup %5523 }
 0x8d4   :  { %v5526_v37 = vpop.eup %5525  ;;  %v3784_v50 = vmul.f32 %v5524_v40, %v5522_v51 }
 0x8d5   :  { %v5528_v55 = vpop.eup %5527 }
 0x8d6   :  { %v5530_v45 = vpop.eup %5529  ;;  %v3783_v5 = vmul.f32 %v5528_v55, %v5526_v37  ;;  %3788 = vst [vmem:[#allocation3 + $0x8] sm:$0xff] %v3784_v50 }
 0x8d7   :  { %v5532_v18 = vpop.eup %5531 }
 0x8d8   :  { %v5534_v24 = vpop.eup %5533  ;;  %v3786_v6 = vmul.f32 %v5532_v18, %v5530_v45  ;;  %3787 = vst [vmem:[#allocation3] sm:$0xff] %v3783_v5 }
 0x8d9   :  { %v5536_v19 = vpop.eup %5535 }
 0x8da   :  { %v3785_v16 = vmul.f32 %v5536_v19, %v5534_v24  ;;  %3790 = vst [vmem:[#allocation3 + $0x18] sm:$0xff] %v3786_v6 }
 0x8dc   :  { %3789 = vst [vmem:[#allocation3 + $0x10] sm:$0xff] %v3785_v16 }
 0x8dd   :  { %5580 = shalt.err (!%p5577_p4)
}
 0x8de   :  { %s5594_s19 = smov 128   ;;  %s5595_s20 = smov 8  }
 0x8df   :  { %3802 = dma.vmem_to_hbm [thread:$0]  %s3797_s17, 512, %s7273_s4, [#allocation4], %s5594_s19, %s5594_s19, %s5595_s20  }
 0x8e0   :  { %5589 = dma.done.wait [#allocation4], 512  }
 0x8e1   :  { %5590 = vsyncadd [#allocation4], 4294966784 }
 0x8e2   :  { %3806 = vsyncpa [#allocation4], 1 }

</bundles_post_ra>
